<compile_context>
chip_gen: v6e
topology: v6e:2x2x1
jax: 0.10.0
libtpu: 0.0.40
codegen_flags: <defaults>
</compile_context>

<pallas_src>
import jax
import jax.numpy as jnp
from jax import lax
from jax.experimental import pallas as pl
from jax.experimental.pallas import tpu as pltpu


N_CM_BLOCKS = 2          # split Cmid=1280 into two 640-wide parallel column blocks


def _conv_pool_kernel(x_ref, w_ref, bias_ref, acc_ref):
    """One (batch tile, Cmid half, spatial tile) step:
       1x1 conv (bf16 MXU) -> +bias (folded BN) -> SiLU -> spatial partial sum."""
    @pl.when(pl.program_id(2) == 0)
    def _init():
        acc_ref[...] = jnp.zeros_like(acc_ref)

    w = w_ref[...]                               # (C1p, CM_BLK) bf16, BN scale folded in
    bias = bias_ref[...]                         # (1, CM_BLK)   f32
    tb = x_ref.shape[0]
    rows = []
    for b in range(tb):                          # static unroll over the batch tile
        xb = x_ref[b].astype(jnp.bfloat16)       # (C1p, THW): channels on sublanes
        # Contract the channel axis of both operands (transposed-LHS MXU matmul,
        # flash-attn-bwd style) -> (THW, CM_BLK); avoids any transpose of x.
        y = lax.dot_general(xb, w, (((0,), (0,)), ((), ())),
                            preferred_element_type=jnp.float32)
        y = y + bias                             # folded eval-mode BatchNorm
        y = y * jax.nn.sigmoid(y)                # SiLU
        rows.append(jnp.sum(y, axis=0, keepdims=True))            # (1, CM_BLK)
    # Streaming AdaptiveAvgPool2d(1): per-image spatial SUM (1/HW folded into head).
    acc_ref[...] += jnp.concatenate(rows, axis=0)                 # (TB, CM_BLK)


def _head_kernel(pooled_ref, w_ref, bias_ref, o_ref):
    """Single (Bp, Cmid) @ (Cmid, C2p) head matmul + bias for the whole batch."""
    o_ref[...] = (
        jnp.dot(pooled_ref[...], w_ref[...], preferred_element_type=jnp.float32)
        + bias_ref[...]
    ).astype(o_ref.dtype)


def _round_up(x, m):
    return -(-x // m) * m


def _plan_tiles(B, C1p, HW):
    """Pick (TB, Bp, THW, HWp): tile-legal blocks that stay well under the default
    scoped-VMEM limits (16 MiB on v5e, 32 MiB default / 64 MiB physical on v7x)."""
    TB = 8 if B >= 8 else B                # sublane-aligned batch tile (or full batch)
    Bp = _round_up(B, TB)
    max_thw = 1024                         # caps the (THW, 640) f32 activation temp
    x_budget = 4 << 20                     # ~4 MiB for the (TB, C1p, THW) f32 x block
    if HW <= max_thw and TB * C1p * HW * 4 <= x_budget:
        return TB, Bp, HW, HW              # whole image per step (block == full dim)
    thw = min(max_thw, max(128, (x_budget // (TB * C1p * 4)) // 128 * 128))
    return TB, Bp, thw, _round_up(HW, thw)


@jax.jit
def classify_forward(x_nchw, w_conv, bn_gamma, bn_beta, bn_mean, bn_var,
                     w_lin, b_lin, eps=1e-5):
    """x_nchw: (B, C1, H, W) float32.  Returns (B, C2) float32."""
    B, C1, H, W = x_nchw.shape
    Cmid = w_conv.shape[0]                 # 1280
    C2 = w_lin.shape[0]
    HW = H * W

    # --- wrapper glue: no big HBM passes over x (reshape is free; pads only when a
    #     dim is not already tile-friendly, which real backbone shapes avoid) ------
    C1p = _round_up(C1, 8)
    TB, Bp, THW, HWp = _plan_tiles(B, C1p, HW)
    CM_BLK = Cmid // N_CM_BLOCKS

    x3 = x_nchw.reshape(B, C1, HW)                         # free (NCHW is contiguous)
    if C1p != C1 or HWp != HW or Bp != B:
        x3 = jnp.pad(x3, ((0, Bp - B), (0, C1p - C1), (0, HWp - HW)))

    scale = bn_gamma / jnp.sqrt(bn_var + eps)              # (Cmid,)
    bias_row = (bn_beta - bn_mean * scale).reshape(1, Cmid).astype(jnp.float32)
    # Fold BN scale into the conv weight, orient as (C1p, Cmid), bf16 for the MXU.
    w_mat = (w_conv[:, :, 0, 0] * scale[:, None]).T        # (C1, Cmid)
    w_mat = jnp.pad(w_mat, ((0, C1p - C1), (0, 0))).astype(jnp.bfloat16)

    # --- kernel 1: 1x1 conv + BN + SiLU + streaming spatial pooling ---------------
    # TODO(synk): single-buffer the held weight/bias blocks (pipeline_mode=pl.Buffered(1))
    # to halve their VMEM footprint on v5e once that API path is exercised in CI.
    pooled = pl.pallas_call(
        _conv_pool_kernel,
        out_shape=jax.ShapeDtypeStruct((Bp, Cmid), jnp.float32),
        grid_spec=pltpu.PrefetchScalarGridSpec(
            num_scalar_prefetch=0,
            grid=(Bp // TB, N_CM_BLOCKS, HWp // THW),
            in_specs=[
                pl.BlockSpec((TB, C1p, THW), lambda b, c, t: (b, 0, t)),  # x (native layout)
                pl.BlockSpec((C1p, CM_BLK), lambda b, c, t: (0, c)),      # folded conv weight
                pl.BlockSpec((1, CM_BLK), lambda b, c, t: (0, c)),        # folded BN bias
            ],
            out_specs=pl.BlockSpec((TB, CM_BLK), lambda b, c, t: (b, c)), # per-image sums
        ),
        compiler_params=pltpu.CompilerParams(
            dimension_semantics=("parallel", "parallel", "arbitrary")),
    )(x3, w_mat, bias_row)

    # Zero-padded spatial positions contribute exactly SiLU(bias) each; remove them.
    if HWp != HW:
        pooled = pooled - (HWp - HW) * (bias_row * jax.nn.sigmoid(bias_row))

    # --- kernel 2: linear head (Dropout(p=0) == identity; 1/HW mean folded in) ----
    C2p = _round_up(C2, 128)
    w_head = jnp.pad(w_lin.T / HW, ((0, 0), (0, C2p - C2)))           # (Cmid, C2p) f32
    b_head = jnp.pad(b_lin.reshape(1, C2), ((0, 0), (0, C2p - C2)))   # (1, C2p)

    out_padded = pl.pallas_call(
        _head_kernel,
        out_shape=jax.ShapeDtypeStruct((Bp, C2p), jnp.float32),
        in_specs=[pl.BlockSpec(memory_space=pltpu.MemorySpace.VMEM)] * 3,
        out_specs=pl.BlockSpec(memory_space=pltpu.MemorySpace.VMEM),
    )(pooled, w_head, b_head)

    return out_padded[:B, :C2]


if __name__ == "__main__":
    # Small shapes consistent with Classify: x(b, c1, 16, 16) -> (b, c2)
    B, C1, H, W = 2, 4, 16, 16
    Cmid, C2 = 1280, 16

    key = jax.random.PRNGKey(0)
    k_x, k_wc, k_g, k_b, k_m, k_v, k_wl, k_bl = jax.random.split(key, 8)

    x = jax.random.normal(k_x, (B, C1, H, W), dtype=jnp.float32)

    # Deterministic synthetic parameters (shapes match the nn module __init__).
    w_conv = jax.random.normal(k_wc, (Cmid, C1, 1, 1), dtype=jnp.float32) * 0.1
    bn_gamma = 1.0 + 0.1 * jax.random.normal(k_g, (Cmid,), dtype=jnp.float32)
    bn_beta = 0.1 * jax.random.normal(k_b, (Cmid,), dtype=jnp.float32)
    bn_mean = 0.05 * jax.random.normal(k_m, (Cmid,), dtype=jnp.float32)   # running_mean
    bn_var = jnp.abs(1.0 + 0.1 * jax.random.normal(k_v, (Cmid,), dtype=jnp.float32))  # running_var
    w_lin = jax.random.normal(k_wl, (C2, Cmid), dtype=jnp.float32) * 0.05
    b_lin = 0.1 * jax.random.normal(k_bl, (C2,), dtype=jnp.float32)

    out = classify_forward(x, w_conv, bn_gamma, bn_beta, bn_mean, bn_var, w_lin, b_lin)
    out = jax.block_until_ready(out)

    # Pure-f32 reference.  The kernel uses bf16 MXU operands with f32 accumulation,
    # so the comparison tolerance is loosened accordingly (error here is ~1e-4).
    def ref(x):
        xb = jnp.transpose(x, (0, 2, 3, 1)).reshape(B, H * W, C1)
        y = xb @ jnp.transpose(w_conv[:, :, 0, 0], (1, 0))
        scale = bn_gamma / jnp.sqrt(bn_var + 1e-5)
        y = y * scale + (bn_beta - bn_mean * scale)
        y = y * jax.nn.sigmoid(y)
        p = jnp.mean(y, axis=1)
        return p @ w_lin.T + b_lin

    ref_out = ref(x)
    assert out.shape == (B, C2)
    assert jnp.allclose(out, ref_out, atol=5e-3, rtol=5e-3), "mismatch vs reference"

    print("KERNEL_OK")
</pallas_src>

<mosaic_0001>
module attributes {stable_mosaic.version = 11 : i64} {
  func.func @_conv_pool_kernel(%arg0: i32, %arg1: i32, %arg2: i32, %arg3: memref<2x8x256xf32, #tpu.memory_space<vmem>>, %arg4: memref<8x640xbf16, #tpu.memory_space<vmem>>, %arg5: memref<1x640xf32, #tpu.memory_space<vmem>>, %arg6: memref<2x640xf32, #tpu.memory_space<vmem>>) attributes {dimension_semantics = [#tpu.dimension_semantics<parallel>, #tpu.dimension_semantics<parallel>, #tpu.dimension_semantics<arbitrary>], iteration_bounds = array<i64: 1, 2, 1>, scalar_prefetch = 0 : i64, scratch_operands = 0 : i64, tpu.core_type = #tpu.core_type<tc>, window_params = [{transform_indices = @transform_0, window_bounds = array<i64: 2, 8, 256>}, {transform_indices = @transform_1, window_bounds = array<i64: 8, 640>}, {transform_indices = @transform_2, window_bounds = array<i64: 1, 640>}, {transform_indices = @transform_3, window_bounds = array<i64: 2, 640>}]} {
    %c0_i32 = arith.constant 0 : i32
    %0 = arith.cmpi eq, %arg2, %c0_i32 : i32
    %1 = arith.extui %0 : i1 to i32
    %c0_i32_0 = arith.constant 0 : i32
    %2 = arith.cmpi ne, %1, %c0_i32_0 : i32
    scf.if %2 {
      %cst_18 = arith.constant 0.000000e+00 : f32
      %37 = vector.broadcast %cst_18 : f32 to vector<2x640xf32>
      %c0_19 = arith.constant 0 : index
      %c0_20 = arith.constant 0 : index
      %38 = vector.load %arg6[%c0_19, %c0_20] : memref<2x640xf32, #tpu.memory_space<vmem>>, vector<2x640xf32>
      tpu.vector_store %arg6[%c0_19, %c0_20], %37 {strides = array<i32>} : memref<2x640xf32, #tpu.memory_space<vmem>>, vector<2x640xf32>,
    } else {
    }
    %c0 = arith.constant 0 : index
    %c0_1 = arith.constant 0 : index
    %3 = vector.load %arg4[%c0, %c0_1] : memref<8x640xbf16, #tpu.memory_space<vmem>>, vector<8x640xbf16>
    %c0_2 = arith.constant 0 : index
    %c0_3 = arith.constant 0 : index
    %4 = vector.load %arg5[%c0_2, %c0_3] : memref<1x640xf32, #tpu.memory_space<vmem>>, vector<1x640xf32>
    %c0_4 = arith.constant 0 : index
    %c0_5 = arith.constant 0 : index
    %c0_6 = arith.constant 0 : index
    %5 = vector.load %arg3[%c0_4, %c0_5, %c0_6] : memref<2x8x256xf32, #tpu.memory_space<vmem>>, vector<1x8x256xf32>
    %6 = vector.shape_cast %5 : vector<1x8x256xf32> to vector<8x256xf32>
    %7 = arith.truncf %6 : vector<8x256xf32> to vector<8x256xbf16>
    %cst = arith.constant dense<0.000000e+00> : vector<256x640xf32>
    %8 = tpu.matmul %7, %3, %cst {dimension_numbers = #tpu.dot_dimension_numbers<[0], [0], [1], [1], [0, 1, 1, 1], [], []>} : vector<8x256xbf16>, vector<8x640xbf16>, vector<256x640xf32> -> vector<256x640xf32>
    %9 = vector.broadcast %4 : vector<1x640xf32> to vector<256x640xf32>
    %10 = arith.addf %8, %9 : vector<256x640xf32>
    %11 = arith.negf %10 : vector<256x640xf32>
    %12 = math.exp %11 : vector<256x640xf32>
    %cst_7 = arith.constant 1.000000e+00 : f32
    %13 = vector.broadcast %cst_7 : f32 to vector<256x640xf32>
    %14 = arith.addf %13, %12 : vector<256x640xf32>
    %15 = arith.divf %13, %14 : vector<256x640xf32>
    %16 = arith.mulf %10, %15 : vector<256x640xf32>
    %cst_8 = arith.constant dense<0.000000e+00> : vector<640xf32>
    %17 = vector.multi_reduction <add>, %16, %cst_8 [0] : vector<256x640xf32> to vector<640xf32>
    %18 = vector.shape_cast %17 : vector<640xf32> to vector<1x640xf32>
    %c1 = arith.constant 1 : index
    %c0_9 = arith.constant 0 : index
    %c0_10 = arith.constant 0 : index
    %19 = vector.load %arg3[%c1, %c0_9, %c0_10] : memref<2x8x256xf32, #tpu.memory_space<vmem>>, vector<1x8x256xf32>
    %20 = vector.shape_cast %19 : vector<1x8x256xf32> to vector<8x256xf32>
    %21 = arith.truncf %20 : vector<8x256xf32> to vector<8x256xbf16>
    %cst_11 = arith.constant dense<0.000000e+00> : vector<256x640xf32>
    %22 = tpu.matmul %21, %3, %cst_11 {dimension_numbers = #tpu.dot_dimension_numbers<[0], [0], [1], [1], [0, 1, 1, 1], [], []>} : vector<8x256xbf16>, vector<8x640xbf16>, vector<256x640xf32> -> vector<256x640xf32>
    %23 = vector.broadcast %4 : vector<1x640xf32> to vector<256x640xf32>
    %24 = arith.addf %22, %23 : vector<256x640xf32>
    %25 = arith.negf %24 : vector<256x640xf32>
    %26 = math.exp %25 : vector<256x640xf32>
    %cst_12 = arith.constant 1.000000e+00 : f32
    %27 = vector.broadcast %cst_12 : f32 to vector<256x640xf32>
    %28 = arith.addf %27, %26 : vector<256x640xf32>
    %29 = arith.divf %27, %28 : vector<256x640xf32>
    %30 = arith.mulf %24, %29 : vector<256x640xf32>
    %cst_13 = arith.constant dense<0.000000e+00> : vector<640xf32>
    %31 = vector.multi_reduction <add>, %30, %cst_13 [0] : vector<256x640xf32> to vector<640xf32>
    %32 = vector.shape_cast %31 : vector<640xf32> to vector<1x640xf32>
    %c0_14 = arith.constant 0 : index
    %c0_15 = arith.constant 0 : index
    %33 = vector.load %arg6[%c0_14, %c0_15] : memref<2x640xf32, #tpu.memory_space<vmem>>, vector<2x640xf32>
    %34 = tpu.concatenate %18, %32 in 0 : vector<1x640xf32>, vector<1x640xf32> -> vector<2x640xf32>
    %35 = arith.addf %33, %34 : vector<2x640xf32>
    %c0_16 = arith.constant 0 : index
    %c0_17 = arith.constant 0 : index
    %36 = vector.load %arg6[%c0_16, %c0_17] : memref<2x640xf32, #tpu.memory_space<vmem>>, vector<2x640xf32>
    tpu.vector_store %arg6[%c0_16, %c0_17], %35 {strides = array<i32>} : memref<2x640xf32, #tpu.memory_space<vmem>>, vector<2x640xf32>,
    return
  }
  func.func @transform_0(%arg0: i32, %arg1: i32, %arg2: i32) -> (i32, i32, i32) {
    %c0_i32 = arith.constant 0 : i32
    %c0_i32_0 = arith.constant 0 : i32
    return %arg0, %c0_i32, %arg2 : i32, i32, i32
  }
  func.func @transform_1(%arg0: i32, %arg1: i32, %arg2: i32) -> (i32, i32) {
    %c0_i32 = arith.constant 0 : i32
    %c0_i32_0 = arith.constant 0 : i32
    return %c0_i32, %arg1 : i32, i32
  }
  func.func @transform_2(%arg0: i32, %arg1: i32, %arg2: i32) -> (i32, i32) {
    %c0_i32 = arith.constant 0 : i32
    %c0_i32_0 = arith.constant 0 : i32
    return %c0_i32, %arg1 : i32, i32
  }
  func.func @transform_3(%arg0: i32, %arg1: i32, %arg2: i32) -> (i32, i32) {
    %c0_i32 = arith.constant 0 : i32
    return %arg0, %arg1 : i32, i32
  }
}

module attributes {stable_mosaic.version = 11 : i64} {
  func.func @_head_kernel(%arg0: memref<2x1280xf32, #tpu.memory_space<vmem>>, %arg1: memref<1280x128xf32, #tpu.memory_space<vmem>>, %arg2: memref<1x128xf32, #tpu.memory_space<vmem>>, %arg3: memref<2x128xf32, #tpu.memory_space<vmem>>) attributes {dimension_semantics = [], scalar_prefetch = 0 : i64, scratch_operands = 0 : i64, tpu.core_type = #tpu.core_type<tc>} {
    %c0 = arith.constant 0 : index
    %c0_0 = arith.constant 0 : index
    %0 = vector.load %arg0[%c0, %c0_0] : memref<2x1280xf32, #tpu.memory_space<vmem>>, vector<2x1280xf32>
    %c0_1 = arith.constant 0 : index
    %c0_2 = arith.constant 0 : index
    %1 = vector.load %arg1[%c0_1, %c0_2] : memref<1280x128xf32, #tpu.memory_space<vmem>>, vector<1280x128xf32>
    %cst = arith.constant dense<0.000000e+00> : vector<2x128xf32>
    %2 = tpu.matmul %0, %1, %cst {dimension_numbers = #tpu.dot_dimension_numbers<[1], [0], [0], [1], [0, 0, 1, 1], [], []>} : vector<2x1280xf32>, vector<1280x128xf32>, vector<2x128xf32> -> vector<2x128xf32>
    %c0_3 = arith.constant 0 : index
    %c0_4 = arith.constant 0 : index
    %3 = vector.load %arg2[%c0_3, %c0_4] : memref<1x128xf32, #tpu.memory_space<vmem>>, vector<1x128xf32>
    %4 = vector.broadcast %3 : vector<1x128xf32> to vector<2x128xf32>
    %5 = arith.addf %2, %4 : vector<2x128xf32>
    %c0_5 = arith.constant 0 : index
    %c0_6 = arith.constant 0 : index
    %6 = vector.load %arg3[%c0_5, %c0_6] : memref<2x128xf32, #tpu.memory_space<vmem>>, vector<2x128xf32>
    tpu.vector_store %arg3[%c0_5, %c0_6], %5 {strides = array<i32>} : memref<2x128xf32, #tpu.memory_space<vmem>>, vector<2x128xf32>,
    return
  }
}

</mosaic_0001>

<bundles_post_ra>
// kernel: classify_forward.3
= control target key start
LH: loop header
LB: loop body
LE: loop exit
PB: predicated region body
PF: predicated region fallthrough
CT: control target
= control target key end

     0   :  { %v808_v27 = vmov 1983009808   ;;  %v192_v29 = vlaneseq  ;;  %s1336_s0 = inlined_call_operand.vmem [shape: f32[2,1280], index: 0, kind: input, shape index: {}]   ;;  %s1337_s1 = inlined_call_operand.vmem [shape: f32[1280,128], index: 1, kind: input, shape index: {}]   ;;  %s1338_s2 = inlined_call_operand.vmem [shape: f32[1,128], index: 2, kind: input, shape index: {}]   ;;  %s1339_s3 = inlined_call_operand.hbm [shape: f32[2,128], index: 3, kind: output, shape index: {}]  }
   0x1   :  { %v49_v0 = vld [vmem:[%s1337_s1 + $0xf8] sm:$0xff]  ;;  %v48_v2 = vld [vmem:[%s1337_s1 + $0xf0] sm:$0xff]  ;;  %v47_v6 = vld [vmem:[%s1337_s1 + $0xe8] sm:$0xff]  ;;  %v190_v28 = vunpack.c.l.s4 %v808_v27 }
   0x2   :  { %v33_v1 = vld [vmem:[%s1337_s1 + $0x78] sm:$0xff]  ;;  %607 = vmatprep.subr.mxu0 %v49_v0  ;;  %v32_v4 = vld [vmem:[%s1337_s1 + $0x70] sm:$0xff]  ;;  %v31_v8 = vld [vmem:[%s1337_s1 + $0x68] sm:$0xff]  ;;  %v193_v39 = vshrl.u32 %v192_v29, 7 }
   0x3   :  { %v81_v3 = vld [vmem:[%s1337_s1 + $0x1f8] sm:$0xff]  ;;  %608 = vmatpush3.msra.mxu0 %v33_v1  ;;  %v80_v7 = vld [vmem:[%s1337_s1 + $0x1f0] sm:$0xff]  ;;  %v79_v10 = vld [vmem:[%s1337_s1 + $0x1e8] sm:$0xff]  ;;  %v191_v38 = vunpack.c.0.s8 %v190_v28 }
   0x4   :  { %v65_v5 = vld [vmem:[%s1337_s1 + $0x178] sm:$0xff]  ;;  %642 = vmatprep.subr.mxu1 %v81_v3  ;;  %609 = vmatprep.subr.mxu0 %v48_v2  ;;  %v64_v9 = vld [vmem:[%s1337_s1 + $0x170] sm:$0xff]  ;;  %v46_v11 = vld [vmem:[%s1337_s1 + $0xe0] sm:$0xff] }
   0x5   :  { %643 = vmatpush3.msra.mxu1 %v65_v5  ;;  %610 = vmatpush3.msra.mxu0 %v32_v4  ;;  %v63_v12 = vld [vmem:[%s1337_s1 + $0x168] sm:$0xff]  ;;  %v30_v13 = vld [vmem:[%s1337_s1 + $0x60] sm:$0xff]  ;;  %v45_v15 = vld [vmem:[%s1337_s1 + $0xd8] sm:$0xff]  ;;  %v959_v48 = vsub.s32 %v191_v38, %v193_v39 }
   0x6   :  { %644 = vmatprep.subr.mxu1 %v80_v7  ;;  %611 = vmatprep.subr.mxu0 %v47_v6  ;;  %v78_v14 = vld [vmem:[%s1337_s1 + $0x1e0] sm:$0xff]  ;;  %v29_v17 = vld [vmem:[%s1337_s1 + $0x58] sm:$0xff]  ;;  %v44_v19 = vld [vmem:[%s1337_s1 + $0xd0] sm:$0xff] }
   0x7   :  { %645 = vmatpush3.msra.mxu1 %v64_v9  ;;  %612 = vmatpush3.msra.mxu0 %v31_v8  ;;  %v62_v16 = vld [vmem:[%s1337_s1 + $0x160] sm:$0xff]  ;;  %v77_v18 = vld [vmem:[%s1337_s1 + $0x1d8] sm:$0xff]  ;;  %v28_v21 = vld [vmem:[%s1337_s1 + $0x50] sm:$0xff] }
   0x8   :  { %646 = vmatprep.subr.mxu1 %v79_v10  ;;  %613 = vmatprep.subr.mxu0 %v46_v11  ;;  %v61_v20 = vld [vmem:[%s1337_s1 + $0x158] sm:$0xff]  ;;  %v76_v22 = vld [vmem:[%s1337_s1 + $0x1d0] sm:$0xff]  ;;  %v43_v23 = vld [vmem:[%s1337_s1 + $0xc8] sm:$0xff] }
   0x9   :  { %647 = vmatpush3.msra.mxu1 %v63_v12  ;;  %614 = vmatpush3.msra.mxu0 %v30_v13  ;;  %v60_v24 = vld [vmem:[%s1337_s1 + $0x150] sm:$0xff]  ;;  %v27_v25 = vld [vmem:[%s1337_s1 + $0x48] sm:$0xff]  ;;  %v42_v30 = vld [vmem:[%s1337_s1 + $0xc0] sm:$0xff] }
   0xa   :  { %648 = vmatprep.subr.mxu1 %v78_v14  ;;  %615 = vmatprep.subr.mxu0 %v45_v15  ;;  %v75_v26 = vld [vmem:[%s1337_s1 + $0x1c8] sm:$0xff]  ;;  %v26_v32 = vld [vmem:[%s1337_s1 + $0x40] sm:$0xff]  ;;  %v41_v34 = vld [vmem:[%s1337_s1 + $0xb8] sm:$0xff] }
   0xb   :  { %649 = vmatpush3.msra.mxu1 %v62_v16  ;;  %616 = vmatpush3.msra.mxu0 %v29_v17  ;;  %v59_v31 = vld [vmem:[%s1337_s1 + $0x148] sm:$0xff]  ;;  %v74_v33 = vld [vmem:[%s1337_s1 + $0x1c0] sm:$0xff]  ;;  %v25_v36 = vld [vmem:[%s1337_s1 + $0x38] sm:$0xff] }
   0xc   :  { %650 = vmatprep.subr.mxu1 %v77_v18  ;;  %617 = vmatprep.subr.mxu0 %v44_v19  ;;  %v58_v35 = vld [vmem:[%s1337_s1 + $0x140] sm:$0xff]  ;;  %v73_v37 = vld [vmem:[%s1337_s1 + $0x1b8] sm:$0xff]  ;;  %v40_v40 = vld [vmem:[%s1337_s1 + $0xb0] sm:$0xff] }
   0xd   :  { %651 = vmatpush3.msra.mxu1 %v61_v20  ;;  %618 = vmatpush3.msra.mxu0 %v28_v21  ;;  %v57_v41 = vld [vmem:[%s1337_s1 + $0x138] sm:$0xff]  ;;  %v24_v42 = vld [vmem:[%s1337_s1 + $0x30] sm:$0xff]  ;;  %v39_v44 = vld [vmem:[%s1337_s1 + $0xa8] sm:$0xff] }
   0xe   :  { %652 = vmatprep.subr.mxu1 %v76_v22  ;;  %619 = vmatprep.subr.mxu0 %v43_v23  ;;  %v72_v43 = vld [vmem:[%s1337_s1 + $0x1b0] sm:$0xff]  ;;  %v23_v46 = vld [vmem:[%s1337_s1 + $0x28] sm:$0xff]  ;;  %v38_v49 = vld [vmem:[%s1337_s1 + $0xa0] sm:$0xff] }
   0xf   :  { %653 = vmatpush3.msra.mxu1 %v60_v24  ;;  %620 = vmatpush3.msra.mxu0 %v27_v25  ;;  %v56_v45 = vld [vmem:[%s1337_s1 + $0x130] sm:$0xff]  ;;  %v71_v47 = vld [vmem:[%s1337_s1 + $0x1a8] sm:$0xff]  ;;  %v15_v51 = vld [vmem:[%s1336_s0] sm:$0xff] }
  0x10   :  { %654 = vmatprep.subr.mxu1 %v75_v26  ;;  %621 = vmatprep.subr.mxu0 %v42_v30  ;;  %v55_v50 = vld [vmem:[%s1337_s1 + $0x128] sm:$0xff]  ;;  %v22_v52 = vld [vmem:[%s1337_s1 + $0x20] sm:$0xff]  ;;  %v37_v54 = vld [vmem:[%s1337_s1 + $0x98] sm:$0xff]  ;;  %v195_v58 = vrot.slane %v15_v51, %v959_v48  ;;  %v188_v59 = vcombine.high %v15_v51, %v15_v51 }
  0x11   :  { %655 = vmatpush3.msra.mxu1 %v59_v31  ;;  %622 = vmatpush3.msra.mxu0 %v26_v32  ;;  %v70_v53 = vld [vmem:[%s1337_s1 + $0x1a0] sm:$0xff]  ;;  %v21_v56 = vld [vmem:[%s1337_s1 + $0x18] sm:$0xff]  ;;  %v36_v60 = vld [vmem:[%s1337_s1 + $0x90] sm:$0xff] }
  0x12   :  { %656 = vmatprep.subr.mxu1 %v74_v33  ;;  %623 = vmatprep.subr.mxu0 %v41_v34  ;;  %v54_v55 = vld [vmem:[%s1337_s1 + $0x120] sm:$0xff]  ;;  %v69_v57 = vld [vmem:[%s1337_s1 + $0x198] sm:$0xff]  ;;  %v20_v62 = vld [vmem:[%s1337_s1 + $0x10] sm:$0xff]  ;;  %v203_v4 = vcombine.high %v195_v58, %v195_v58  ;;  %v202_v5 = vrot.slane %v188_v59, %v959_v48 }
  0x13   :  { %657 = vmatpush3.msra.mxu1 %v58_v35  ;;  %624 = vmatpush3.msra.mxu0 %v25_v36  ;;  %v53_v61 = vld [vmem:[%s1337_s1 + $0x118] sm:$0xff]  ;;  %v68_v63 = vld [vmem:[%s1337_s1 + $0x190] sm:$0xff]  ;;  %v35_v0 = vld [vmem:[%s1337_s1 + $0x88] sm:$0xff] }
  0x14   :  { %658 = vmatprep.subr.mxu1 %v73_v37  ;;  %625 = vmatprep.subr.mxu0 %v40_v40  ;;  %v52_v1 = vld [vmem:[%s1337_s1 + $0x110] sm:$0xff]  ;;  %v19_v2 = vld [vmem:[%s1337_s1 + $0x8] sm:$0xff]  ;;  %v34_v6 = vld [vmem:[%s1337_s1 + $0x80] sm:$0xff]  ;;  %v204_v12 = vcombine.high %v202_v5, %v202_v5 }
  0x15   :  { %659 = vmatpush3.msra.mxu1 %v57_v41  ;;  %626 = vmatpush3.msra.mxu0 %v24_v42  ;;  %v67_v3 = vld [vmem:[%s1337_s1 + $0x188] sm:$0xff]  ;;  %v18_v7 = vld [vmem:[%s1337_s1] sm:$0xff]  ;;  %v113_v10 = vld [vmem:[%s1337_s1 + $0x2f8] sm:$0xff] }
  0x16   :  { %660 = vmatprep.subr.mxu1 %v72_v43  ;;  %627 = vmatprep.subr.mxu0 %v39_v44  ;;  %v51_v8 = vld [vmem:[%s1337_s1 + $0x108] sm:$0xff]  ;;  %v66_v9 = vld [vmem:[%s1337_s1 + $0x180] sm:$0xff]  ;;  %v97_v13 = vld [vmem:[%s1337_s1 + $0x278] sm:$0xff] }
  0x17   :  { %661 = vmatpush3.msra.mxu1 %v56_v45  ;;  %628 = vmatpush3.msra.mxu0 %v23_v46  ;;  %v50_v11 = vld [vmem:[%s1337_s1 + $0x100] sm:$0xff]  ;;  %v112_v14 = vld [vmem:[%s1337_s1 + $0x2f0] sm:$0xff]  ;;  %v145_v15 = vld [vmem:[%s1337_s1 + $0x3f8] sm:$0xff] }
  0x18   :  { %662 = vmatprep.subr.mxu1 %v71_v47  ;;  %629 = vmatprep.subr.mxu0 %v38_v49  ;;  %v96_v16 = vld [vmem:[%s1337_s1 + $0x270] sm:$0xff]  ;;  %v129_v17 = vld [vmem:[%s1337_s1 + $0x378] sm:$0xff]  ;;  %v111_v18 = vld [vmem:[%s1337_s1 + $0x2e8] sm:$0xff] }
  0x19   :  { %663 = vmatpush3.msra.mxu1 %v55_v50  ;;  %630 = vmatpush3.msra.mxu0 %v22_v52  ;;  %v144_v19 = vld [vmem:[%s1337_s1 + $0x3f0] sm:$0xff]  ;;  %v95_v20 = vld [vmem:[%s1337_s1 + $0x268] sm:$0xff]  ;;  %v110_v22 = vld [vmem:[%s1337_s1 + $0x2e0] sm:$0xff] }
  0x1a   :  { %664 = vmatprep.subr.mxu1 %v70_v53  ;;  %631 = vmatprep.subr.mxu0 %v37_v54  ;;  %v128_v21 = vld [vmem:[%s1337_s1 + $0x370] sm:$0xff]  ;;  %v143_v23 = vld [vmem:[%s1337_s1 + $0x3e8] sm:$0xff]  ;;  %v94_v24 = vld [vmem:[%s1337_s1 + $0x260] sm:$0xff] }
  0x1b   :  { %665 = vmatpush3.msra.mxu1 %v54_v55  ;;  %632 = vmatpush3.msra.mxu0 %v21_v56  ;;  %v127_v25 = vld [vmem:[%s1337_s1 + $0x368] sm:$0xff]  ;;  %v109_v26 = vld [vmem:[%s1337_s1 + $0x2d8] sm:$0xff]  ;;  %v142_v27 = vld [vmem:[%s1337_s1 + $0x3e0] sm:$0xff] }
  0x1c   :  { %666 = vmatprep.subr.mxu1 %v69_v57  ;;  %633 = vmatprep.subr.mxu0 %v36_v60  ;;  %v93_v28 = vld [vmem:[%s1337_s1 + $0x258] sm:$0xff]  ;;  %v126_v29 = vld [vmem:[%s1337_s1 + $0x360] sm:$0xff]  ;;  %v108_v30 = vld [vmem:[%s1337_s1 + $0x2d0] sm:$0xff] }
  0x1d   :  { %667 = vmatpush3.msra.mxu1 %v53_v61  ;;  %634 = vmatpush3.msra.mxu0 %v20_v62  ;;  %v141_v31 = vld [vmem:[%s1337_s1 + $0x3d8] sm:$0xff]  ;;  %v92_v32 = vld [vmem:[%s1337_s1 + $0x250] sm:$0xff]  ;;  %v107_v34 = vld [vmem:[%s1337_s1 + $0x2c8] sm:$0xff] }
  0x1e   :  { %668 = vmatprep.subr.mxu1 %v68_v63  ;;  %635 = vmatprep.subr.mxu0 %v35_v0  ;;  %v125_v33 = vld [vmem:[%s1337_s1 + $0x358] sm:$0xff]  ;;  %v140_v35 = vld [vmem:[%s1337_s1 + $0x3d0] sm:$0xff]  ;;  %v91_v36 = vld [vmem:[%s1337_s1 + $0x248] sm:$0xff] }
  0x1f   :  { %669 = vmatpush3.msra.mxu1 %v52_v1  ;;  %636 = vmatpush3.msra.mxu0 %v19_v2  ;;  %v124_v37 = vld [vmem:[%s1337_s1 + $0x350] sm:$0xff]  ;;  %v106_v38 = vld [vmem:[%s1337_s1 + $0x2c0] sm:$0xff]  ;;  %v139_v39 = vld [vmem:[%s1337_s1 + $0x3c8] sm:$0xff] }
  0x20   :  { %670 = vmatprep.subr.mxu1 %v67_v3  ;;  %637 = vmatprep.subr.mxu0 %v34_v6  ;;  %v90_v40 = vld [vmem:[%s1337_s1 + $0x240] sm:$0xff]  ;;  %v123_v41 = vld [vmem:[%s1337_s1 + $0x348] sm:$0xff]  ;;  %v105_v42 = vld [vmem:[%s1337_s1 + $0x2b8] sm:$0xff] }
  0x21   :  { %304 = vmatprep.mubr.f32.mxu0 %v203_v4  ;;  %638 = vmatpush3.msra.mxu0 %v18_v7  ;;  %v138_v43 = vld [vmem:[%s1337_s1 + $0x3c0] sm:$0xff]  ;;  %v89_v44 = vld [vmem:[%s1337_s1 + $0x238] sm:$0xff]  ;;  %v104_v46 = vld [vmem:[%s1337_s1 + $0x2b0] sm:$0xff] }
  0x22   :  { %671 = vmatpush3.msra.mxu1 %v51_v8  ;;  %305 = vmatmul.mubr.f32.vlgmr.msra.gmra.mxu0 %v195_v58  ;;  %v122_v45 = vld [vmem:[%s1337_s1 + $0x340] sm:$0xff]  ;;  %v137_v47 = vld [vmem:[%s1337_s1 + $0x3b8] sm:$0xff]  ;;  %v88_v49 = vld [vmem:[%s1337_s1 + $0x230] sm:$0xff] }
  0x23   :  { %672 = vmatprep.subr.mxu1 %v66_v9  ;;  %677 = vmatprep.subr.mxu0 %v113_v10  ;;  %v121_v50 = vld [vmem:[%s1337_s1 + $0x338] sm:$0xff]  ;;  %v103_v51 = vld [vmem:[%s1337_s1 + $0x2a8] sm:$0xff]  ;;  %v136_v52 = vld [vmem:[%s1337_s1 + $0x3b0] sm:$0xff] }
  0x24   :  { %673 = vmatpush3.msra.mxu1 %v50_v11  ;;  %374 = vmatprep.mubr.f32.mxu1 %v204_v12  ;;  %v87_v53 = vld [vmem:[%s1337_s1 + $0x228] sm:$0xff]  ;;  %v120_v54 = vld [vmem:[%s1337_s1 + $0x330] sm:$0xff]  ;;  %v102_v55 = vld [vmem:[%s1337_s1 + $0x2a0] sm:$0xff] }
  0x25   :  { %678 = vmatpush3.msra.mxu0 %v97_v13  ;;  %375 = vmatmul.mubr.f32.vlgmr.msra.gmra.mxu1 %v202_v5  ;;  %v135_v56 = vld [vmem:[%s1337_s1 + $0x3a8] sm:$0xff]  ;;  %v86_v57 = vld [vmem:[%s1337_s1 + $0x220] sm:$0xff] }
  0x26   :  { %679 = vmatprep.subr.mxu0 %v112_v14  ;;  %712 = vmatprep.subr.mxu1 %v145_v15  ;;  %v16_v58 = vld [vmem:[%s1336_s0 + $0x8] sm:$0xff] }
  0x27   :  { %680 = vmatpush3.msra.mxu0 %v96_v16  ;;  %713 = vmatpush3.msra.mxu1 %v129_v17 }
  0x28   :  { %681 = vmatprep.subr.mxu0 %v111_v18  ;;  %714 = vmatprep.subr.mxu1 %v144_v19 }
  0x29   :  { %682 = vmatpush3.msra.mxu0 %v95_v20  ;;  %715 = vmatpush3.msra.mxu1 %v128_v21 }
  0x2a   :  { %683 = vmatprep.subr.mxu0 %v110_v22  ;;  %716 = vmatprep.subr.mxu1 %v143_v23 }
  0x2b   :  { %684 = vmatpush3.msra.mxu0 %v94_v24  ;;  %717 = vmatpush3.msra.mxu1 %v127_v25 }
  0x2c   :  { %685 = vmatprep.subr.mxu0 %v109_v26  ;;  %718 = vmatprep.subr.mxu1 %v142_v27 }
  0x2d   :  { %686 = vmatpush3.msra.mxu0 %v93_v28  ;;  %719 = vmatpush3.msra.mxu1 %v126_v29 }
  0x2e   :  { %687 = vmatprep.subr.mxu0 %v108_v30  ;;  %720 = vmatprep.subr.mxu1 %v141_v31 }
  0x2f   :  { %688 = vmatpush3.msra.mxu0 %v92_v32  ;;  %721 = vmatpush3.msra.mxu1 %v125_v33 }
  0x30   :  { %689 = vmatprep.subr.mxu0 %v107_v34  ;;  %722 = vmatprep.subr.mxu1 %v140_v35 }
  0x31   :  { %690 = vmatpush3.msra.mxu0 %v91_v36  ;;  %723 = vmatpush3.msra.mxu1 %v124_v37 }
  0x32   :  { %691 = vmatprep.subr.mxu0 %v106_v38  ;;  %724 = vmatprep.subr.mxu1 %v139_v39 }
  0x33   :  { %692 = vmatpush3.msra.mxu0 %v90_v40  ;;  %725 = vmatpush3.msra.mxu1 %v123_v41 }
  0x34   :  { %693 = vmatprep.subr.mxu0 %v105_v42  ;;  %726 = vmatprep.subr.mxu1 %v138_v43 }
  0x35   :  { %694 = vmatpush3.msra.mxu0 %v89_v44  ;;  %727 = vmatpush3.msra.mxu1 %v122_v45 }
  0x36   :  { %695 = vmatprep.subr.mxu0 %v104_v46  ;;  %728 = vmatprep.subr.mxu1 %v137_v47 }
  0x37   :  { %696 = vmatpush3.msra.mxu0 %v88_v49  ;;  %729 = vmatpush3.msra.mxu1 %v121_v50 }
  0x38   :  { %697 = vmatprep.subr.mxu0 %v103_v51 }
  0x39   :  { %8 = vsyncpa [#allocation3], 0  ;;  %730 = vmatprep.subr.mxu1 %v136_v52  ;;  %698 = vmatpush3.msra.mxu0 %v87_v53  ;;  %v119_v59 = vld [vmem:[%s1337_s1 + $0x328] sm:$0xff]  ;;  %v101_v60 = vld [vmem:[%s1337_s1 + $0x298] sm:$0xff]  ;;  %v205_v1 = vcombine.high %v16_v58, %v16_v58  ;;  %v212_v4 = vrot.slane %v16_v58, %v959_v48 }
  0x3a   :  { %731 = vmatpush3.msra.mxu1 %v120_v54  ;;  %699 = vmatprep.subr.mxu0 %v102_v55  ;;  %v134_v61 = vld [vmem:[%s1337_s1 + $0x3a0] sm:$0xff]  ;;  %v85_v62 = vld [vmem:[%s1337_s1 + $0x218] sm:$0xff]  ;;  %v100_v0 = vld [vmem:[%s1337_s1 + $0x290] sm:$0xff] }
  0x3b   :  { %732 = vmatprep.subr.mxu1 %v135_v56  ;;  %700 = vmatpush3.msra.mxu0 %v86_v57  ;;  %v118_v63 = vld [vmem:[%s1337_s1 + $0x320] sm:$0xff]  ;;  %v133_v2 = vld [vmem:[%s1337_s1 + $0x398] sm:$0xff]  ;;  %v84_v3 = vld [vmem:[%s1337_s1 + $0x210] sm:$0xff]  ;;  %v219_v11 = vrot.slane %v205_v1, %v959_v48  ;;  %v220_v14 = vcombine.high %v212_v4, %v212_v4 }
  0x3c   :  { %733 = vmatpush3.msra.mxu1 %v119_v59  ;;  %701 = vmatprep.subr.mxu0 %v101_v60  ;;  %v117_v5 = vld [vmem:[%s1337_s1 + $0x318] sm:$0xff]  ;;  %v99_v6 = vld [vmem:[%s1337_s1 + $0x288] sm:$0xff]  ;;  %v132_v7 = vld [vmem:[%s1337_s1 + $0x390] sm:$0xff] }
  0x3d   :  { %734 = vmatprep.subr.mxu1 %v134_v61  ;;  %702 = vmatpush3.msra.mxu0 %v85_v62  ;;  %v83_v8 = vld [vmem:[%s1337_s1 + $0x208] sm:$0xff]  ;;  %v116_v9 = vld [vmem:[%s1337_s1 + $0x310] sm:$0xff]  ;;  %v98_v10 = vld [vmem:[%s1337_s1 + $0x280] sm:$0xff]  ;;  %v221_v19 = vcombine.high %v219_v11, %v219_v11 }
  0x3e   :  { %735 = vmatpush3.msra.mxu1 %v118_v63  ;;  %703 = vmatprep.subr.mxu0 %v100_v0  ;;  %v131_v12 = vld [vmem:[%s1337_s1 + $0x388] sm:$0xff]  ;;  %v82_v13 = vld [vmem:[%s1337_s1 + $0x200] sm:$0xff]  ;;  %v1226_v16 = vld.sshfl [vmem:[%s1336_s0 + $0x10] sm:$0x33 pattern:$0x76325410] }
  0x3f   :  { %736 = vmatprep.subr.mxu1 %v133_v2  ;;  %704 = vmatpush3.msra.mxu0 %v84_v3  ;;  %v115_v15 = vld [vmem:[%s1337_s1 + $0x308] sm:$0xff]  ;;  %v130_v48 = vld [vmem:[%s1337_s1 + $0x380] sm:$0xff]  ;;  %v177_v17 = vld [vmem:[%s1337_s1 + $0x4f8] sm:$0xff]  ;;  %v229_v22 = vcombine.high %v1226_v16, %v1226_v16 }
  0x40   :  { %737 = vmatpush3.msra.mxu1 %v117_v5  ;;  %705 = vmatprep.subr.mxu0 %v99_v6  ;;  %v114_v18 = vld [vmem:[%s1337_s1 + $0x300] sm:$0xff]  ;;  %v161_v20 = vld [vmem:[%s1337_s1 + $0x478] sm:$0xff]  ;;  %v176_v21 = vld [vmem:[%s1337_s1 + $0x4f0] sm:$0xff] }
  0x41   :  { %738 = vmatprep.subr.mxu1 %v132_v7  ;;  %706 = vmatpush3.msra.mxu0 %v83_v8  ;;  %v160_v23 = vld [vmem:[%s1337_s1 + $0x470] sm:$0xff]  ;;  %v175_v24 = vld [vmem:[%s1337_s1 + $0x4e8] sm:$0xff]  ;;  %v174_v26 = vld [vmem:[%s1337_s1 + $0x4e0] sm:$0xff] }
  0x42   :  { %739 = vmatpush3.msra.mxu1 %v116_v9  ;;  %707 = vmatprep.subr.mxu0 %v98_v10  ;;  %v159_v25 = vld [vmem:[%s1337_s1 + $0x468] sm:$0xff]  ;;  %v158_v27 = vld [vmem:[%s1337_s1 + $0x460] sm:$0xff]  ;;  %v173_v28 = vld [vmem:[%s1337_s1 + $0x4d8] sm:$0xff] }
  0x43   :  { %740 = vmatprep.subr.mxu1 %v131_v12  ;;  %708 = vmatpush3.msra.mxu0 %v82_v13  ;;  %v157_v29 = vld [vmem:[%s1337_s1 + $0x458] sm:$0xff]  ;;  %v172_v30 = vld [vmem:[%s1337_s1 + $0x4d0] sm:$0xff]  ;;  %v171_v32 = vld [vmem:[%s1337_s1 + $0x4c8] sm:$0xff] }
  0x44   :  { %444 = vmatprep.mubr.f32.mxu0 %v220_v14  ;;  %741 = vmatpush3.msra.mxu1 %v115_v15  ;;  %v156_v31 = vld [vmem:[%s1337_s1 + $0x450] sm:$0xff]  ;;  %v155_v33 = vld [vmem:[%s1337_s1 + $0x448] sm:$0xff]  ;;  %v170_v34 = vld [vmem:[%s1337_s1 + $0x4c0] sm:$0xff] }
  0x45   :  { %445 = vmatmul.mubr.f32.vlgmr.msra.gmra.mxu0 %v212_v4  ;;  %742 = vmatprep.subr.mxu1 %v130_v48  ;;  %v154_v35 = vld [vmem:[%s1337_s1 + $0x440] sm:$0xff]  ;;  %v169_v36 = vld [vmem:[%s1337_s1 + $0x4b8] sm:$0xff]  ;;  %v168_v38 = vld [vmem:[%s1337_s1 + $0x4b0] sm:$0xff] }
  0x46   :  { %747 = vmatprep.subr.mxu0 %v177_v17  ;;  %743 = vmatpush3.msra.mxu1 %v114_v18  ;;  %v153_v37 = vld [vmem:[%s1337_s1 + $0x438] sm:$0xff]  ;;  %v152_v39 = vld [vmem:[%s1337_s1 + $0x430] sm:$0xff]  ;;  %v167_v40 = vld [vmem:[%s1337_s1 + $0x4a8] sm:$0xff] }
  0x47   :  { %514 = vmatprep.mubr.f32.mxu1 %v221_v19  ;;  %748 = vmatpush3.msra.mxu0 %v161_v20  ;;  %v151_v41 = vld [vmem:[%s1337_s1 + $0x428] sm:$0xff]  ;;  %v166_v42 = vld [vmem:[%s1337_s1 + $0x4a0] sm:$0xff]  ;;  %v165_v44 = vld [vmem:[%s1337_s1 + $0x498] sm:$0xff] }
  0x48   :  { %515 = vmatmul.mubr.f32.vlgmr.msra.gmra.mxu1 %v219_v11  ;;  %749 = vmatprep.subr.mxu0 %v176_v21  ;;  %v150_v43 = vld [vmem:[%s1337_s1 + $0x420] sm:$0xff]  ;;  %v149_v45 = vld [vmem:[%s1337_s1 + $0x418] sm:$0xff]  ;;  %v164_v46 = vld [vmem:[%s1337_s1 + $0x490] sm:$0xff] }
  0x49   :  { %750 = vmatpush3.msra.mxu0 %v160_v23  ;;  %584 = vmatprep.mubr.f32.mxu0 %v229_v22  ;;  %v148_v47 = vld [vmem:[%s1337_s1 + $0x410] sm:$0xff]  ;;  %v163_v49 = vld [vmem:[%s1337_s1 + $0x488] sm:$0xff]  ;;  %v162_v51 = vld [vmem:[%s1337_s1 + $0x480] sm:$0xff] }
  0x4a   :  { %751 = vmatprep.subr.mxu0 %v175_v24  ;;  %v147_v50 = vld [vmem:[%s1337_s1 + $0x408] sm:$0xff]  ;;  %v146_v52 = vld [vmem:[%s1337_s1 + $0x400] sm:$0xff]  ;;  %s809_s1 = smov [#allocation2]  }
  0x4b   :  { %752 = vmatpush3.msra.mxu0 %v159_v25  ;;  %v605_v58 = vld [vmem:[%s1338_s2] ss:$0 sm:$0xff]  ;;  %s597_s13 = sshll.u32 %s809_s1, 4  ;;  %s598_s13 = int_to_ptr.vmem [resolvable:$true] %s597_s13 }
  0x4c   :  { %753 = vmatprep.subr.mxu0 %v174_v26  ;;  %s786_s2 = scalar_lea.vmem %s598_s13, 32  ;;  %p791_p1 = scmp.lt.s32.totalorder %s598_s13, %s598_s13 }
  0x4d   :  { %754 = vmatpush3.msra.mxu0 %v158_v27  ;;  %p787_p0 = scmp.ne.s32.totalorder %s598_s13, %s786_s2  ;;  %p792_p2 = scmp.lt.s32.totalorder %s786_s2, %s786_s2 }
  0x4e   :  { %755 = vmatprep.subr.mxu0 %v173_v28 }
  0x4f   :  { %756 = vmatpush3.msra.mxu0 %v157_v29  ;;  %p793_p3 = por %p792_p2, %p791_p1 }
  0x50   :  { %757 = vmatprep.subr.mxu0 %v172_v30 }
  0x51   :  { %758 = vmatpush3.msra.mxu0 %v156_v31  ;;  %p794_p4 = pnand %p793_p3, %p787_p0 }
  0x52   :  { %759 = vmatprep.subr.mxu0 %v171_v32 }
  0x53   :  { %760 = vmatpush3.msra.mxu0 %v155_v33 }
  0x54   :  { %761 = vmatprep.subr.mxu0 %v170_v34 }
  0x55   :  { %762 = vmatpush3.msra.mxu0 %v154_v35 }
  0x56   :  { %763 = vmatprep.subr.mxu0 %v169_v36 }
  0x57   :  { %764 = vmatpush3.msra.mxu0 %v153_v37 }
  0x58   :  { %765 = vmatprep.subr.mxu0 %v168_v38 }
  0x59   :  { %766 = vmatpush3.msra.mxu0 %v152_v39 }
  0x5a   :  { %767 = vmatprep.subr.mxu0 %v167_v40 }
  0x5b   :  { %768 = vmatpush3.msra.mxu0 %v151_v41 }
  0x5c   :  { %769 = vmatprep.subr.mxu0 %v166_v42 }
  0x5d   :  { %770 = vmatpush3.msra.mxu0 %v150_v43 }
  0x5e   :  { %771 = vmatprep.subr.mxu0 %v165_v44 }
  0x5f   :  { %772 = vmatpush3.msra.mxu0 %v149_v45 }
  0x60   :  { %773 = vmatprep.subr.mxu0 %v164_v46 }
  0x61   :  { %774 = vmatpush3.msra.mxu0 %v148_v47 }
  0x62   :  { %775 = vmatprep.subr.mxu0 %v163_v49 }
  0x63   :  { %776 = vmatpush3.msra.mxu0 %v147_v50 }
  0x64   :  { %777 = vmatprep.subr.mxu0 %v162_v51 }
  0x65   :  { %778 = vmatpush3.msra.mxu0 %v146_v52 }
  0x66   :  { %585 = vmatmul.mubr.f32.vlgmr.msra.gmra.mxu0 %v1226_v16 }
  0xe2   :  { %v639_v53 = vpop.f32.mrf.mxu0 }
  0xe4   :  { %v640_v54 = vpop.f32.mrf.mxu0 }
  0xe5   :  { %v674_v55 = vpop.f32.mrf.mxu1  ;;  %v641_v57 = vadd.f32 %v640_v54, %v639_v53 }
  0xe7   :  { %v675_v59 = vpop.f32.mrf.mxu1  ;;  %v307_v62 = vadd.f32 %v641_v57, %v605_v58 }
  0xe8   :  { %v676_v63 = vadd.f32 %v675_v59, %v674_v55 }
  0xea   :  { %v377_v2 = vadd.f32 %v676_v63, %v307_v62 }
 0x105   :  { %v709_v56 = vpop.f32.mrf.mxu0 }
 0x107   :  { %v710_v60 = vpop.f32.mrf.mxu0 }
 0x108   :  { %v744_v61 = vpop.f32.mrf.mxu1  ;;  %v711_v0 = vadd.f32 %v710_v60, %v709_v56 }
 0x10a   :  { %v745_v1 = vpop.f32.mrf.mxu1  ;;  %v447_v3 = vadd.f32 %v711_v0, %v377_v2 }
 0x10b   :  { %v746_v4 = vadd.f32 %v745_v1, %v744_v61 }
 0x10d   :  { %v517_v7 = vadd.f32 %v746_v4, %v447_v3 }
 0x126   :  { %v779_v5 = vpop.f32.mrf.mxu0 }
 0x128   :  { %v780_v6 = vpop.f32.mrf.mxu0 }
 0x129   :  { %v781_v8 = vadd.f32 %v780_v6, %v779_v5 }
 0x12b   :  { %v587_v9 = vadd.f32 %v781_v8, %v517_v7 }
 0x12d   :  { %590 = vst [vmem:[#allocation2] sm:$0x3] %v587_v9 }
 0x12e   :  { %797 = shalt.err (!%p794_p4)
}
 0x12f   :  { %600 = dma.vmem_to_hbm [thread:$0]  %s598_s13, 32, %s1339_s3, [#allocation3]  }
 0x130   :  { %806 = dma.done.wait [#allocation3], 32  }
 0x131   :  { %807 = vsyncadd [#allocation3], 4294967264 }
 0x132   :  { %604 = vsyncpa [#allocation3], 1 }

// kernel: classify_forward.2
= control target key start
LH: loop header
LB: loop body
LE: loop exit
PB: predicated region body
PF: predicated region fallthrough
CT: control target
= control target key end

     0   :  { %s6261_s12 = smov 0   ;;  %s6263_s13 = smov 0   ;;  %s8882_s0 = inlined_call_operand.vmem [shape: f32[2,8,256], index: 0, kind: input, shape index: {}]   ;;  %s8883_s1 = inlined_call_operand.vmem [shape: bf16[8,1280], index: 1, kind: input, shape index: {}]   ;;  %s8884_s2 = inlined_call_operand.vmem [shape: f32[1,1280], index: 2, kind: input, shape index: {}]   ;;  %s8885_s3 = inlined_call_operand.vmem [shape: f32[2,1280], index: 3, kind: output, shape index: {}]  }
   0x1   :  { %s6265_s14 = smov 0  }
   0x2 LB: > { %s28_s15 = sadd.s32 1, %s6232_s13  ;;  %p4365_p0 = scmp.ge.s32.totalorder %s6236_s14, 1  ;;  %s6236_s14 = sphi %s6265_s14, %s13_s14   ;;  %s6232_s13 = sphi %s6263_s13, %s9502_s13   ;;  %s6228_s12 = sphi %s6261_s12, %s9501_s12  }
   0x3   : > { %p30_p1 = scmp.ge.s32.totalorder %s28_s15, 2  ;;  %p188_p2 = scmp.lt.s32.totalorder %s6236_s14, 3 }
   0x5   : > { %s9504_s15 = smov (%p30_p1, %s28_s15), 0  ;;  %p189_p3 = pnand %p4365_p0, %p188_p2 }
   0x7   : > { %192 = sbr.rel (%p189_p3) target bundleno = 994 (0x3e2), region = 32 }
   0xc   : > { %v274_v0 = vld [vmem:[%s8882_s0] sm:$0xff]  ;;  %s242_s18 = smul.u32 5, %s6228_s12  ;;  %v8886_v2 = vmov 0   ;;  %v4583_v3 = vld [vmem:[%s8882_s0 + $0x10] sm:$0xff]  ;;  %vm398_vm0 = vcmask 1043456   ;;  %v6239_v6 = vmov 0.0   ;;  %v279_v43 = vlaneseq }
   0xd   : > { %v276_v1 = vpack.c.bf16 %v274_v0, %v274_v0  ;;  %446 = vmatprep.mubr.bf16.mxu0 %v8886_v2  ;;  %639 = vmatprep.mubr.bf16.mxu1 %v8886_v2  ;;  %v2269_v4 = vpack.c.bf16 %v4583_v3, %v4583_v3  ;;  %v275_v15 = vld [vmem:[%s8882_s0 + $0x8] sm:$0xff]  ;;  %v4584_v17 = vld [vmem:[%s8882_s0 + $0x18] sm:$0xff]  ;;  %vm349_vm1 = vcmask 64512   ;;  %vm4205_vm2 = vcmask 1040384  }
   0xe   : > { %p243_p4 = scmp.lt.s32.totalorder %s242_s18, 9  ;;  %v277_v16 = vpack.c.bf16 %v275_v15, %v275_v15  ;;  %v2270_v18 = vpack.c.bf16 %v4584_v17, %v4584_v17  ;;  %v6478_v45 = vshrl.u32 %v279_v43, 7 }
   0xf   : > { %304 = vxpose.xlu0.c.b16.start.end [1/1] (short) %v276_v1, 128  ;;  %2271 = vxpose.xlu1.c.b16.start.end [1/1] (short) %v2269_v4, 128 }
  0x10   : > { %s9506_s18 = smov (!%p243_p4, %s242_s18), 9  ;;  %9100 = vst [vmem:[#allocation6_spill] sm:$0xff] %v6478_v45  ;;  %v281_v46 = vsub.s32 0, %v6478_v45  ;;  %v289_v47 = vsub.s32 2, %v6478_v45  ;;  %v285_v49 = vsub.s32 1, %v6478_v45  ;;  %v293_v50 = vsub.s32 3, %v6478_v45 }
  0x11   : > { %s4366_s21 = sshll.u32 %s9506_s18, 2  ;;  %s4367_s25 = sshll.u32 %s9506_s18, 1 }
  0x12   : > { %s246_s24 = scalar_lea.vmem %s8883_s1, %s4366_s21  ;;  %s6297_s28 = scalar_lea.vmem %s8885_s3, %s4367_s25 }
  0x13   : > { %v270_v5 = vld [vmem:[%s246_s24] sm:$0xff]  ;;  %269 = vst [vmem:[%s6297_s28 + $0x8] sm:$0x3] %v6239_v6  ;;  %v4929_v8 = vld [vmem:[%s246_s24 + $0x10] ss:$0 sps:$4 sm:$0xff]   ;;  %v271_v9 = vld [vmem:[%s246_s24 + $0x8] sm:$0xff]  ;;  %s6484_s8 = scalar_lea.vmem %s8884_s2, %s9506_s18 }
  0x14   : > { %v4369_v7 = vcombine.high %v270_v5, %v270_v5  ;;  %v4368_v10 = vcombine.low %v270_v5, %v270_v5  ;;  %v4371_v11 = vcombine.high %v271_v9, %v271_v9  ;;  %v4370_v12 = vcombine.low %v271_v9, %v271_v9  ;;  %v273_v48 = vld [vmem:[%s6484_s8] sm:$0x1f] }
  0x15   : > { %v6316_v19 = vsel %vm398_vm0, %v4929_v8, 0  ;;  %v6498_v52 = vrot.slane %v273_v48, %v281_v46  ;;  %v6500_v53 = vrot.slane %v273_v48, %v289_v47  ;;  %v6502_v54 = vrot.slane %v273_v48, %v285_v49 }
  0x16   : > { %4373 = vmatprep.subr.msk.bf16.mxu0 %vm398_vm0, %v4369_v7  ;;  %v400_v13 = vsel %vm398_vm0, %v4368_v10, 0  ;;  %4390 = vmatprep.subr.msk.bf16.mxu1 %vm398_vm0, %v4371_v11  ;;  %v6304_v14 = vsel %vm398_vm0, %v4370_v12, 0  ;;  %v6504_v55 = vrot.slane %v273_v48, %v293_v50 }
  0x17   : > { %429 = vmatpush1.bf16.msra.mxu0 %v400_v13  ;;  %622 = vmatpush1.bf16.msra.mxu1 %v6304_v14  ;;  %9101 = vst [vmem:[#allocation7_spill] sm:$0xff] %v6500_v53  ;;  %9102 = vst [vmem:[#allocation8_spill] sm:$0xff] %v6502_v54 }
  0x18   : > { %4899 = vmatprep.subr.msk.bf16.mxu0 %vm398_vm0, %v4929_v8  ;;  %4585 = vmatprep.subr.msk.bf16.mxu1 %vm398_vm0, %v4369_v7  ;;  %9103 = vst [vmem:[#allocation9_spill] sm:$0xff] %v6504_v55 }
  0x2c   : > { %320 = vxpose.xlu0.c.b16.start.end [1/1] (short) %v277_v16, 128  ;;  %2287 = vxpose.xlu1.c.b16.start.end [1/1] (short) %v2270_v18, 128 }
  0x71   : > { %v6318_v20 = vpop.trf.xlu0  ;;  %v6418_v36 = vpop.trf.xlu1 }
  0x72   : > { %4374 = vmatmul.mubr.msk.bf16.vlgmr.msra.gmra.mxu0 %vm349_vm1, %v6318_v20  ;;  %4391 = vmatmul.mubr.msk.bf16.vlgmr.msra.gmra.mxu1 %vm349_vm1, %v6318_v20 }
  0x73   : > { %4832 = vmatpush3.bf16.msra.mxu0 %v6316_v19  ;;  %2366 = vmatpush1.bf16.msra.mxu1 %v400_v13 }
  0x74   : > { %456 = vmatprep.mubr.bf16.mxu0 %v8886_v2  ;;  %649 = vmatprep.mubr.bf16.mxu1 %v8886_v2 }
  0x75   : > { %4602 = vmatprep.subr.msk.bf16.mxu0 %vm398_vm0, %v4371_v11  ;;  %4900 = vmatprep.subr.msk.bf16.mxu1 %vm398_vm0, %v4929_v8  ;;  %v6329_v21 = vpop.trf.xlu0  ;;  %v6429_v37 = vpop.trf.xlu1 }
  0x76   : > { %9096 = vst [vmem:[#allocation2_spill] sm:$0xff] %v6429_v37 }
  0x79   : > { %v6337_v22 = vpop.trf.xlu0  ;;  %v6438_v38 = vpop.trf.xlu1 }
  0x7a   : > { %4375 = vmatmul.mubr.msk.bf16.gmra.mxu0 %vm349_vm1, %v6329_v21  ;;  %4392 = vmatmul.mubr.msk.bf16.gmra.mxu1 %vm349_vm1, %v6329_v21  ;;  %9097 = vst [vmem:[#allocation3_spill] sm:$0xff] %v6438_v38 }
  0x7b   : > { %466 = vmatprep.mubr.bf16.mxu0 %v8886_v2  ;;  %659 = vmatprep.mubr.bf16.mxu1 %v8886_v2 }
  0x7d   : > { %v6345_v23 = vpop.trf.xlu0  ;;  %v6447_v39 = vpop.trf.xlu1 }
  0x7e   : > { %9098 = vst [vmem:[#allocation4_spill] sm:$0xff] %v6447_v39 }
  0x81   : > { %v6353_v24 = vpop.trf.xlu0  ;;  %v6455_v40 = vpop.trf.xlu1 }
  0x82   : > { %4376 = vmatmul.mubr.msk.bf16.gmra.mxu0 %vm349_vm1, %v6337_v22  ;;  %4393 = vmatmul.mubr.msk.bf16.gmra.mxu1 %vm349_vm1, %v6337_v22  ;;  %9099 = vst [vmem:[#allocation5_spill] sm:$0xff] %v6455_v40 }
  0x83   : > { %476 = vmatprep.mubr.bf16.mxu0 %v8886_v2  ;;  %669 = vmatprep.mubr.bf16.mxu1 %v8886_v2 }
  0x85   : > { %v6361_v25 = vpop.trf.xlu0  ;;  %v6462_v41 = vpop.trf.xlu1 }
  0x89   : > { %v6369_v26 = vpop.trf.xlu0  ;;  %v6469_v42 = vpop.trf.xlu1 }
  0x8a   : > { %4377 = vmatmul.mubr.msk.bf16.gmra.mxu0 %vm349_vm1, %v6345_v23  ;;  %4394 = vmatmul.mubr.msk.bf16.gmra.mxu1 %vm349_vm1, %v6345_v23 }
  0x8b   : > { %486 = vmatprep.mubr.bf16.mxu0 %v8886_v2  ;;  %679 = vmatprep.mubr.bf16.mxu1 %v8886_v2 }
  0x8d   : > { %v6377_v27 = vpop.trf.xlu0  ;;  %v6476_v44 = vpop.trf.xlu1 }
  0x91   : > { %v328_v28 = vpop.trf.xlu0  ;;  %v6496_v51 = vpop.trf.xlu1 }
  0x92   : > { %4378 = vmatmul.mubr.msk.bf16.gmra.mxu0 %vm349_vm1, %v6353_v24  ;;  %4395 = vmatmul.mubr.msk.bf16.gmra.mxu1 %vm349_vm1, %v6353_v24 }
  0x93   : > { %496 = vmatprep.mubr.bf16.mxu0 %v8886_v2  ;;  %689 = vmatprep.mubr.bf16.mxu1 %v8886_v2 }
  0x95   : > { %v329_v29 = vpop.trf.xlu0  ;;  %v6531_v8 = vpop.trf.xlu1 }
  0x96   : > { %9104 = vst [vmem:[#allocation10_spill] sm:$0xff] %v6531_v8 }
  0x99   : > { %v330_v30 = vpop.trf.xlu0 }
  0x9a   : > { %4379 = vmatmul.mubr.msk.bf16.gmra.mxu0 %vm349_vm1, %v6361_v25  ;;  %4396 = vmatmul.mubr.msk.bf16.gmra.mxu1 %vm349_vm1, %v6361_v25 }
  0x9b   : > { %506 = vmatprep.mubr.bf16.mxu0 %v8886_v2  ;;  %699 = vmatprep.mubr.bf16.mxu1 %v8886_v2 }
  0x9d   : > { %v331_v31 = vpop.trf.xlu0 }
  0xa1   : > { %v332_v32 = vpop.trf.xlu0 }
  0xa2   : > { %4380 = vmatmul.mubr.msk.bf16.gmra.mxu0 %vm349_vm1, %v6369_v26  ;;  %4397 = vmatmul.mubr.msk.bf16.gmra.mxu1 %vm349_vm1, %v6369_v26 }
  0xa3   : > { %516 = vmatprep.mubr.bf16.mxu0 %v8886_v2  ;;  %709 = vmatprep.mubr.bf16.mxu1 %v8886_v2 }
  0xa5   : > { %v333_v33 = vpop.trf.xlu0 }
  0xa9   : > { %v334_v34 = vpop.trf.xlu0 }
  0xaa   : > { %4381 = vmatmul.mubr.msk.bf16.gmra.mxu0 %vm349_vm1, %v6377_v27  ;;  %4398 = vmatmul.mubr.msk.bf16.gmra.mxu1 %vm349_vm1, %v6377_v27 }
  0xab   : > { %526 = vmatprep.mubr.bf16.mxu0 %v8886_v2  ;;  %719 = vmatprep.mubr.bf16.mxu1 %v8886_v2 }
  0xad   : > { %v335_v35 = vpop.trf.xlu0 }
  0xb2   : > { %4382 = vmatmul.mubr.msk.bf16.gmra.mxu0 %vm349_vm1, %v328_v28  ;;  %4399 = vmatmul.mubr.msk.bf16.gmra.mxu1 %vm349_vm1, %v328_v28 }
  0xb3   : > { %536 = vmatprep.mubr.bf16.mxu0 %v8886_v2  ;;  %729 = vmatprep.mubr.bf16.mxu1 %v8886_v2 }
  0xba   : > { %4383 = vmatmul.mubr.msk.bf16.gmra.mxu0 %vm349_vm1, %v329_v29  ;;  %4400 = vmatmul.mubr.msk.bf16.gmra.mxu1 %vm349_vm1, %v329_v29 }
  0xbb   : > { %546 = vmatprep.mubr.bf16.mxu0 %v8886_v2  ;;  %739 = vmatprep.mubr.bf16.mxu1 %v8886_v2 }
  0xc2   : > { %4384 = vmatmul.mubr.msk.bf16.gmra.mxu0 %vm349_vm1, %v330_v30  ;;  %4401 = vmatmul.mubr.msk.bf16.gmra.mxu1 %vm349_vm1, %v330_v30 }
  0xc3   : > { %556 = vmatprep.mubr.bf16.mxu0 %v8886_v2  ;;  %749 = vmatprep.mubr.bf16.mxu1 %v8886_v2 }
  0xca   : > { %4385 = vmatmul.mubr.msk.bf16.gmra.mxu0 %vm349_vm1, %v331_v31  ;;  %4402 = vmatmul.mubr.msk.bf16.gmra.mxu1 %vm349_vm1, %v331_v31 }
  0xcb   : > { %566 = vmatprep.mubr.bf16.mxu0 %v8886_v2  ;;  %759 = vmatprep.mubr.bf16.mxu1 %v8886_v2 }
  0xd2   : > { %4386 = vmatmul.mubr.msk.bf16.gmra.mxu0 %vm349_vm1, %v332_v32  ;;  %4403 = vmatmul.mubr.msk.bf16.gmra.mxu1 %vm349_vm1, %v332_v32 }
  0xd3   : > { %576 = vmatprep.mubr.bf16.mxu0 %v8886_v2  ;;  %769 = vmatprep.mubr.bf16.mxu1 %v8886_v2 }
  0xda   : > { %4387 = vmatmul.mubr.msk.bf16.gmra.mxu0 %vm349_vm1, %v333_v33  ;;  %4404 = vmatmul.mubr.msk.bf16.gmra.mxu1 %vm349_vm1, %v333_v33 }
  0xdb   : > { %586 = vmatprep.mubr.bf16.mxu0 %v8886_v2  ;;  %779 = vmatprep.mubr.bf16.mxu1 %v8886_v2 }
  0xe2   : > { %4388 = vmatmul.mubr.msk.bf16.gmra.mxu0 %vm349_vm1, %v334_v34  ;;  %4405 = vmatmul.mubr.msk.bf16.gmra.mxu1 %vm349_vm1, %v334_v34 }
  0xe3   : > { %596 = vmatprep.mubr.bf16.mxu0 %v8886_v2  ;;  %789 = vmatprep.mubr.bf16.mxu1 %v8886_v2 }
  0xea   : > { %4389 = vmatmul.mubr.msk.bf16.gmra.mxu0 %vm349_vm1, %v335_v35  ;;  %4406 = vmatmul.mubr.msk.bf16.gmra.mxu1 %vm349_vm1, %v335_v35 }
  0xeb   : > { %4833 = vmatprep.mubr.msk.bf16.mxu0 %vm349_vm1, %v6318_v20  ;;  %2383 = vmatprep.mubr.bf16.mxu1 %v8886_v2 }
  0xf2   : > { %4834 = vmatmul.mubr.msk.bf16.vlgmr.msra.gmra.mxu0 %vm349_vm1, %v6329_v21  ;;  %4586 = vmatmul.mubr.msk.bf16.vlgmr.msra.gmra.mxu1 %vm349_vm1, %v6418_v36 }
  0xf3   : > { %2559 = vmatpush1.bf16.msra.mxu0 %v6304_v14  ;;  %4866 = vmatpush3.bf16.msra.mxu1 %v6316_v19 }
  0xf4   : > { %4837 = vmatprep.mubr.msk.bf16.mxu0 %vm349_vm1, %v6337_v22  ;;  %2393 = vmatprep.mubr.bf16.mxu1 %v8886_v2 }
  0xfa   : > { %4838 = vmatmul.mubr.msk.bf16.gmra.mxu0 %vm349_vm1, %v6345_v23  ;;  %4587 = vmatmul.mubr.msk.bf16.gmra.mxu1 %vm349_vm1, %v6429_v37 }
  0xfb   : > { %4841 = vmatprep.mubr.msk.bf16.mxu0 %vm349_vm1, %v6353_v24  ;;  %2403 = vmatprep.mubr.bf16.mxu1 %v8886_v2 }
 0x102   : > { %4842 = vmatmul.mubr.msk.bf16.gmra.mxu0 %vm349_vm1, %v6361_v25  ;;  %4588 = vmatmul.mubr.msk.bf16.gmra.mxu1 %vm349_vm1, %v6438_v38 }
 0x103   : > { %4845 = vmatprep.mubr.msk.bf16.mxu0 %vm349_vm1, %v6369_v26  ;;  %2413 = vmatprep.mubr.bf16.mxu1 %v8886_v2 }
 0x10a   : > { %4846 = vmatmul.mubr.msk.bf16.gmra.mxu0 %vm349_vm1, %v6377_v27  ;;  %4589 = vmatmul.mubr.msk.bf16.gmra.mxu1 %vm349_vm1, %v6447_v39 }
 0x10b   : > { %4849 = vmatprep.mubr.msk.bf16.mxu0 %vm349_vm1, %v328_v28  ;;  %2423 = vmatprep.mubr.bf16.mxu1 %v8886_v2 }
 0x112   : > { %4850 = vmatmul.mubr.msk.bf16.gmra.mxu0 %vm349_vm1, %v329_v29  ;;  %4590 = vmatmul.mubr.msk.bf16.gmra.mxu1 %vm349_vm1, %v6455_v40 }
 0x113   : > { %4853 = vmatprep.mubr.msk.bf16.mxu0 %vm349_vm1, %v330_v30  ;;  %2433 = vmatprep.mubr.bf16.mxu1 %v8886_v2 }
 0x11a   : > { %4854 = vmatmul.mubr.msk.bf16.gmra.mxu0 %vm349_vm1, %v331_v31  ;;  %4591 = vmatmul.mubr.msk.bf16.gmra.mxu1 %vm349_vm1, %v6462_v41 }
 0x11b   : > { %4857 = vmatprep.mubr.msk.bf16.mxu0 %vm349_vm1, %v332_v32  ;;  %2443 = vmatprep.mubr.bf16.mxu1 %v8886_v2 }
 0x122   : > { %4858 = vmatmul.mubr.msk.bf16.gmra.mxu0 %vm349_vm1, %v333_v33  ;;  %4592 = vmatmul.mubr.msk.bf16.gmra.mxu1 %vm349_vm1, %v6469_v42  ;;  %v6571_v33 = vpop.trf.xlu1 }
 0x123   : > { %4861 = vmatprep.mubr.msk.bf16.mxu0 %vm349_vm1, %v334_v34  ;;  %2453 = vmatprep.mubr.bf16.mxu1 %v8886_v2  ;;  %9105 = vst [vmem:[#allocation11_spill] sm:$0xff] %v6571_v33 }
 0x12a   : > { %4862 = vmatmul.mubr.msk.bf16.gmra.mxu0 %vm349_vm1, %v335_v35  ;;  %4593 = vmatmul.mubr.msk.bf16.gmra.mxu1 %vm349_vm1, %v6476_v44 }
 0x12b   : > { %2463 = vmatprep.mubr.bf16.mxu1 %v8886_v2  ;;  %2576 = vmatprep.mubr.bf16.mxu0 %v8886_v2 }
 0x132   : > { %v448_v56 = vpop.f32.mrf.mxu0  ;;  %v641_v57 = vpop.f32.mrf.mxu1  ;;  %4594 = vmatmul.mubr.msk.bf16.gmra.mxu1 %vm349_vm1, %v6496_v51  ;;  %4603 = vmatmul.mubr.msk.bf16.vlgmr.msra.gmra.mxu0 %vm349_vm1, %v6418_v36 }
 0x133   : > { %v6511_v58 = vadd.f32 %v448_v56, %v6498_v52  ;;  %v6514_v59 = vadd.f32 %v641_v57, %v6500_v53  ;;  %2473 = vmatprep.mubr.bf16.mxu1 %v8886_v2  ;;  %2586 = vmatprep.mubr.bf16.mxu0 %v8886_v2 }
 0x134   : > { %v450_v60 = vpop.f32.mrf.mxu0  ;;  %v643_v61 = vpop.f32.mrf.mxu1 }
 0x135   : > { %v4423_v62 = vmul.f32 -1.442695, %v6511_v58  ;;  %v4425_v63 = vmul.f32 -1.442695, %v6514_v59  ;;  %v6521_v0 = vadd.f32 %v450_v60, %v6502_v54  ;;  %v6524_v1 = vadd.f32 %v643_v61, %v6504_v55 }
 0x136   : > { %v452_v3 = vpop.f32.mrf.mxu0  ;;  %v645_v4 = vpop.f32.mrf.mxu1 }
 0x137   : > { %4933 = vpow2.f32 %v4423_v62  ;;  %v4424_v5 = vmul.f32 -1.442695, %v6521_v0  ;;  %v4426_v6 = vmul.f32 -1.442695, %v6524_v1  ;;  %v6529_v7 = vadd.f32 %v452_v3, %v6498_v52 }
 0x138   : > { %4935 = vpow2.f32 %v4425_v63  ;;  %v6534_v9 = vadd.f32 %v645_v4, %v6500_v53  ;;  %v454_v10 = vpop.f32.mrf.mxu0  ;;  %v647_v11 = vpop.f32.mrf.mxu1 }
 0x139   : > { %4937 = vpow2.f32 %v4424_v5  ;;  %v4428_v12 = vmul.f32 -1.442695, %v6529_v7  ;;  %v6538_v13 = vadd.f32 %v454_v10, %v6502_v54  ;;  %v6541_v14 = vadd.f32 %v647_v11, %v6504_v55 }
 0x13a   : > { %4939 = vpow2.f32 %v4426_v6  ;;  %v4430_v15 = vmul.f32 -1.442695, %v6534_v9  ;;  %v458_v16 = vpop.f32.mrf.mxu0  ;;  %v651_v17 = vpop.f32.mrf.mxu1  ;;  %4595 = vmatmul.mubr.msk.bf16.gmra.mxu1 %vm349_vm1, %v6531_v8  ;;  %4604 = vmatmul.mubr.msk.bf16.gmra.mxu0 %vm349_vm1, %v6429_v37 }
 0x13b   : > { %4941 = vpow2.f32 %v4428_v12  ;;  %v4429_v18 = vmul.f32 -1.442695, %v6538_v13  ;;  %v4431_v19 = vmul.f32 -1.442695, %v6541_v14  ;;  %v6551_v20 = vadd.f32 %v458_v16, %v6498_v52  ;;  %2483 = vmatprep.mubr.bf16.mxu1 %v8886_v2  ;;  %2596 = vmatprep.mubr.bf16.mxu0 %v8886_v2 }
 0x13c   : > { %4943 = vpow2.f32 %v4430_v15  ;;  %v6556_v21 = vadd.f32 %v651_v17, %v6500_v53  ;;  %v460_v22 = vpop.f32.mrf.mxu0  ;;  %v653_v23 = vpop.f32.mrf.mxu1 }
 0x13d   : > { %4945 = vpow2.f32 %v4429_v18  ;;  %v4433_v24 = vmul.f32 -1.442695, %v6551_v20  ;;  %v6560_v25 = vadd.f32 %v460_v22, %v6502_v54  ;;  %v6563_v26 = vadd.f32 %v653_v23, %v6504_v55  ;;  %v6607_v23 = vpop.trf.xlu1 }
 0x13e   : > { %4947 = vpow2.f32 %v4431_v19  ;;  %v4435_v27 = vmul.f32 -1.442695, %v6556_v21  ;;  %v462_v28 = vpop.f32.mrf.mxu0  ;;  %v655_v29 = vpop.f32.mrf.mxu1  ;;  %9111 = vst [vmem:[#allocation17_spill] sm:$0xff] %v6607_v23 }
 0x13f   : > { %4949 = vpow2.f32 %v4433_v24  ;;  %v4434_v30 = vmul.f32 -1.442695, %v6560_v25  ;;  %v4436_v31 = vmul.f32 -1.442695, %v6563_v26  ;;  %v6569_v32 = vadd.f32 %v462_v28, %v6498_v52 }
 0x140   : > { %4951 = vpow2.f32 %v4435_v27  ;;  %v6574_v34 = vadd.f32 %v655_v29, %v6500_v53  ;;  %v464_v35 = vpop.f32.mrf.mxu0  ;;  %v657_v43 = vpop.f32.mrf.mxu1 }
 0x141   : > { %4953 = vpow2.f32 %v4434_v30  ;;  %v4438_v46 = vmul.f32 -1.442695, %v6569_v32  ;;  %v6578_v47 = vadd.f32 %v464_v35, %v6502_v54  ;;  %v6581_v48 = vadd.f32 %v657_v43, %v6504_v55 }
 0x142   : > { %4955 = vpow2.f32 %v4436_v31  ;;  %v4440_v49 = vmul.f32 -1.442695, %v6574_v34  ;;  %v468_v50 = vpop.f32.mrf.mxu0  ;;  %v661_v56 = vpop.f32.mrf.mxu1  ;;  %4596 = vmatmul.mubr.msk.bf16.gmra.mxu1 %vm349_vm1, %v6571_v33  ;;  %4605 = vmatmul.mubr.msk.bf16.gmra.mxu0 %vm349_vm1, %v6438_v38 }
 0x143   : > { %4957 = vpow2.f32 %v4438_v46  ;;  %v4439_v57 = vmul.f32 -1.442695, %v6578_v47  ;;  %v4441_v60 = vmul.f32 -1.442695, %v6581_v48  ;;  %v6591_v61 = vadd.f32 %v468_v50, %v6498_v52  ;;  %2493 = vmatprep.mubr.bf16.mxu1 %v8886_v2  ;;  %2606 = vmatprep.mubr.bf16.mxu0 %v8886_v2 }
 0x144   : > { %v4934_v62 = vpop.eup %4933  ;;  %4959 = vpow2.f32 %v4440_v49  ;;  %v6596_v63 = vadd.f32 %v661_v56, %v6500_v53  ;;  %v470_v3 = vpop.f32.mrf.mxu0 }
 0x145   : > { %9106 = vst [vmem:[#allocation12_spill] sm:$0xff] %v6591_v61  ;;  %v663_v4 = vpop.f32.mrf.mxu1  ;;  %v4936_v5 = vpop.eup %4935  ;;  %v1441_v6 = vadd.f32 1.0, %v4934_v62  ;;  %4961 = vpow2.f32 %v4439_v57  ;;  %v6599_v10 = vadd.f32 %v470_v3, %v6502_v54 }
 0x146   : > { %9107 = vst [vmem:[#allocation13_spill] sm:$0xff] %v6596_v63  ;;  %v4938_v11 = vpop.eup %4937  ;;  %v1443_v12 = vadd.f32 1.0, %v4936_v5  ;;  %4963 = vpow2.f32 %v4441_v60  ;;  %v6602_v15 = vadd.f32 %v663_v4, %v6504_v55  ;;  %v472_v16 = vpop.f32.mrf.mxu0 }
 0x147   : > { %9108 = vst [vmem:[#allocation14_spill] sm:$0xff] %v6599_v10  ;;  %v665_v17 = vpop.f32.mrf.mxu1  ;;  %v4940_v18 = vpop.eup %4939  ;;  %4965 = vrcp.f32 %v1441_v6  ;;  %v1442_v19 = vadd.f32 1.0, %v4938_v11  ;;  %v6605_v22 = vadd.f32 %v472_v16, %v6498_v52 }
 0x148   : > { %9109 = vst [vmem:[#allocation15_spill] sm:$0xff] %v6602_v15  ;;  %v4942_v24 = vpop.eup %4941  ;;  %4967 = vrcp.f32 %v1443_v12  ;;  %v1444_v27 = vadd.f32 1.0, %v4940_v18  ;;  %v6610_v28 = vadd.f32 %v665_v17, %v6500_v53  ;;  %v474_v29 = vpop.f32.mrf.mxu0 }
 0x149   : > { %9110 = vst [vmem:[#allocation16_spill] sm:$0xff] %v6605_v22  ;;  %v667_v30 = vpop.f32.mrf.mxu1  ;;  %v4944_v31 = vpop.eup %4943  ;;  %4969 = vrcp.f32 %v1442_v19  ;;  %v1446_v35 = vadd.f32 1.0, %v4942_v24  ;;  %v6613_v43 = vadd.f32 %v474_v29, %v6502_v54 }
 0x14a   : > { %9112 = vst [vmem:[#allocation18_spill] sm:$0xff] %v6610_v28  ;;  %v4946_v46 = vpop.eup %4945  ;;  %4971 = vrcp.f32 %v1444_v27  ;;  %v1448_v49 = vadd.f32 1.0, %v4944_v31  ;;  %v6616_v50 = vadd.f32 %v667_v30, %v6504_v55  ;;  %v478_v56 = vpop.f32.mrf.mxu0  ;;  %4597 = vmatmul.mubr.msk.bf16.gmra.mxu1 %vm349_vm1, %v6607_v23  ;;  %4606 = vmatmul.mubr.msk.bf16.gmra.mxu0 %vm349_vm1, %v6447_v39 }
 0x14b   : > { %9113 = vst [vmem:[#allocation19_spill] sm:$0xff] %v6613_v43  ;;  %v671_v57 = vpop.f32.mrf.mxu1  ;;  %v4948_v60 = vpop.eup %4947  ;;  %4973 = vrcp.f32 %v1446_v35  ;;  %v1447_v62 = vadd.f32 1.0, %v4946_v46  ;;  %v6623_v3 = vadd.f32 %v478_v56, %v6498_v52  ;;  %2503 = vmatprep.mubr.bf16.mxu1 %v8886_v2  ;;  %2616 = vmatprep.mubr.bf16.mxu0 %v8886_v2  ;;  %v4443_v46 = vmul.f32 -1.442695, %v6591_v61 }
 0x14c   : > { %9114 = vst [vmem:[#allocation20_spill] sm:$0xff] %v6616_v50  ;;  %v4950_v4 = vpop.eup %4949  ;;  %4975 = vrcp.f32 %v1448_v49  ;;  %v1449_v5 = vadd.f32 1.0, %v4948_v60  ;;  %v6628_v6 = vadd.f32 %v671_v57, %v6500_v53  ;;  %v480_v11 = vpop.f32.mrf.mxu0  ;;  %v4449_v39 = vmul.f32 -1.442695, %v6613_v43 }
 0x14d   : > { %9115 = vst [vmem:[#allocation21_spill] sm:$0xff] %v6623_v3  ;;  %v673_v12 = vpop.f32.mrf.mxu1  ;;  %v4952_v16 = vpop.eup %4951  ;;  %4977 = vrcp.f32 %v1447_v62  ;;  %v1451_v17 = vadd.f32 1.0, %v4950_v4  ;;  %v6631_v18 = vadd.f32 %v480_v11, %v6502_v54  ;;  %v4445_v62 = vmul.f32 -1.442695, %v6596_v63 }
 0x14e   : > { %9116 = vst [vmem:[#allocation22_spill] sm:$0xff] %v6628_v6  ;;  %v4954_v19 = vpop.eup %4953  ;;  %4979 = vrcp.f32 %v1449_v5  ;;  %v1453_v24 = vadd.f32 1.0, %v4952_v16  ;;  %v6634_v27 = vadd.f32 %v673_v12, %v6504_v55  ;;  %v482_v29 = vpop.f32.mrf.mxu0 }
 0x14f   : > { %9117 = vst [vmem:[#allocation23_spill] sm:$0xff] %v6631_v18  ;;  %v675_v30 = vpop.f32.mrf.mxu1  ;;  %v4956_v31 = vpop.eup %4955  ;;  %4981 = vrcp.f32 %v1451_v17  ;;  %v1452_v35 = vadd.f32 1.0, %v4954_v19  ;;  %v6638_v49 = vadd.f32 %v482_v29, %v6498_v52  ;;  %v4444_v17 = vmul.f32 -1.442695, %v6599_v10 }
 0x150   : > { %9118 = vst [vmem:[#allocation24_spill] sm:$0xff] %v6634_v27  ;;  %v6640_v56 = vpop.trf.xlu1  ;;  %v4958_v57 = vpop.eup %4957  ;;  %4983 = vrcp.f32 %v1453_v24  ;;  %v1454_v60 = vadd.f32 1.0, %v4956_v31  ;;  %v6644_v4 = vadd.f32 %v675_v30, %v6500_v53  ;;  %v4446_v24 = vmul.f32 -1.442695, %v6602_v15 }
 0x151   : > { %9119 = vst [vmem:[#allocation25_spill] sm:$0xff] %v6638_v49  ;;  %9120 = vst [vmem:[#allocation26_spill] sm:$0xff] %v6640_v56  ;;  %v484_v5 = vpop.f32.mrf.mxu0  ;;  %v677_v11 = vpop.f32.mrf.mxu1  ;;  %4985 = vrcp.f32 %v1452_v35  ;;  %v1456_v16 = vadd.f32 1.0, %v4958_v57  ;;  %v6681_v43 = vmul.f32 -1.442695, %v6631_v18 }
 0x152   : > { %9121 = vst [vmem:[#allocation27_spill] sm:$0xff] %v6644_v4  ;;  %v4960_v12 = vpop.eup %4959  ;;  %v6648_v19 = vadd.f32 %v484_v5, %v6502_v54  ;;  %4987 = vrcp.f32 %v1454_v60  ;;  %v6652_v31 = vadd.f32 %v677_v11, %v6504_v55  ;;  %4598 = vmatmul.mubr.msk.bf16.gmra.mxu1 %vm349_vm1, %v6640_v56  ;;  %4607 = vmatmul.mubr.msk.bf16.gmra.mxu0 %vm349_vm1, %v6455_v40  ;;  %v4448_v5 = vmul.f32 -1.442695, %v6605_v22 }
 0x153   : > { %v4962_v29 = vpop.eup %4961  ;;  %v1458_v2 = vadd.f32 1.0, %v4960_v12  ;;  %v488_v30 = vpop.f32.mrf.mxu0  ;;  %4989 = vrcp.f32 %v1456_v16  ;;  %v9122_v12 = vmov 0   ;;  %v4450_v56 = vmul.f32 -1.442695, %v6610_v28 }
 0x154   : > { %v681_v45 = vpop.f32.mrf.mxu1  ;;  %v4964_v35 = vpop.eup %4963  ;;  %v1457_v57 = vadd.f32 1.0, %v4962_v29  ;;  %v6660_v60 = vadd.f32 %v488_v30, %v6498_v52  ;;  %2513 = vmatprep.mubr.bf16.mxu1 %v9122_v12  ;;  %2626 = vmatprep.mubr.bf16.mxu0 %v9122_v12  ;;  %v4451_v30 = vmul.f32 -1.442695, %v6616_v50  ;;  %v6695_v50 = vmul.f32 -1.442695, %v6644_v4 }
 0x155   : > { %v4966_v11 = vpop.eup %4965  ;;  %4991 = vrcp.f32 %v1458_v2  ;;  %v1459_v23 = vadd.f32 1.0, %v4964_v35  ;;  %v6666_v33 = vadd.f32 %v681_v45, %v6500_v53  ;;  %v490_v40 = vpop.f32.mrf.mxu0  ;;  %v4453_v2 = vmul.f32 -1.442695, %v6623_v3 }
 0x156   : > { %v683_v16 = vpop.f32.mrf.mxu1  ;;  %v4968_v29 = vpop.eup %4967  ;;  %4993 = vrcp.f32 %v1457_v57  ;;  %v6671_v8 = vadd.f32 %v490_v40, %v6502_v54  ;;  %v6675_v35 = vmul.f32 -1.442695, %v6628_v6  ;;  %v6684_v40 = vmul.f32 -1.442695, %v6634_v27 }
 0x157   : > { %v4970_v22 = vpop.eup %4969  ;;  %4995 = vrcp.f32 %v1459_v23  ;;  %v6678_v45 = vadd.f32 %v683_v16, %v6504_v55  ;;  %v492_v28 = vpop.f32.mrf.mxu0  ;;  %v6692_v16 = vmul.f32 -1.442695, %v6638_v49  ;;  %v1921_v63 = vmul.f32 %v4966_v11, %v6511_v58 }
 0x158   : > { %9123 = vst [vmem:[#allocation28_spill] sm:$0xff] %v6671_v8  ;;  %v685_v15 = vpop.f32.mrf.mxu1  ;;  %v4972_v57 = vpop.eup %4971  ;;  %4997 = vpow2.f32 %v4443_v46  ;;  %v6687_v23 = vadd.f32 %v492_v28, %v6498_v52  ;;  %v1923_v49 = vmul.f32 %v4968_v29, %v6514_v59 }
 0x159   : > { %9124 = vst [vmem:[#allocation29_spill] sm:$0xff] %v6678_v45  ;;  %v6689_v3 = vpop.trf.xlu1  ;;  %v4974_v6 = vpop.eup %4973  ;;  %4999 = vpow2.f32 %v4445_v62  ;;  %v6698_v46 = vadd.f32 %v685_v15, %v6500_v53 }
 0x15a   : > { %9125 = vst [vmem:[#allocation30_spill] sm:$0xff] %v6687_v23  ;;  %9126 = vst [vmem:[#allocation31_spill] sm:$0xff] %v6689_v3  ;;  %v494_v18 = vpop.f32.mrf.mxu0  ;;  %v687_v10 = vpop.f32.mrf.mxu1  ;;  %v1926_v28 = vmul.f32 %v4974_v6, %v6529_v7  ;;  %5001 = vpow2.f32 %v4444_v17  ;;  %4599 = vmatmul.mubr.msk.bf16.gmra.mxu1 %vm349_vm1, %v6689_v3  ;;  %4608 = vmatmul.mubr.msk.bf16.gmra.mxu0 %vm349_vm1, %v6462_v41  ;;  %v1922_v7 = vmul.f32 %v4970_v22, %v6521_v0 }
 0x15b   : > { %9127 = vst [vmem:[#allocation32_spill] sm:$0xff] %v6698_v46  ;;  %v4976_v27 = vpop.eup %4975  ;;  %v6703_v61 = vadd.f32 %v494_v18, %v6502_v54  ;;  %5003 = vpow2.f32 %v4446_v24  ;;  %v6708_v15 = vadd.f32 %v687_v10, %v6504_v55  ;;  %2523 = vmatprep.mubr.bf16.mxu1 %v9122_v12  ;;  %2636 = vmatprep.mubr.bf16.mxu0 %v9122_v12 }
 0x15c   : > { %v4978_v62 = vpop.eup %4977  ;;  %v1928_v4 = vmul.f32 %v4976_v27, %v6534_v9  ;;  %v498_v38 = vpop.f32.mrf.mxu0  ;;  %v2081_v6 = vadd.f32 %v1926_v28, %v1921_v63  ;;  %5005 = vpow2.f32 %v4448_v5  ;;  %v1924_v10 = vmul.f32 %v4972_v57, %v6524_v1 }
 0x15d   : > { %9128 = vst [vmem:[#allocation33_spill] sm:$0xff] %v6703_v61  ;;  %9129 = vst [vmem:[#allocation34_spill] sm:$0xff] %v6708_v15  ;;  %v691_v37 = vpop.f32.mrf.mxu1  ;;  %v4980_v58 = vpop.eup %4979  ;;  %v1927_v59 = vmul.f32 %v4978_v62, %v6538_v13  ;;  %5007 = vpow2.f32 %v4450_v56  ;;  %v6722_v13 = vadd.f32 %v498_v38, %v6498_v52 }
 0x15e   : > { %v4982_v9 = vpop.eup %4981  ;;  %v2155_v18 = vadd.f32 %v1928_v4, %v1923_v49  ;;  %v1929_v27 = vmul.f32 %v4980_v58, %v6541_v14  ;;  %v500_v17 = vpop.f32.mrf.mxu0  ;;  %5009 = vpow2.f32 %v4449_v39  ;;  %v6726_v1 = vadd.f32 %v691_v37, %v6500_v53 }
 0x15f   : > { %v693_v24 = vpop.f32.mrf.mxu1  ;;  %v4984_v11 = vpop.eup %4983  ;;  %v2118_v29 = vadd.f32 %v1927_v59, %v1922_v7  ;;  %v1931_v0 = vmul.f32 %v4982_v9, %v6551_v20  ;;  %9130 = vst [vmem:[#allocation35_spill] sm:$0xff] %v6722_v13  ;;  %5011 = vpow2.f32 %v4451_v30  ;;  %v4459_v39 = vmul.f32 -1.442695, %v6648_v19 }
 0x160   : > { %v4986_v63 = vpop.eup %4985  ;;  %v2192_v22 = vadd.f32 %v1929_v27, %v1924_v10  ;;  %v1933_v5 = vmul.f32 %v4984_v11, %v6556_v21  ;;  %9131 = vst [vmem:[#allocation36_spill] sm:$0xff] %v6726_v1  ;;  %v502_v14 = vpop.f32.mrf.mxu0  ;;  %5013 = vpow2.f32 %v4453_v2  ;;  %v4461_v37 = vmul.f32 -1.442695, %v6652_v31 }
 0x161   : > { %v695_v49 = vpop.f32.mrf.mxu1  ;;  %v4988_v56 = vpop.eup %4987  ;;  %v2082_v4 = vadd.f32 %v2081_v6, %v1931_v0  ;;  %v1932_v57 = vmul.f32 %v4986_v63, %v6560_v25  ;;  %5015 = vpow2.f32 %v6675_v35  ;;  %v6738_v25 = vadd.f32 %v500_v17, %v6502_v54 }
 0x162   : > { %v6730_v20 = vpop.trf.xlu1  ;;  %v4990_v38 = vpop.eup %4989  ;;  %v2156_v28 = vadd.f32 %v2155_v18, %v1933_v5  ;;  %v1934_v62 = vmul.f32 %v4988_v56, %v6563_v26  ;;  %5017 = vpow2.f32 %v6681_v43  ;;  %v6743_v26 = vadd.f32 %v693_v24, %v6504_v55  ;;  %4609 = vmatmul.mubr.msk.bf16.gmra.mxu0 %vm349_vm1, %v6469_v42 }
 0x163   : > { %9132 = vst [vmem:[#allocation37_spill] sm:$0xff] %v6730_v20  ;;  %v504_v21 = vpop.f32.mrf.mxu0  ;;  %v697_v30 = vpop.f32.mrf.mxu1  ;;  %v2119_v7 = vadd.f32 %v2118_v29, %v1932_v57  ;;  %v1936_v6 = vmul.f32 %v4990_v38, %v6569_v32  ;;  %9133 = vst [vmem:[#allocation38_spill] sm:$0xff] %v6738_v25  ;;  %5019 = vpow2.f32 %v6684_v40  ;;  %4600 = vmatmul.mubr.msk.bf16.gmra.mxu1 %vm349_vm1, %v6730_v20  ;;  %2646 = vmatprep.mubr.bf16.mxu0 %v9122_v12 }
 0x164   : > { %v4992_v58 = vpop.eup %4991  ;;  %v2193_v59 = vadd.f32 %v2192_v22, %v1934_v62  ;;  %9134 = vst [vmem:[#allocation39_spill] sm:$0xff] %v6743_v26  ;;  %5021 = vpow2.f32 %v6692_v16  ;;  %2533 = vmatprep.mubr.bf16.mxu1 %v9122_v12  ;;  %v6767_v5 = vadd.f32 %v695_v49, %v6500_v53  ;;  %v6770_v57 = vadd.f32 %v504_v21, %v6502_v54 }
 0x165   : > { %v4994_v2 = vpop.eup %4993  ;;  %v1938_v9 = vmul.f32 %v4992_v58, %v6574_v34  ;;  %v508_v35 = vpop.f32.mrf.mxu0  ;;  %v6749_v43 = vadd.f32 %v2082_v4, %v1936_v6  ;;  %5023 = vpow2.f32 %v6695_v50 }
 0x166   : > { %v701_v10 = vpop.f32.mrf.mxu1  ;;  %v4996_v32 = vpop.eup %4995  ;;  %v1937_v18 = vmul.f32 %v4994_v2, %v6578_v47  ;;  %5025 = vpow2.f32 %v4459_v39  ;;  %v6762_v47 = vadd.f32 %v502_v14, %v6498_v52  ;;  %9136 = vst [vmem:[#allocation41_spill] sm:$0xff] %v6767_v5 }
 0x167   : > { %v4998_v34 = vpop.eup %4997  ;;  %v6755_v40 = vadd.f32 %v2156_v28, %v1938_v9  ;;  %v1939_v27 = vmul.f32 %v4996_v32, %v6581_v48  ;;  %v510_v17 = vpop.f32.mrf.mxu0  ;;  %5027 = vpow2.f32 %v4461_v37  ;;  %v6775_v28 = vadd.f32 %v697_v30, %v6504_v55 }
 0x168   : > { %v703_v24 = vpop.f32.mrf.mxu1  ;;  %v5000_v11 = vpop.eup %4999  ;;  %v6759_v29 = vadd.f32 %v2119_v7, %v1937_v18  ;;  %v1461_v0 = vadd.f32 1.0, %v4998_v34  ;;  %9135 = vst [vmem:[#allocation40_spill] sm:$0xff] %v6762_v47  ;;  %v6778_v7 = vadd.f32 %v508_v35, %v6498_v52  ;;  %v6781_v2 = vadd.f32 %v701_v10, %v6500_v53 }
 0x169   : > { %v5002_v16 = vpop.eup %5001  ;;  %v6764_v63 = vadd.f32 %v2193_v59, %v1939_v27  ;;  %v1463_v22 = vadd.f32 1.0, %v5000_v11  ;;  %v512_v48 = vpop.f32.mrf.mxu0  ;;  %v6788_v35 = vadd.f32 %v510_v17, %v6502_v54  ;;  %v6794_v34 = vadd.f32 %v703_v24, %v6504_v55 }
 0x16a   : > { %v705_v50 = vpop.f32.mrf.mxu1  ;;  %v5004_v56 = vpop.eup %5003  ;;  %5029 = vrcp.f32 %v1461_v0  ;;  %v1462_v4 = vadd.f32 1.0, %v5002_v16  ;;  %9138 = vst [vmem:[#allocation43_spill] sm:$0xff] %v6781_v2  ;;  %4610 = vmatmul.mubr.msk.bf16.gmra.mxu0 %vm349_vm1, %v6476_v44  ;;  %v6800_v17 = vadd.f32 %v512_v48, %v6498_v52 }
 0x16b   : > { %v6772_v39 = vpop.trf.xlu1  ;;  %v5006_v14 = vpop.eup %5005  ;;  %5031 = vrcp.f32 %v1463_v22  ;;  %v1464_v38 = vadd.f32 1.0, %v5004_v56  ;;  %9139 = vst [vmem:[#allocation44_spill] sm:$0xff] %v6788_v35  ;;  %2656 = vmatprep.mubr.bf16.mxu0 %v9122_v12  ;;  %9140 = vst [vmem:[#allocation45_spill] sm:$0xff] %v6794_v34  ;;  %v6797_v22 = vmul.f32 -1.442695, %v6660_v60  ;;  %v6806_v24 = vadd.f32 %v705_v50, %v6500_v53 }
 0x16c   : > { %9137 = vst [vmem:[#allocation42_spill] sm:$0xff] %v6772_v39  ;;  %v514_v62 = vpop.f32.mrf.mxu0  ;;  %v707_v37 = vpop.f32.mrf.mxu1  ;;  %5033 = vrcp.f32 %v1462_v4  ;;  %v1466_v58 = vadd.f32 1.0, %v5006_v14  ;;  %4601 = vmatmul.mubr.msk.bf16.gmra.mxu1 %vm349_vm1, %v6772_v39  ;;  %9141 = vst [vmem:[#allocation46_spill] sm:$0xff] %v6800_v17  ;;  %v6803_v4 = vmul.f32 -1.442695, %v6666_v33 }
 0x16d   : > { %v5008_v49 = vpop.eup %5007  ;;  %5035 = vrcp.f32 %v1464_v38  ;;  %4867 = vmatprep.mubr.msk.bf16.mxu1 %vm349_vm1, %v6418_v36  ;;  %9142 = vst [vmem:[#allocation47_spill] sm:$0xff] %v6806_v24  ;;  %v6812_v48 = vadd.f32 %v514_v62, %v6502_v54  ;;  %v6818_v50 = vadd.f32 %v707_v37, %v6504_v55 }
 0x16e   : > { %v5010_v6 = vpop.eup %5009  ;;  %v1468_v21 = vadd.f32 1.0, %v5008_v49  ;;  %v518_v59 = vpop.f32.mrf.mxu0  ;;  %5037 = vrcp.f32 %v1466_v58 }
 0x16f   : > { %v711_v9 = vpop.f32.mrf.mxu1  ;;  %v5012_v30 = vpop.eup %5011  ;;  %v1467_v32 = vadd.f32 1.0, %v5010_v6  ;;  %v6809_v6 = vmul.f32 -1.442695, %v6671_v8  ;;  %9143 = vst [vmem:[#allocation48_spill] sm:$0xff] %v6812_v48  ;;  %9144 = vst [vmem:[#allocation49_spill] sm:$0xff] %v6818_v50  ;;  %v6824_v62 = vadd.f32 %v518_v59, %v6498_v52 }
 0x170   : > { %v5014_v10 = vpop.eup %5013  ;;  %5039 = vrcp.f32 %v1468_v21  ;;  %v1469_v18 = vadd.f32 1.0, %v5012_v30  ;;  %v520_v27 = vpop.f32.mrf.mxu0  ;;  %v6830_v37 = vadd.f32 %v711_v9, %v6500_v53  ;;  %v9149_v9 = vld [vmem:[#allocation3_spill] sm:$0xff] }
 0x171   : > { %v713_v11 = vpop.f32.mrf.mxu1  ;;  %v5016_v0 = vpop.eup %5015  ;;  %5041 = vrcp.f32 %v1467_v32  ;;  %v1471_v16 = vadd.f32 1.0, %v5014_v10  ;;  %v6815_v32 = vmul.f32 -1.442695, %v6678_v45  ;;  %9145 = vst [vmem:[#allocation50_spill] sm:$0xff] %v6824_v62  ;;  %v6850_v45 = vmul.f32 -1.442695, %v6708_v15 }
 0x172   : > { %v5018_v36 = vpop.eup %5017  ;;  %5043 = vrcp.f32 %v1469_v18  ;;  %v1473_v56 = vadd.f32 1.0, %v5016_v0  ;;  %v522_v14 = vpop.f32.mrf.mxu0  ;;  %9146 = vst [vmem:[#allocation51_spill] sm:$0xff] %v6830_v37  ;;  %4611 = vmatmul.mubr.msk.bf16.gmra.mxu0 %vm349_vm1, %v6496_v51  ;;  %v9153_v15 = vld [vmem:[#allocation13_spill] sm:$0xff] }
 0x173   : > { %v715_v38 = vpop.f32.mrf.mxu1  ;;  %v5020_v49 = vpop.eup %5019  ;;  %5045 = vrcp.f32 %v1471_v16  ;;  %v1472_v58 = vadd.f32 1.0, %v5018_v36  ;;  %v6821_v36 = vmul.f32 -1.442695, %v6687_v23  ;;  %2666 = vmatprep.mubr.bf16.mxu0 %v9122_v12 }
 0x174   : > { %v5022_v21 = vpop.eup %5021  ;;  %5047 = vrcp.f32 %v1473_v56  ;;  %v1474_v30 = vadd.f32 1.0, %v5020_v49  ;;  %v524_v10 = vpop.f32.mrf.mxu0  ;;  %v6827_v49 = vmul.f32 -1.442695, %v6698_v46 }
 0x175   : > { %v717_v18 = vpop.f32.mrf.mxu1  ;;  %v5024_v0 = vpop.eup %5023  ;;  %5049 = vrcp.f32 %v1472_v58  ;;  %v1476_v16 = vadd.f32 1.0, %v5022_v21  ;;  %v9147_v58 = vld [vmem:[#allocation2_spill] sm:$0xff] }
 0x176   : > { %v5026_v39 = vpop.eup %5025  ;;  %5051 = vrcp.f32 %v1474_v30  ;;  %v1478_v56 = vadd.f32 1.0, %v5024_v0  ;;  %v6832_v20 = vpop.f32.mrf.mxu0  ;;  %4868 = vmatmul.mubr.msk.bf16.vlgmr.msra.gmra.mxu1 %vm349_vm1, %v9147_v58  ;;  %v6841_v30 = vmul.f32 -1.442695, %v6703_v61  ;;  %v6844_v0 = vadd.f32 %v520_v27, %v6502_v54  ;;  %v9151_v61 = vld [vmem:[#allocation12_spill] sm:$0xff] }
 0x177   : > { %v6834_v3 = vpop.f32.mrf.mxu1  ;;  %v5028_v59 = vpop.eup %5027  ;;  %5053 = vrcp.f32 %v1476_v16  ;;  %v1477_v21 = vadd.f32 1.0, %v5026_v39  ;;  %4871 = vmatprep.mubr.msk.bf16.mxu1 %vm349_vm1, %v9149_v9  ;;  %v6853_v16 = vadd.f32 %v713_v11, %v6504_v55  ;;  %v6861_v9 = vmul.f32 -1.442695, %v6722_v13  ;;  %v9155_v13 = vld [vmem:[#allocation14_spill] sm:$0xff] }
 0x178   : > { %9148 = vst [vmem:[#allocation2_spill] sm:$0xff] %v6844_v0  ;;  %v5030_v46 = vpop.eup %5029  ;;  %5055 = vrcp.f32 %v1478_v56  ;;  %v1479_v23 = vadd.f32 1.0, %v5028_v59  ;;  %v6855_v39 = vpop.f32.mrf.mxu0  ;;  %v6864_v56 = vadd.f32 %v522_v14, %v6498_v52  ;;  %v6868_v11 = vmul.f32 -1.442695, %v6726_v1  ;;  %v9156_v1 = vld [vmem:[#allocation15_spill] sm:$0xff] }
 0x179   : > { %9150 = vst [vmem:[#allocation3_spill] sm:$0xff] %v6853_v16  ;;  %v6857_v58 = vpop.f32.mrf.mxu1  ;;  %v5032_v27 = vpop.eup %5031  ;;  %v1941_v0 = vmul.f32 %v5030_v46, %v9151_v61  ;;  %5057 = vrcp.f32 %v1477_v21  ;;  %v6871_v16 = vadd.f32 %v715_v38, %v6500_v53 }
 0x17a   : > { %9152 = vst [vmem:[#allocation12_spill] sm:$0xff] %v6864_v56  ;;  %v5034_v59 = vpop.eup %5033  ;;  %v1943_v8 = vmul.f32 %v5032_v27, %v9153_v15  ;;  %5059 = vrcp.f32 %v1479_v23  ;;  %v6873_v37 = vpop.f32.mrf.mxu0  ;;  %v6881_v15 = vmul.f32 -1.442695, %v6738_v25 }
 0x17b   : > { %9154 = vst [vmem:[#allocation13_spill] sm:$0xff] %v6871_v16  ;;  %v6875_v61 = vpop.f32.mrf.mxu1  ;;  %v5036_v46 = vpop.eup %5035  ;;  %v2084_v21 = vadd.f32 %v6749_v43, %v1941_v0  ;;  %v1942_v14 = vmul.f32 %v5034_v59, %v9155_v13  ;;  %5061 = vpow2.f32 %v6797_v22  ;;  %v6887_v16 = vmul.f32 -1.442695, %v6743_v26  ;;  %v9157_v0 = vld [vmem:[#allocation16_spill] sm:$0xff] }
 0x17c   : > { %v5038_v23 = vpop.eup %5037  ;;  %v2158_v27 = vadd.f32 %v6755_v40, %v1943_v8  ;;  %v1944_v38 = vmul.f32 %v5036_v46, %v9156_v1  ;;  %5063 = vpow2.f32 %v6803_v4  ;;  %v6889_v56 = vpop.f32.mrf.mxu0  ;;  %v6897_v8 = vadd.f32 %v524_v10, %v6502_v54  ;;  %v9158_v4 = vld [vmem:[#allocation18_spill] sm:$0xff] }
 0x17d   : > { %v6891_v43 = vpop.f32.mrf.mxu1  ;;  %v5040_v13 = vpop.eup %5039  ;;  %v2121_v22 = vadd.f32 %v6759_v29, %v1942_v14  ;;  %v1946_v59 = vmul.f32 %v5038_v23, %v9157_v0  ;;  %5065 = vpow2.f32 %v6809_v6  ;;  %v6903_v26 = vadd.f32 %v717_v18, %v6504_v55  ;;  %v9160_v14 = vld [vmem:[#allocation10_spill] sm:$0xff]  ;;  %v9161_v6 = vld [vmem:[#allocation4_spill] sm:$0xff]  ;;  %v9163_v18 = vld [vmem:[#allocation5_spill] sm:$0xff] }
 0x17e   : > { %v5042_v1 = vpop.eup %5041  ;;  %v2195_v40 = vadd.f32 %v6764_v63, %v1944_v38  ;;  %v1948_v46 = vmul.f32 %v5040_v13, %v9158_v4  ;;  %5067 = vpow2.f32 %v6815_v32  ;;  %v6905_v25 = vpop.f32.mrf.mxu0  ;;  %4612 = vmatmul.mubr.msk.bf16.gmra.mxu0 %vm349_vm1, %v9160_v14  ;;  %4872 = vmatmul.mubr.msk.bf16.gmra.mxu1 %vm349_vm1, %v9161_v6  ;;  %v9162_v63 = vld [vmem:[#allocation19_spill] sm:$0xff]  ;;  %v4478_v32 = vmul.f32 -1.442695, %v6762_v47  ;;  %v9164_v4 = vld [vmem:[#allocation20_spill] sm:$0xff] }
 0x17f   : > { %9159 = vst [vmem:[#allocation14_spill] sm:$0xff] %v6903_v26  ;;  %v6907_v29 = vpop.f32.mrf.mxu1  ;;  %v5044_v10 = vpop.eup %5043  ;;  %v2085_v23 = vadd.f32 %v2084_v21, %v1946_v59  ;;  %v1947_v38 = vmul.f32 %v5042_v1, %v9162_v63  ;;  %5069 = vpow2.f32 %v6821_v36  ;;  %4875 = vmatprep.mubr.msk.bf16.mxu1 %vm349_vm1, %v9163_v18  ;;  %2676 = vmatprep.mubr.bf16.mxu0 %v9122_v12  ;;  %v4480_v6 = vmul.f32 -1.442695, %v6767_v5  ;;  %v9165_v63 = vld [vmem:[#allocation21_spill] sm:$0xff] }
 0x180   : > { %v5046_v13 = vpop.eup %5045  ;;  %v2159_v0 = vadd.f32 %v2158_v27, %v1948_v46  ;;  %v1949_v26 = vmul.f32 %v5044_v10, %v9164_v4  ;;  %5071 = vpow2.f32 %v6827_v49  ;;  %v6922_v21 = vpop.f32.mrf.mxu0  ;;  %v6930_v18 = vadd.f32 %v6832_v20, %v6498_v52  ;;  %v9167_v10 = vld [vmem:[#allocation22_spill] sm:$0xff] }
 0x181   : > { %v6924_v59 = vpop.f32.mrf.mxu1  ;;  %v5048_v36 = vpop.eup %5047  ;;  %v2122_v1 = vadd.f32 %v2121_v22, %v1947_v38  ;;  %v1951_v47 = vmul.f32 %v5046_v13, %v9165_v63  ;;  %5073 = vpow2.f32 %v6841_v30  ;;  %v6936_v4 = vadd.f32 %v6834_v3, %v6500_v53  ;;  %v9169_v13 = vld [vmem:[#allocation23_spill] sm:$0xff] }
 0x182   : > { %9166 = vst [vmem:[#allocation15_spill] sm:$0xff] %v6930_v18  ;;  %v5050_v27 = vpop.eup %5049  ;;  %v2196_v46 = vadd.f32 %v2195_v40, %v1949_v26  ;;  %v1953_v49 = vmul.f32 %v5048_v36, %v9167_v10  ;;  %5075 = vpow2.f32 %v6850_v45  ;;  %v6938_v5 = vpop.f32.mrf.mxu0  ;;  %v4479_v20 = vmul.f32 -1.442695, %v6770_v57  ;;  %v9170_v36 = vld [vmem:[#allocation24_spill] sm:$0xff] }
 0x183   : > { %9168 = vst [vmem:[#allocation16_spill] sm:$0xff] %v6936_v4  ;;  %v6940_v22 = vpop.f32.mrf.mxu1  ;;  %v5052_v38 = vpop.eup %5051  ;;  %v2086_v30 = vadd.f32 %v2085_v23, %v1951_v47  ;;  %v1952_v63 = vmul.f32 %v5050_v27, %v9169_v13  ;;  %5077 = vpow2.f32 %v6861_v9  ;;  %v4481_v3 = vmul.f32 -1.442695, %v6775_v28  ;;  %v9171_v23 = vld [vmem:[#allocation25_spill] sm:$0xff] }
 0x184   : > { %v5054_v26 = vpop.eup %5053  ;;  %v2160_v40 = vadd.f32 %v2159_v0, %v1953_v49  ;;  %v1954_v45 = vmul.f32 %v5052_v38, %v9170_v36  ;;  %5079 = vpow2.f32 %v6868_v11  ;;  %v6948_v10 = vpop.f32.mrf.mxu0  ;;  %v6956_v9 = vadd.f32 %v6855_v39, %v6502_v54  ;;  %v9172_v38 = vld [vmem:[#allocation27_spill] sm:$0xff] }
 0x185   : > { %v6950_v4 = vpop.f32.mrf.mxu1  ;;  %v5056_v18 = vpop.eup %5055  ;;  %v2123_v47 = vadd.f32 %v2122_v1, %v1952_v63  ;;  %v1956_v27 = vmul.f32 %v5054_v26, %v9171_v23  ;;  %5081 = vpow2.f32 %v6881_v15  ;;  %v6962_v13 = vadd.f32 %v6857_v58, %v6504_v55  ;;  %v9174_v63 = vld [vmem:[#allocation11_spill] sm:$0xff] }
 0x186   : > { %v5058_v0 = vpop.eup %5057  ;;  %v2197_v49 = vadd.f32 %v2196_v46, %v1954_v45  ;;  %v1958_v11 = vmul.f32 %v5056_v18, %v9172_v38  ;;  %5083 = vpow2.f32 %v6887_v16  ;;  %v6964_v36 = vpop.f32.mrf.mxu0  ;;  %4613 = vmatmul.mubr.msk.bf16.gmra.mxu0 %vm349_vm1, %v9174_v63  ;;  %4876 = vmatmul.mubr.msk.bf16.gmra.mxu1 %vm349_vm1, %v6462_v41 }
 0x187   : > { %9173 = vst [vmem:[#allocation18_spill] sm:$0xff] %v6962_v13  ;;  %v6966_v1 = vpop.f32.mrf.mxu1  ;;  %v5060_v39 = vpop.eup %5059  ;;  %v6972_v15 = vadd.f32 %v2086_v30, %v1956_v27  ;;  %v1957_v18 = vmul.f32 %v5058_v0, %v6648_v19  ;;  %5085 = vpow2.f32 %v4478_v32  ;;  %4879 = vmatprep.mubr.msk.bf16.mxu1 %vm349_vm1, %v6469_v42  ;;  %2686 = vmatprep.mubr.bf16.mxu0 %v9122_v12 }
 0x188   : > { %v5062_v16 = vpop.eup %5061  ;;  %v6978_v58 = vadd.f32 %v2160_v40, %v1958_v11  ;;  %v1959_v46 = vmul.f32 %v5060_v39, %v6652_v31  ;;  %5087 = vpow2.f32 %v4480_v6  ;;  %v6981_v26 = vpop.f32.mrf.mxu0  ;;  %v6989_v42 = vadd.f32 %v6873_v37, %v6498_v52 }
 0x189   : > { %v6983_v41 = vpop.f32.mrf.mxu1  ;;  %v5064_v30 = vpop.eup %5063  ;;  %v6985_v45 = vadd.f32 %v2123_v47, %v1957_v18  ;;  %v1481_v19 = vadd.f32 1.0, %v5062_v16  ;;  %5089 = vpow2.f32 %v4479_v20  ;;  %v6995_v31 = vadd.f32 %v6875_v61, %v6500_v53 }
 0x18a   : > { %9175 = vst [vmem:[#allocation10_spill] sm:$0xff] %v6989_v42  ;;  %v5066_v32 = vpop.eup %5065  ;;  %v6991_v23 = vadd.f32 %v2197_v49, %v1959_v46  ;;  %v1483_v40 = vadd.f32 1.0, %v5064_v30  ;;  %5091 = vpow2.f32 %v4481_v3  ;;  %v6997_v6 = vpop.f32.mrf.mxu0  ;;  %v7003_v37 = vadd.f32 %v6889_v56, %v6502_v54 }
 0x18b   : > { %9176 = vst [vmem:[#allocation4_spill] sm:$0xff] %v6995_v31  ;;  %v6999_v27 = vpop.f32.mrf.mxu1  ;;  %v5068_v47 = vpop.eup %5067  ;;  %5093 = vrcp.f32 %v1481_v19  ;;  %v1482_v20 = vadd.f32 1.0, %v5066_v32  ;;  %v7007_v3 = vadd.f32 %v6891_v43, %v6504_v55  ;;  %v7015_v18 = vadd.f32 %v6905_v25, %v6498_v52  ;;  %v9181_v19 = vld [vmem:[#allocation17_spill] sm:$0xff] }
 0x18c   : > { %9177 = vst [vmem:[#allocation19_spill] sm:$0xff] %v7003_v37  ;;  %v5070_v0 = vpop.eup %5069  ;;  %5095 = vrcp.f32 %v1483_v40  ;;  %v1484_v49 = vadd.f32 1.0, %v5068_v47  ;;  %v7009_v61 = vpop.f32.mrf.mxu0  ;;  %v7019_v46 = vadd.f32 %v6907_v29, %v6500_v53  ;;  %v7031_v40 = vadd.f32 %v6922_v21, %v6502_v54 }
 0x18d   : > { %9178 = vst [vmem:[#allocation5_spill] sm:$0xff] %v7007_v3  ;;  %v7011_v38 = vpop.f32.mrf.mxu1  ;;  %v5072_v11 = vpop.eup %5071  ;;  %5097 = vrcp.f32 %v1482_v20  ;;  %v1486_v39 = vadd.f32 1.0, %v5070_v0  ;;  %9179 = vst [vmem:[#allocation20_spill] sm:$0xff] %v7015_v18  ;;  %v7038_v20 = vadd.f32 %v6924_v59, %v6504_v55  ;;  %v7052_v59 = vmul.f32 -1.442695, %v6781_v2 }
 0x18e   : > { %v5074_v56 = vpop.eup %5073  ;;  %5099 = vrcp.f32 %v1484_v49  ;;  %v1488_v16 = vadd.f32 1.0, %v5072_v11  ;;  %9180 = vst [vmem:[#allocation21_spill] sm:$0xff] %v7019_v46  ;;  %v7021_v43 = vpop.f32.mrf.mxu0  ;;  %4614 = vmatmul.mubr.msk.bf16.gmra.mxu0 %vm349_vm1, %v9181_v19  ;;  %4880 = vmatmul.mubr.msk.bf16.gmra.mxu1 %vm349_vm1, %v6476_v44  ;;  %9182 = vst [vmem:[#allocation22_spill] sm:$0xff] %v7031_v40  ;;  %v7045_v11 = vmul.f32 -1.442695, %v6778_v7 }
 0x18f   : > { %v7023_v30 = vpop.f32.mrf.mxu1  ;;  %v5076_v32 = vpop.eup %5075  ;;  %5101 = vrcp.f32 %v1486_v39  ;;  %v1487_v25 = vadd.f32 1.0, %v5074_v56  ;;  %4883 = vmatprep.mubr.msk.bf16.mxu1 %vm349_vm1, %v6496_v51  ;;  %2696 = vmatprep.mubr.bf16.mxu0 %v9122_v12  ;;  %9183 = vst [vmem:[#allocation23_spill] sm:$0xff] %v7038_v20  ;;  %v7049_v51 = vadd.f32 %v6938_v5, %v6498_v52  ;;  %v7063_v5 = vmul.f32 -1.442695, %v6788_v35 }
 0x190   : > { %v5078_v29 = vpop.eup %5077  ;;  %5103 = vrcp.f32 %v1488_v16  ;;  %v1489_v47 = vadd.f32 1.0, %v5076_v32  ;;  %v7040_v44 = vpop.f32.mrf.mxu0  ;;  %v7056_v16 = vadd.f32 %v6940_v22, %v6500_v53  ;;  %v7070_v22 = vmul.f32 -1.442695, %v6794_v34 }
 0x191   : > { %v7042_v0 = vpop.f32.mrf.mxu1  ;;  %v5080_v49 = vpop.eup %5079  ;;  %5105 = vrcp.f32 %v1487_v25  ;;  %v1491_v21 = vadd.f32 1.0, %v5078_v29  ;;  %9184 = vst [vmem:[#allocation24_spill] sm:$0xff] %v7049_v51 }
 0x192   : > { %v5082_v39 = vpop.eup %5081  ;;  %5107 = vrcp.f32 %v1489_v47  ;;  %v1493_v56 = vadd.f32 1.0, %v5080_v49  ;;  %9185 = vst [vmem:[#allocation25_spill] sm:$0xff] %v7056_v16  ;;  %v7058_v32 = vpop.f32.mrf.mxu0  ;;  %v7067_v47 = vadd.f32 %v6948_v10, %v6502_v54  ;;  %v7074_v16 = vadd.f32 %v6950_v4, %v6504_v55 }
 0x193   : > { %v7060_v25 = vpop.f32.mrf.mxu1  ;;  %v5084_v29 = vpop.eup %5083  ;;  %5109 = vrcp.f32 %v1491_v21  ;;  %v1492_v20 = vadd.f32 1.0, %v5082_v39  ;;  %v7081_v10 = vmul.f32 -1.442695, %v6800_v17  ;;  %v7088_v4 = vmul.f32 -1.442695, %v6806_v24  ;;  %v9198_v17 = vld [vmem:[#allocation29_spill] sm:$0xff] }
 0x194   : > { %9186 = vst [vmem:[#allocation27_spill] sm:$0xff] %v7067_v47  ;;  %v5086_v49 = vpop.eup %5085  ;;  %5111 = vrcp.f32 %v1493_v56  ;;  %v1494_v51 = vadd.f32 1.0, %v5084_v29  ;;  %9187 = vst [vmem:[#allocation11_spill] sm:$0xff] %v7074_v16  ;;  %v7076_v40 = vpop.f32.mrf.mxu0  ;;  %v7085_v56 = vadd.f32 %v6964_v36, %v6498_v52  ;;  %v7092_v16 = vadd.f32 %v6966_v1, %v6500_v53 }
 0x195   : > { %v7078_v21 = vpop.f32.mrf.mxu1  ;;  %v5088_v39 = vpop.eup %5087  ;;  %5113 = vrcp.f32 %v1492_v20  ;;  %v1496_v35 = vadd.f32 1.0, %v5086_v49  ;;  %v9190_v49 = vld [vmem:[#allocation26_spill] sm:$0xff]  ;;  %v7107_v1 = vadd.f32 %v6981_v26, %v6502_v54  ;;  %v7137_v24 = vadd.f32 %v6999_v27, %v6500_v53 }
 0x196   : > { %9188 = vst [vmem:[#allocation17_spill] sm:$0xff] %v7085_v56  ;;  %v5090_v29 = vpop.eup %5089  ;;  %5115 = vrcp.f32 %v1494_v51  ;;  %v1498_v47 = vadd.f32 1.0, %v5088_v39  ;;  %9189 = vst [vmem:[#allocation52_spill] sm:$0xff] %v7092_v16  ;;  %v7094_v34 = vpop.f32.mrf.mxu0  ;;  %4615 = vmatmul.mubr.msk.bf16.gmra.mxu0 %vm349_vm1, %v9190_v49  ;;  %4884 = vmatmul.mubr.msk.bf16.gmra.mxu1 %vm349_vm1, %v9160_v14  ;;  %v7103_v39 = vmul.f32 -1.442695, %v6812_v48 }
 0x197   : > { %v7096_v20 = vpop.f32.mrf.mxu1  ;;  %v5092_v36 = vpop.eup %5091  ;;  %5117 = vrcp.f32 %v1496_v35  ;;  %v1497_v51 = vadd.f32 1.0, %v5090_v29  ;;  %9191 = vst [vmem:[#allocation26_spill] sm:$0xff] %v7107_v1  ;;  %4887 = vmatprep.mubr.msk.bf16.mxu1 %vm349_vm1, %v9174_v63  ;;  %2706 = vmatprep.mubr.bf16.mxu0 %v9122_v12  ;;  %v7113_v14 = vmul.f32 -1.442695, %v6818_v50  ;;  %v7117_v35 = vadd.f32 %v6983_v41, %v6504_v55  ;;  %v9194_v41 = vld [vmem:[#allocation51_spill] sm:$0xff]  ;;  %9195 = vst [vmem:[#allocation55_spill] sm:$0xff] %v7137_v24 }
 0x198   : > { %v5094_v16 = vpop.eup %5093  ;;  %5119 = vrcp.f32 %v1498_v47  ;;  %v1499_v56 = vadd.f32 1.0, %v5092_v36  ;;  %v7119_v29 = vpop.f32.mrf.mxu0  ;;  %v7125_v63 = vmul.f32 -1.442695, %v6824_v62  ;;  %v7129_v47 = vadd.f32 %v6997_v6, %v6498_v52  ;;  %v9196_v6 = vld [vmem:[#allocation28_spill] sm:$0xff]  ;;  %v9199_v24 = vld [vmem:[#allocation3_spill] sm:$0xff] }
 0x199   : > { %9192 = vst [vmem:[#allocation53_spill] sm:$0xff] %v7117_v35  ;;  %v7121_v48 = vpop.f32.mrf.mxu1  ;;  %v5096_v26 = vpop.eup %5095  ;;  %v1961_v1 = vmul.f32 %v5094_v16, %v6660_v60  ;;  %5121 = vrcp.f32 %v1497_v51  ;;  %v7133_v35 = vmul.f32 -1.442695, %v9194_v41  ;;  %v7153_v46 = vmul.f32 -1.442695, %v9199_v24 }
 0x19a   : > { %9193 = vst [vmem:[#allocation54_spill] sm:$0xff] %v7129_v47  ;;  %v5098_v36 = vpop.eup %5097  ;;  %v1963_v50 = vmul.f32 %v5096_v26, %v6666_v33  ;;  %5123 = vrcp.f32 %v1499_v56  ;;  %v7139_v60 = vpop.f32.mrf.mxu0  ;;  %v9197_v33 = vld [vmem:[#allocation2_spill] sm:$0xff]  ;;  %v7171_v24 = vadd.f32 %v7011_v38, %v6504_v55 }
 0x19b   : > { %v7141_v16 = vpop.f32.mrf.mxu1  ;;  %v5100_v51 = vpop.eup %5099  ;;  %v2088_v62 = vadd.f32 %v6972_v15, %v1961_v1  ;;  %v1962_v47 = vmul.f32 %v5098_v36, %v9196_v6  ;;  %5125 = vpow2.f32 %v7045_v11  ;;  %v7147_v56 = vmul.f32 -1.442695, %v9197_v33  ;;  %v9200_v36 = vld [vmem:[#allocation30_spill] sm:$0xff] }
 0x19c   : > { %v5102_v26 = vpop.eup %5101  ;;  %v2162_v41 = vadd.f32 %v6978_v58, %v1963_v50  ;;  %v1964_v27 = vmul.f32 %v5100_v51, %v9198_v17  ;;  %5127 = vpow2.f32 %v7052_v59  ;;  %v7155_v2 = vpop.f32.mrf.mxu0  ;;  %v7164_v50 = vadd.f32 %v7009_v61, %v6502_v54  ;;  %v9202_v59 = vld [vmem:[#allocation32_spill] sm:$0xff]  ;;  %9203 = vst [vmem:[#allocation29_spill] sm:$0xff] %v7171_v24 }
 0x19d   : > { %v7157_v15 = vpop.f32.mrf.mxu1  ;;  %v5104_v1 = vpop.eup %5103  ;;  %v2125_v11 = vadd.f32 %v6985_v45, %v1962_v47  ;;  %v1966_v6 = vmul.f32 %v5102_v26, %v9200_v36  ;;  %5129 = vpow2.f32 %v7063_v5  ;;  %v9204_v5 = vld [vmem:[#allocation31_spill] sm:$0xff]  ;;  %v9205_v26 = vld [vmem:[#allocation33_spill] sm:$0xff] }
 0x19e   : > { %9201 = vst [vmem:[#allocation28_spill] sm:$0xff] %v7164_v50  ;;  %v5106_v17 = vpop.eup %5105  ;;  %v2199_v58 = vadd.f32 %v6991_v23, %v1964_v27  ;;  %v1968_v51 = vmul.f32 %v5104_v1, %v9202_v59  ;;  %5131 = vpow2.f32 %v7070_v22  ;;  %v7173_v45 = vpop.f32.mrf.mxu0  ;;  %4616 = vmatmul.mubr.msk.bf16.gmra.mxu0 %vm349_vm1, %v9204_v5  ;;  %4888 = vmatmul.mubr.msk.bf16.gmra.mxu1 %vm349_vm1, %v9181_v19  ;;  %v9206_v22 = vld [vmem:[#allocation12_spill] sm:$0xff]  ;;  %v9207_v59 = vld [vmem:[#allocation34_spill] sm:$0xff]  ;;  %v9208_v19 = vld [vmem:[#allocation13_spill] sm:$0xff] }
 0x19f   : > { %v7175_v47 = vpop.f32.mrf.mxu1  ;;  %v5108_v61 = vpop.eup %5107  ;;  %v2089_v23 = vadd.f32 %v2088_v62, %v1966_v6  ;;  %v1967_v27 = vmul.f32 %v5106_v17, %v9205_v26  ;;  %5133 = vpow2.f32 %v7081_v10  ;;  %v4498_v1 = vmul.f32 -1.442695, %v9206_v22  ;;  %4891 = vmatprep.mubr.msk.bf16.mxu1 %vm349_vm1, %v9190_v49  ;;  %2716 = vmatprep.mubr.bf16.mxu0 %v9122_v12  ;;  %v9209_v26 = vld [vmem:[#allocation35_spill] sm:$0xff] }
 0x1a0   : > { %v5110_v38 = vpop.eup %5109  ;;  %v2163_v36 = vadd.f32 %v2162_v41, %v1968_v51  ;;  %v1969_v24 = vmul.f32 %v5108_v61, %v9207_v59  ;;  %5135 = vpow2.f32 %v7088_v4  ;;  %v4500_v50 = vmul.f32 -1.442695, %v9208_v19  ;;  %v7190_v62 = vpop.f32.mrf.mxu0  ;;  %v9211_v61 = vld [vmem:[#allocation36_spill] sm:$0xff] }
 0x1a1   : > { %v7192_v6 = vpop.f32.mrf.mxu1  ;;  %v5112_v10 = vpop.eup %5111  ;;  %v2126_v17 = vadd.f32 %v2125_v11, %v1967_v27  ;;  %v1971_v22 = vmul.f32 %v5110_v38, %v9209_v26  ;;  %5137 = vpow2.f32 %v7103_v39  ;;  %v7198_v49 = vadd.f32 %v7021_v43, %v6498_v52  ;;  %v9213_v38 = vld [vmem:[#allocation38_spill] sm:$0xff] }
 0x1a2   : > { %v5114_v41 = vpop.eup %5113  ;;  %v2200_v51 = vadd.f32 %v2199_v58, %v1969_v24  ;;  %v1973_v4 = vmul.f32 %v5112_v10, %v9211_v61  ;;  %5139 = vpow2.f32 %v7113_v14  ;;  %v7204_v59 = vadd.f32 %v7023_v30, %v6500_v53  ;;  %v7206_v19 = vpop.f32.mrf.mxu0  ;;  %v9214_v10 = vld [vmem:[#allocation39_spill] sm:$0xff]  ;;  %v9215_v30 = vld [vmem:[#allocation14_spill] sm:$0xff] }
 0x1a3   : > { %9210 = vst [vmem:[#allocation30_spill] sm:$0xff] %v7198_v49  ;;  %v7208_v11 = vpop.f32.mrf.mxu1  ;;  %v5116_v27 = vpop.eup %5115  ;;  %v2090_v39 = vadd.f32 %v2089_v23, %v1971_v22  ;;  %v1972_v26 = vmul.f32 %v5114_v41, %v9213_v38  ;;  %5141 = vpow2.f32 %v7125_v63  ;;  %v4499_v24 = vmul.f32 -1.442695, %v6897_v8  ;;  %v9216_v22 = vld [vmem:[#allocation40_spill] sm:$0xff] }
 0x1a4   : > { %9212 = vst [vmem:[#allocation32_spill] sm:$0xff] %v7204_v59  ;;  %v5118_v43 = vpop.eup %5117  ;;  %v2164_v58 = vadd.f32 %v2163_v36, %v1973_v4  ;;  %v1974_v14 = vmul.f32 %v5116_v27, %v9214_v10  ;;  %5143 = vpow2.f32 %v7133_v35  ;;  %v4501_v61 = vmul.f32 -1.442695, %v9215_v30  ;;  %v7216_v59 = vpop.f32.mrf.mxu0  ;;  %v9218_v27 = vld [vmem:[#allocation41_spill] sm:$0xff] }
 0x1a5   : > { %v7218_v49 = vpop.f32.mrf.mxu1  ;;  %v5120_v33 = vpop.eup %5119  ;;  %v2127_v23 = vadd.f32 %v2126_v17, %v1972_v26  ;;  %v1976_v41 = vmul.f32 %v5118_v43, %v9216_v22  ;;  %5145 = vpow2.f32 %v7147_v56  ;;  %v7224_v63 = vadd.f32 %v7040_v44, %v6502_v54  ;;  %v9220_v26 = vld [vmem:[#allocation37_spill] sm:$0xff] }
 0x1a6   : > { %v5122_v36 = vpop.eup %5121  ;;  %v2201_v4 = vadd.f32 %v2200_v51, %v1974_v14  ;;  %v1978_v35 = vmul.f32 %v5120_v33, %v9218_v27  ;;  %5147 = vpow2.f32 %v7153_v46  ;;  %v7230_v38 = vadd.f32 %v7042_v0, %v6504_v55  ;;  %v7232_v10 = vpop.f32.mrf.mxu0  ;;  %4617 = vmatmul.mubr.msk.bf16.gmra.mxu0 %vm349_vm1, %v9220_v26  ;;  %4892 = vmatmul.mubr.msk.bf16.gmra.mxu1 %vm349_vm1, %v9204_v5 }
 0x1a7   : > { %9217 = vst [vmem:[#allocation31_spill] sm:$0xff] %v7224_v63  ;;  %v7234_v17 = vpop.f32.mrf.mxu1  ;;  %v5124_v44 = vpop.eup %5123  ;;  %v7240_v56 = vadd.f32 %v2090_v39, %v1976_v41  ;;  %v1977_v33 = vmul.f32 %v5122_v36, %v6770_v57  ;;  %5149 = vpow2.f32 %v4498_v1  ;;  %4895 = vmatprep.mubr.msk.bf16.mxu1 %vm349_vm1, %v9220_v26  ;;  %2726 = vmatprep.mubr.bf16.mxu0 %v9122_v12 }
 0x1a8   : > { %9219 = vst [vmem:[#allocation33_spill] sm:$0xff] %v7230_v38  ;;  %v5126_v46 = vpop.eup %5125  ;;  %v7246_v0 = vadd.f32 %v2164_v58, %v1978_v35  ;;  %v1979_v51 = vmul.f32 %v5124_v44, %v6775_v28  ;;  %5151 = vpow2.f32 %v4500_v50  ;;  %v7249_v43 = vpop.f32.mrf.mxu0  ;;  %v7257_v1 = vadd.f32 %v7058_v32, %v6498_v52 }
 0x1a9   : > { %v7251_v5 = vpop.f32.mrf.mxu1  ;;  %v5128_v39 = vpop.eup %5127  ;;  %v7253_v14 = vadd.f32 %v2127_v23, %v1977_v33  ;;  %v1501_v57 = vadd.f32 1.0, %v5126_v46  ;;  %5153 = vpow2.f32 %v4499_v24  ;;  %v7263_v28 = vadd.f32 %v7060_v25, %v6500_v53 }
 0x1aa   : > { %9221 = vst [vmem:[#allocation34_spill] sm:$0xff] %v7257_v1  ;;  %v5130_v12 = vpop.eup %5129  ;;  %v7259_v22 = vadd.f32 %v2201_v4, %v1979_v51  ;;  %v1503_v58 = vadd.f32 1.0, %v5128_v39  ;;  %5155 = vpow2.f32 %v4501_v61  ;;  %v7265_v50 = vpop.f32.mrf.mxu0  ;;  %v7271_v32 = vadd.f32 %v7076_v40, %v6502_v54  ;;  %v9227_v39 = vld [vmem:[#allocation42_spill] sm:$0xff] }
 0x1ab   : > { %9222 = vst [vmem:[#allocation35_spill] sm:$0xff] %v7263_v28  ;;  %v7267_v41 = vpop.f32.mrf.mxu1  ;;  %v5132_v23 = vpop.eup %5131  ;;  %5157 = vrcp.f32 %v1501_v57  ;;  %v1502_v24 = vadd.f32 1.0, %v5130_v12  ;;  %v7275_v61 = vadd.f32 %v7078_v21, %v6504_v55  ;;  %v7283_v44 = vadd.f32 %v7094_v34, %v6498_v52 }
 0x1ac   : > { %9223 = vst [vmem:[#allocation36_spill] sm:$0xff] %v7271_v32  ;;  %v5134_v36 = vpop.eup %5133  ;;  %5159 = vrcp.f32 %v1503_v58  ;;  %v1504_v4 = vadd.f32 1.0, %v5132_v23  ;;  %v7277_v25 = vpop.f32.mrf.mxu0  ;;  %v7287_v46 = vadd.f32 %v7096_v20, %v6500_v53  ;;  %v7299_v12 = vadd.f32 %v7119_v29, %v6502_v54 }
 0x1ad   : > { %9224 = vst [vmem:[#allocation38_spill] sm:$0xff] %v7275_v61  ;;  %v7279_v27 = vpop.f32.mrf.mxu1  ;;  %v5136_v35 = vpop.eup %5135  ;;  %5161 = vrcp.f32 %v1502_v24  ;;  %v1506_v26 = vadd.f32 1.0, %v5134_v36  ;;  %9225 = vst [vmem:[#allocation39_spill] sm:$0xff] %v7283_v44  ;;  %v7303_v23 = vadd.f32 %v7121_v48, %v6504_v55  ;;  %v7312_v29 = vadd.f32 %v7139_v60, %v6498_v52 }
 0x1ae   : > { %v5138_v40 = vpop.eup %5137  ;;  %5163 = vrcp.f32 %v1504_v4  ;;  %v1508_v33 = vadd.f32 1.0, %v5136_v35  ;;  %9226 = vst [vmem:[#allocation14_spill] sm:$0xff] %v7287_v46  ;;  %v7289_v21 = vpop.f32.mrf.mxu0  ;;  %4618 = vmatmul.mubr.msk.bf16.gmra.mxu0 %vm349_vm1, %v9227_v39  ;;  %4896 = vmatmul.mubr.msk.bf16.gmra.mxu1 %vm349_vm1, %v9227_v39  ;;  %9228 = vst [vmem:[#allocation40_spill] sm:$0xff] %v7299_v12  ;;  %v7317_v48 = vadd.f32 %v7141_v16, %v6500_v53  ;;  %v4504_v44 = vmul.f32 -1.442695, %v6956_v9 }
 0x1af   : > { %v7291_v51 = vpop.f32.mrf.mxu1  ;;  %v5140_v57 = vpop.eup %5139  ;;  %5165 = vrcp.f32 %v1506_v26  ;;  %v1507_v34 = vadd.f32 1.0, %v5138_v40  ;;  %9229 = vst [vmem:[#allocation41_spill] sm:$0xff] %v7303_v23  ;;  %v9230_v26 = vld [vmem:[#allocation15_spill] sm:$0xff]  ;;  %9231 = vst [vmem:[#allocation37_spill] sm:$0xff] %v7312_v29  ;;  %v7326_v60 = vadd.f32 %v7155_v2, %v6502_v54  ;;  %v4506_v29 = vmul.f32 -1.442695, %v6962_v13 }
 0x1b0   : > { %v5142_v58 = vpop.eup %5141  ;;  %5167 = vrcp.f32 %v1508_v33  ;;  %v1509_v20 = vadd.f32 1.0, %v5140_v57  ;;  %v7305_v24 = vpop.f32.mrf.mxu0  ;;  %v4503_v40 = vmul.f32 -1.442695, %v9230_v26  ;;  %v9232_v57 = vld [vmem:[#allocation16_spill] sm:$0xff]  ;;  %9233 = vst [vmem:[#allocation42_spill] sm:$0xff] %v7317_v48  ;;  %v7331_v16 = vadd.f32 %v7157_v15, %v6504_v55 }
 0x1b1   : > { %v7307_v36 = vpop.f32.mrf.mxu1  ;;  %v5144_v4 = vpop.eup %5143  ;;  %5169 = vrcp.f32 %v1507_v34  ;;  %v1511_v35 = vadd.f32 1.0, %v5142_v58  ;;  %v4505_v12 = vmul.f32 -1.442695, %v9232_v57  ;;  %9234 = vst [vmem:[#allocation15_spill] sm:$0xff] %v7326_v60  ;;  %v4508_v32 = vmul.f32 -1.442695, %v6989_v42 }
 0x1b2   : > { %v5146_v39 = vpop.eup %5145  ;;  %5171 = vrcp.f32 %v1509_v20  ;;  %v1513_v33 = vadd.f32 1.0, %v5144_v4  ;;  %v7319_v23 = vpop.f32.mrf.mxu0  ;;  %9235 = vst [vmem:[#allocation16_spill] sm:$0xff] %v7331_v16  ;;  %v7340_v2 = vadd.f32 %v7173_v45, %v6498_v52  ;;  %v4510_v60 = vmul.f32 -1.442695, %v6995_v31  ;;  %v9248_v42 = vld [vmem:[#allocation46_spill] sm:$0xff] }
 0x1b3   : > { %v7321_v46 = vpop.f32.mrf.mxu1  ;;  %v5148_v34 = vpop.eup %5147  ;;  %5173 = vrcp.f32 %v1511_v35  ;;  %v1512_v58 = vadd.f32 1.0, %v5146_v39  ;;  %v7345_v15 = vadd.f32 %v7175_v47, %v6500_v53  ;;  %v4509_v1 = vmul.f32 -1.442695, %v7003_v37 }
 0x1b4   : > { %v5150_v20 = vpop.eup %5149  ;;  %5175 = vrcp.f32 %v1513_v33  ;;  %v1514_v4 = vadd.f32 1.0, %v5148_v34  ;;  %v7333_v48 = vpop.f32.mrf.mxu0  ;;  %9236 = vst [vmem:[#allocation56_spill] sm:$0xff] %v7340_v2  ;;  %v7354_v45 = vadd.f32 %v7190_v62, %v6502_v54  ;;  %v4511_v2 = vmul.f32 -1.442695, %v7007_v3  ;;  %v9242_v3 = vld [vmem:[#allocation21_spill] sm:$0xff] }
 0x1b5   : > { %v7335_v61 = vpop.f32.mrf.mxu1  ;;  %v5152_v35 = vpop.eup %5151  ;;  %5177 = vrcp.f32 %v1512_v58  ;;  %v1516_v39 = vadd.f32 1.0, %v5150_v20  ;;  %9237 = vst [vmem:[#allocation57_spill] sm:$0xff] %v7345_v15  ;;  %v7359_v47 = vadd.f32 %v7192_v6, %v6504_v55  ;;  %v4515_v37 = vmul.f32 -1.442695, %v9242_v3  ;;  %v9247_v3 = vld [vmem:[#allocation23_spill] sm:$0xff] }
 0x1b6   : > { %v5154_v33 = vpop.eup %5153  ;;  %5179 = vrcp.f32 %v1514_v4  ;;  %v1518_v34 = vadd.f32 1.0, %v5152_v35  ;;  %v7347_v16 = vpop.f32.mrf.mxu0  ;;  %9238 = vst [vmem:[#allocation58_spill] sm:$0xff] %v7354_v45  ;;  %v7373_v6 = vadd.f32 %v7208_v11, %v6500_v53  ;;  %v4516_v63 = vmul.f32 -1.442695, %v9247_v3 }
 0x1b7   : > { %v7349_v28 = vpop.f32.mrf.mxu1  ;;  %v5156_v58 = vpop.eup %5155  ;;  %5181 = vrcp.f32 %v1516_v39  ;;  %v1517_v20 = vadd.f32 1.0, %v5154_v33  ;;  %9239 = vst [vmem:[#allocation59_spill] sm:$0xff] %v7359_v47  ;;  %v4513_v39 = vmul.f32 -1.442695, %v7015_v18  ;;  %v7365_v33 = vadd.f32 %v7206_v19, %v6498_v52  ;;  %v9244_v47 = vld [vmem:[#allocation44_spill] sm:$0xff] }
 0x1b8   : > { %v5158_v4 = vpop.eup %5157  ;;  %5183 = vrcp.f32 %v1518_v34  ;;  %v1519_v35 = vadd.f32 1.0, %v5156_v58  ;;  %v7367_v62 = vpop.f32.mrf.mxu0  ;;  %v9241_v58 = vld [vmem:[#allocation43_spill] sm:$0xff] }
 0x1b9   : > { %v5160_v15 = vpop.eup %5159  ;;  %v1981_v38 = vmul.f32 %v5158_v4, %v6778_v7  ;;  %5185 = vrcp.f32 %v1517_v20  ;;  %9240 = vst [vmem:[#allocation60_spill] sm:$0xff] %v7365_v33  ;;  %9243 = vst [vmem:[#allocation43_spill] sm:$0xff] %v7373_v6  ;;  %v7375_v7 = vpop.f32.mrf.mxu1  ;;  %v9245_v33 = vld [vmem:[#allocation22_spill] sm:$0xff] }
 0x1ba   : > { %v5162_v34 = vpop.eup %5161  ;;  %v1983_v45 = vmul.f32 %v5160_v15, %v9241_v58  ;;  %5187 = vrcp.f32 %v1519_v35  ;;  %v4514_v18 = vmul.f32 -1.442695, %v9245_v33  ;;  %v9246_v35 = vld [vmem:[#allocation45_spill] sm:$0xff] }
 0x1bb   : > { %v5164_v20 = vpop.eup %5163  ;;  %v2092_v4 = vadd.f32 %v7240_v56, %v1981_v38  ;;  %v1982_v19 = vmul.f32 %v5162_v34, %v9244_v47  ;;  %5189 = vpow2.f32 %v4503_v40  ;;  %v7387_v38 = vadd.f32 %v7216_v59, %v6502_v54  ;;  %v7389_v56 = vpop.f32.mrf.mxu0  ;;  %v9253_v59 = vld [vmem:[#allocation24_spill] sm:$0xff] }
 0x1bc   : > { %v5166_v31 = vpop.eup %5165  ;;  %v2166_v15 = vadd.f32 %v7246_v0, %v1983_v45  ;;  %v1984_v58 = vmul.f32 %v5164_v20, %v9246_v35  ;;  %5191 = vpow2.f32 %v4505_v12  ;;  %v9250_v45 = vld [vmem:[#allocation47_spill] sm:$0xff]  ;;  %v7395_v12 = vadd.f32 %v7218_v49, %v6504_v55  ;;  %v9256_v49 = vld [vmem:[#allocation50_spill] sm:$0xff] }
 0x1bd   : > { %v5168_v11 = vpop.eup %5167  ;;  %v2129_v6 = vadd.f32 %v7253_v14, %v1982_v19  ;;  %v1986_v13 = vmul.f32 %v5166_v31, %v9248_v42  ;;  %5193 = vpow2.f32 %v4504_v44  ;;  %9249 = vst [vmem:[#allocation44_spill] sm:$0xff] %v7387_v38  ;;  %v7397_v14 = vpop.f32.mrf.mxu1  ;;  %v9252_v44 = vld [vmem:[#allocation48_spill] sm:$0xff]  ;;  %v4518_v20 = vmul.f32 -1.442695, %v9253_v59  ;;  %v9254_v38 = vld [vmem:[#allocation49_spill] sm:$0xff] }
 0x1be   : > { %v5170_v40 = vpop.eup %5169  ;;  %v2203_v0 = vadd.f32 %v7259_v22, %v1984_v58  ;;  %v1988_v47 = vmul.f32 %v5168_v11, %v9250_v45  ;;  %5195 = vpow2.f32 %v4506_v29  ;;  %9251 = vst [vmem:[#allocation22_spill] sm:$0xff] %v7395_v12  ;;  %v9255_v58 = vld [vmem:[#allocation25_spill] sm:$0xff] }
 0x1bf   : > { %v5172_v42 = vpop.eup %5171  ;;  %v2093_v31 = vadd.f32 %v2092_v4, %v1986_v13  ;;  %v1987_v34 = vmul.f32 %v5170_v40, %v9252_v44  ;;  %5197 = vpow2.f32 %v4508_v32  ;;  %v4520_v29 = vmul.f32 -1.442695, %v9255_v58  ;;  %v7408_v4 = vpop.f32.mrf.mxu0  ;;  %v9258_v44 = vld [vmem:[#allocation51_spill] sm:$0xff] }
 0x1c0   : > { %v5174_v19 = vpop.eup %5173  ;;  %v2167_v35 = vadd.f32 %v2166_v15, %v1988_v47  ;;  %v1989_v22 = vmul.f32 %v5172_v42, %v9254_v38  ;;  %5199 = vpow2.f32 %v4510_v60  ;;  %v7406_v13 = vadd.f32 %v7232_v10, %v6498_v52  ;;  %v7415_v38 = vpop.f32.mrf.mxu1  ;;  %v9261_v10 = vld [vmem:[#allocation27_spill] sm:$0xff] }
 0x1c1   : > { %v5176_v11 = vpop.eup %5175  ;;  %v2130_v45 = vadd.f32 %v2129_v6, %v1987_v34  ;;  %v1991_v12 = vmul.f32 %v5174_v19, %v9256_v49  ;;  %5201 = vpow2.f32 %v4509_v1  ;;  %v7413_v60 = vadd.f32 %v7234_v17, %v6500_v53  ;;  %v9260_v1 = vld [vmem:[#allocation2_spill] sm:$0xff]  ;;  %v9264_v17 = vld [vmem:[#allocation12_spill] sm:$0xff] }
 0x1c2   : > { %9257 = vst [vmem:[#allocation45_spill] sm:$0xff] %v7406_v13  ;;  %v5178_v32 = vpop.eup %5177  ;;  %v2204_v40 = vadd.f32 %v2203_v0, %v1989_v22  ;;  %v1993_v15 = vmul.f32 %v5176_v11, %v9258_v44  ;;  %5203 = vpow2.f32 %v4511_v2  ;;  %v4519_v34 = vmul.f32 -1.442695, %v9261_v10  ;;  %v9262_v13 = vld [vmem:[#allocation3_spill] sm:$0xff] }
 0x1c3   : > { %9259 = vst [vmem:[#allocation23_spill] sm:$0xff] %v7413_v60  ;;  %v5180_v6 = vpop.eup %5179  ;;  %v2094_v47 = vadd.f32 %v2093_v31, %v1991_v12  ;;  %v1992_v42 = vmul.f32 %v5178_v32, %v9260_v1  ;;  %5205 = vpow2.f32 %v4513_v39  ;;  %v9263_v22 = vld [vmem:[#allocation11_spill] sm:$0xff]  ;;  %v7424_v12 = vadd.f32 %v7249_v43, %v6502_v54  ;;  %v7426_v31 = vpop.f32.mrf.mxu0  ;;  %v9266_v1 = vld [vmem:[#allocation13_spill] sm:$0xff] }
 0x1c4   : > { %v5182_v19 = vpop.eup %5181  ;;  %v2168_v49 = vadd.f32 %v2167_v35, %v1993_v15  ;;  %v1994_v0 = vmul.f32 %v5180_v6, %v9262_v13  ;;  %5207 = vpow2.f32 %v4515_v37  ;;  %v4521_v2 = vmul.f32 -1.442695, %v9263_v22  ;;  %v7433_v13 = vpop.f32.mrf.mxu1 }
 0x1c5   : > { %v5184_v11 = vpop.eup %5183  ;;  %v2131_v44 = vadd.f32 %v2130_v45, %v1992_v42  ;;  %v1996_v60 = vmul.f32 %v5182_v19, %v9264_v17  ;;  %5209 = vpow2.f32 %v4514_v18  ;;  %9265 = vst [vmem:[#allocation46_spill] sm:$0xff] %v7424_v12  ;;  %v7431_v37 = vadd.f32 %v7251_v5, %v6504_v55 }
 0x1c6   : > { %v5186_v39 = vpop.eup %5185  ;;  %v2205_v32 = vadd.f32 %v2204_v40, %v1994_v0  ;;  %v1998_v35 = vmul.f32 %v5184_v11, %v9266_v1  ;;  %5211 = vpow2.f32 %v4516_v63  ;;  %v7445_v5 = vadd.f32 %v7265_v50, %v6498_v52 }
 0x1c7   : > { %9267 = vst [vmem:[#allocation47_spill] sm:$0xff] %v7431_v37  ;;  %v5188_v45 = vpop.eup %5187  ;;  %v7435_v15 = vadd.f32 %v2094_v47, %v1996_v60  ;;  %v1997_v18 = vmul.f32 %v5186_v39, %v6897_v8  ;;  %5213 = vpow2.f32 %v4518_v20  ;;  %v7447_v60 = vpop.f32.mrf.mxu0  ;;  %v7459_v50 = vadd.f32 %v7277_v25, %v6502_v54  ;;  %v9301_v37 = vld [vmem:[#allocation4_spill] sm:$0xff] }
 0x1c8   : > { %v5190_v43 = vpop.eup %5189  ;;  %v7438_v6 = vadd.f32 %v2168_v49, %v1998_v35  ;;  %v1999_v40 = vmul.f32 %v5188_v45, %v9215_v30  ;;  %5215 = vpow2.f32 %v4520_v29  ;;  %9268 = vst [vmem:[#allocation48_spill] sm:$0xff] %v7445_v5  ;;  %v7453_v30 = vadd.f32 %v7267_v41, %v6500_v53  ;;  %v7455_v29 = vpop.f32.mrf.mxu1 }
 0x1c9   : > { %v5192_v42 = vpop.eup %5191  ;;  %v7441_v63 = vadd.f32 %v2131_v44, %v1997_v18  ;;  %v1521_v19 = vadd.f32 1.0, %v5190_v43  ;;  %5217 = vpow2.f32 %v4519_v34  ;;  %9270 = vst [vmem:[#allocation49_spill] sm:$0xff] %v7459_v50  ;;  %v7463_v44 = vadd.f32 %v7279_v27, %v6504_v55  ;;  %v7469_v39 = vpop.f32.mrf.mxu0 }
 0x1ca   : > { %v5194_v47 = vpop.eup %5193  ;;  %v7449_v8 = vadd.f32 %v2205_v32, %v1999_v40  ;;  %v1523_v20 = vadd.f32 1.0, %v5192_v42  ;;  %5219 = vpow2.f32 %v4521_v2  ;;  %9269 = vst [vmem:[#allocation24_spill] sm:$0xff] %v7453_v30  ;;  %v7467_v17 = vadd.f32 %v7289_v21, %v6498_v52  ;;  %v7475_v35 = vpop.f32.mrf.mxu1  ;;  %v9299_v30 = vld [vmem:[#allocation10_spill] sm:$0xff] }
 0x1cb   : > { %v5196_v49 = vpop.eup %5195  ;;  %5221 = vrcp.f32 %v1521_v19  ;;  %v1522_v34 = vadd.f32 1.0, %v5194_v47  ;;  %9271 = vst [vmem:[#allocation25_spill] sm:$0xff] %v7463_v44  ;;  %v7473_v1 = vadd.f32 %v7291_v51, %v6500_v53  ;;  %v7479_v18 = vadd.f32 %v7305_v24, %v6502_v54  ;;  %v9276_v19 = vld [vmem:[#allocation17_spill] sm:$0xff] }
 0x1cc   : > { %v5198_v0 = vpop.eup %5197  ;;  %5223 = vrcp.f32 %v1523_v20  ;;  %v1524_v11 = vadd.f32 1.0, %v5196_v49  ;;  %9272 = vst [vmem:[#allocation50_spill] sm:$0xff] %v7467_v17  ;;  %v7483_v40 = vadd.f32 %v7307_v36, %v6504_v55  ;;  %v4523_v47 = vmul.f32 -1.442695, %v9276_v19  ;;  %v7490_v49 = vpop.f32.mrf.mxu0  ;;  %v9290_v17 = vld [vmem:[#allocation28_spill] sm:$0xff] }
 0x1cd   : > { %v5200_v2 = vpop.eup %5199  ;;  %5225 = vrcp.f32 %v1522_v34  ;;  %v1526_v41 = vadd.f32 1.0, %v5198_v0  ;;  %9273 = vst [vmem:[#allocation51_spill] sm:$0xff] %v7473_v1  ;;  %9274 = vst [vmem:[#allocation2_spill] sm:$0xff] %v7479_v18  ;;  %v7488_v20 = vadd.f32 %v7319_v23, %v6498_v52  ;;  %v9278_v0 = vld [vmem:[#allocation52_spill] sm:$0xff]  ;;  %v7495_v36 = vadd.f32 %v7321_v46, %v6500_v53 }
 0x1ce   : > { %v5202_v32 = vpop.eup %5201  ;;  %5227 = vrcp.f32 %v1524_v11  ;;  %v1528_v25 = vadd.f32 1.0, %v5200_v2  ;;  %9275 = vst [vmem:[#allocation27_spill] sm:$0xff] %v7483_v40  ;;  %v4525_v11 = vmul.f32 -1.442695, %v9278_v0  ;;  %v7497_v2 = vpop.f32.mrf.mxu1  ;;  %v7502_v23 = vadd.f32 %v7333_v48, %v6502_v54 }
 0x1cf   : > { %v5204_v27 = vpop.eup %5203  ;;  %5229 = vrcp.f32 %v1526_v41  ;;  %v1527_v45 = vadd.f32 1.0, %v5202_v32  ;;  %9277 = vst [vmem:[#allocation3_spill] sm:$0xff] %v7488_v20  ;;  %9279 = vst [vmem:[#allocation11_spill] sm:$0xff] %v7495_v36  ;;  %v7507_v46 = vadd.f32 %v7335_v61, %v6504_v55  ;;  %v9285_v20 = vld [vmem:[#allocation6_spill] sm:$0xff]  ;;  %v7511_v18 = vpop.f32.mrf.mxu0  ;;  %v7516_v1 = vadd.f32 %v7349_v28, %v6498_v52 }
 0x1d0   : > { %v5206_v21 = vpop.eup %5205  ;;  %5231 = vrcp.f32 %v1528_v25  ;;  %v1529_v43 = vadd.f32 1.0, %v5204_v27  ;;  %v9280_v25 = vld [vmem:[#allocation26_spill] sm:$0xff]  ;;  %9281 = vst [vmem:[#allocation12_spill] sm:$0xff] %v7502_v23  ;;  %v297_v40 = vsub.s32 4, %v9285_v20  ;;  %v7518_v61 = vpop.f32.mrf.mxu1  ;;  %v7525_v20 = vadd.f32 %v7375_v7, %v6502_v54 }
 0x1d1   : > { %v5208_v42 = vpop.eup %5207  ;;  %5233 = vrcp.f32 %v1527_v45  ;;  %v1531_v51 = vadd.f32 1.0, %v5206_v21  ;;  %v4524_v27 = vmul.f32 -1.442695, %v9280_v25  ;;  %9283 = vst [vmem:[#allocation13_spill] sm:$0xff] %v7507_v46  ;;  %9287 = vst [vmem:[#allocation17_spill] sm:$0xff] %v7516_v1  ;;  %v7530_v28 = vadd.f32 %v7397_v14, %v6498_v52  ;;  %v9294_v14 = vld [vmem:[#allocation29_spill] sm:$0xff] }
 0x1d2   : > { %v5210_v24 = vpop.eup %5209  ;;  %5235 = vrcp.f32 %v1529_v43  ;;  %v1533_v34 = vadd.f32 1.0, %v5208_v42  ;;  %v9282_v43 = vld [vmem:[#allocation53_spill] sm:$0xff]  ;;  %9289 = vst [vmem:[#allocation26_spill] sm:$0xff] %v7525_v20  ;;  %v4529_v44 = vmul.f32 -1.442695, %v9290_v17  ;;  %v9298_v20 = vld [vmem:[#allocation32_spill] sm:$0xff] }
 0x1d3   : > { %v5212_v41 = vpop.eup %5211  ;;  %5237 = vrcp.f32 %v1531_v51  ;;  %v1532_v32 = vadd.f32 1.0, %v5210_v24  ;;  %v4526_v42 = vmul.f32 -1.442695, %v9282_v43  ;;  %v9284_v24 = vld [vmem:[#allocation54_spill] sm:$0xff]  ;;  %9291 = vst [vmem:[#allocation53_spill] sm:$0xff] %v7530_v28 }
 0x1d4   : > { %v5214_v45 = vpop.eup %5213  ;;  %5239 = vrcp.f32 %v1533_v34  ;;  %v1534_v21 = vadd.f32 1.0, %v5212_v41  ;;  %v4528_v36 = vmul.f32 -1.442695, %v9284_v24  ;;  %v9286_v41 = vld [vmem:[#allocation55_spill] sm:$0xff]  ;;  %v9296_v28 = vld [vmem:[#allocation30_spill] sm:$0xff] }
 0x1d5   : > { %v5216_v53 = vpop.eup %5215  ;;  %5241 = vrcp.f32 %v1532_v32  ;;  %v1536_v51 = vadd.f32 1.0, %v5214_v45  ;;  %v4530_v23 = vmul.f32 -1.442695, %v9286_v41  ;;  %v6213_v45 = vld [vmem:[%s6484_s8] sm:$0x1f] }
 0x1d6   : > { %v5218_v48 = vpop.eup %5217  ;;  %5243 = vrcp.f32 %v1534_v21  ;;  %v1538_v34 = vadd.f32 1.0, %v5216_v53  ;;  %v7521_v46 = vrot.slane %v6213_v45, %v297_v40  ;;  %v4531_v45 = vmul.f32 -1.442695, %v9294_v14 }
 0x1d7   : > { %v5220_v55 = vpop.eup %5219  ;;  %5245 = vrcp.f32 %v1536_v51  ;;  %v1537_v32 = vadd.f32 1.0, %v5218_v48  ;;  %v7541_v48 = vpop.f32.mrf.mxu0  ;;  %v4535_v50 = vmul.f32 -1.442695, %v9298_v20 }
 0x1d8   : > { %9288 = vst [vmem:[#allocation52_spill] sm:$0xff] %v7521_v46  ;;  %v5222_v21 = vpop.eup %5221  ;;  %5247 = vrcp.f32 %v1538_v34  ;;  %v1539_v53 = vadd.f32 1.0, %v5220_v55  ;;  %v7535_v40 = vadd.f32 %v7347_v16, %v7521_v46  ;;  %v7539_v7 = vadd.f32 %v7367_v62, %v7521_v46 }
 0x1d9   : > { %v5224_v1 = vpop.eup %5223  ;;  %v2001_v51 = vmul.f32 %v5222_v21, %v9230_v26  ;;  %5249 = vrcp.f32 %v1537_v32  ;;  %v7547_v26 = vadd.f32 %v7389_v56, %v7521_v46  ;;  %v7549_v32 = vpop.f32.mrf.mxu1 }
 0x1da   : > { %9292 = vst [vmem:[#allocation54_spill] sm:$0xff] %v7535_v40  ;;  %9293 = vst [vmem:[#allocation55_spill] sm:$0xff] %v7539_v7  ;;  %v5226_v55 = vpop.eup %5225  ;;  %v2003_v34 = vmul.f32 %v5224_v1, %v9232_v57  ;;  %5251 = vrcp.f32 %v1539_v53  ;;  %v4533_v7 = vmul.f32 -1.442695, %v9296_v28  ;;  %v9297_v1 = vld [vmem:[#allocation18_spill] sm:$0xff] }
 0x1db   : > { %9295 = vst [vmem:[#allocation28_spill] sm:$0xff] %v7547_v26  ;;  %v5228_v16 = vpop.eup %5227  ;;  %v2096_v21 = vadd.f32 %v7435_v15, %v2001_v51  ;;  %v2002_v62 = vmul.f32 %v5226_v55, %v6956_v9  ;;  %5253 = vpow2.f32 %v4523_v47  ;;  %v9300_v15 = vld [vmem:[#allocation31_spill] sm:$0xff]  ;;  %v7560_v9 = vpop.f32.mrf.mxu0 }
 0x1dc   : > { %v5230_v40 = vpop.eup %5229  ;;  %v2170_v57 = vadd.f32 %v7438_v6, %v2003_v34  ;;  %v2004_v53 = vmul.f32 %v5228_v16, %v9297_v1  ;;  %5255 = vpow2.f32 %v4525_v11  ;;  %v4534_v51 = vmul.f32 -1.442695, %v9300_v15  ;;  %v9302_v34 = vld [vmem:[#allocation33_spill] sm:$0xff]  ;;  %v7565_v16 = vpop.f32.mrf.mxu1 }
 0x1dd   : > { %v5232_v56 = vpop.eup %5231  ;;  %v2133_v26 = vadd.f32 %v7441_v63, %v2002_v62  ;;  %v2006_v5 = vmul.f32 %v5230_v40, %v9299_v30  ;;  %5257 = vpow2.f32 %v4524_v27  ;;  %v4536_v11 = vmul.f32 -1.442695, %v9302_v34  ;;  %v9303_v63 = vld [vmem:[#allocation19_spill] sm:$0xff]  ;;  %v9305_v15 = vld [vmem:[#allocation5_spill] sm:$0xff] }
 0x1de   : > { %v5234_v47 = vpop.eup %5233  ;;  %v2207_v55 = vadd.f32 %v7449_v8, %v2004_v53  ;;  %v2008_v6 = vmul.f32 %v5232_v56, %v9301_v37  ;;  %5259 = vpow2.f32 %v4526_v42  ;;  %v7570_v30 = vadd.f32 %v7408_v4, %v7521_v46  ;;  %v9306_v56 = vld [vmem:[#allocation20_spill] sm:$0xff] }
 0x1df   : > { %v5236_v1 = vpop.eup %5235  ;;  %v2097_v12 = vadd.f32 %v2096_v21, %v2006_v5  ;;  %v2007_v62 = vmul.f32 %v5234_v47, %v9303_v63  ;;  %5261 = vpow2.f32 %v4528_v36  ;;  %v7575_v37 = vadd.f32 %v7415_v38, %v6502_v54  ;;  %v9307_v21 = vld [vmem:[#allocation34_spill] sm:$0xff]  ;;  %v7579_v47 = vpop.f32.mrf.mxu0 }
 0x1e0   : > { %9304 = vst [vmem:[#allocation29_spill] sm:$0xff] %v7570_v30  ;;  %v5238_v27 = vpop.eup %5237  ;;  %v2171_v40 = vadd.f32 %v2170_v57, %v2008_v6  ;;  %v2009_v8 = vmul.f32 %v5236_v1, %v9305_v15  ;;  %5263 = vpow2.f32 %v4530_v23  ;;  %v4538_v36 = vmul.f32 -1.442695, %v9307_v21  ;;  %v9308_v30 = vld [vmem:[#allocation21_spill] sm:$0xff]  ;;  %v9309_v15 = vld [vmem:[#allocation35_spill] sm:$0xff]  ;;  %v7583_v6 = vpop.f32.mrf.mxu1 }
 0x1e1   : > { %v5240_v42 = vpop.eup %5239  ;;  %v2134_v53 = vadd.f32 %v2133_v26, %v2007_v62  ;;  %v2011_v5 = vmul.f32 %v5238_v27, %v9306_v56  ;;  %5265 = vpow2.f32 %v4529_v44  ;;  %v4540_v23 = vmul.f32 -1.442695, %v9309_v15 }
 0x1e2   : > { %v5242_v4 = vpop.eup %5241  ;;  %v2208_v63 = vadd.f32 %v2207_v55, %v2009_v8  ;;  %v2013_v57 = vmul.f32 %v5240_v42, %v9308_v30  ;;  %5267 = vpow2.f32 %v4531_v45  ;;  %v7588_v44 = vadd.f32 %v7426_v31, %v7521_v46  ;;  %v7597_v42 = vpop.f32.mrf.mxu0 }
 0x1e3   : > { %v5244_v38 = vpop.eup %5243  ;;  %v2098_v1 = vadd.f32 %v2097_v12, %v2011_v5  ;;  %v2012_v26 = vmul.f32 %v5242_v4, %v9245_v33  ;;  %5269 = vpow2.f32 %v4533_v7  ;;  %v7593_v45 = vadd.f32 %v7433_v13, %v6498_v52  ;;  %v9310_v33 = vld [vmem:[#allocation36_spill] sm:$0xff]  ;;  %v7601_v5 = vpop.f32.mrf.mxu1 }
 0x1e4   : > { %v5246_v62 = vpop.eup %5245  ;;  %v2172_v27 = vadd.f32 %v2171_v40, %v2013_v57  ;;  %v2014_v55 = vmul.f32 %v5244_v38, %v9247_v3  ;;  %5271 = vpow2.f32 %v4535_v50  ;;  %v4539_v7 = vmul.f32 -1.442695, %v9310_v33  ;;  %v9311_v3 = vld [vmem:[#allocation38_spill] sm:$0xff] }
 0x1e5   : > { %v5248_v30 = vpop.eup %5247  ;;  %v2135_v8 = vadd.f32 %v2134_v53, %v2012_v26  ;;  %v2016_v12 = vmul.f32 %v5246_v62, %v9253_v59  ;;  %5273 = vpow2.f32 %v4534_v51  ;;  %v4541_v50 = vmul.f32 -1.442695, %v9311_v3  ;;  %v7623_v62 = vpop.f32.mrf.mxu1 }
 0x1e6   : > { %v5250_v31 = vpop.eup %5249  ;;  %v2209_v56 = vadd.f32 %v2208_v63, %v2014_v55  ;;  %v2018_v40 = vmul.f32 %v5248_v30, %v9255_v58  ;;  %5275 = vpow2.f32 %v4536_v11  ;;  %v7608_v59 = vadd.f32 %v7447_v60, %v7521_v46 }
 0x1e7   : > { %v5252_v13 = vpop.eup %5251  ;;  %v7603_v4 = vadd.f32 %v2098_v1, %v2016_v12  ;;  %v2017_v53 = vmul.f32 %v5250_v31, %v9261_v10  ;;  %5277 = vpow2.f32 %v4538_v36  ;;  %v7615_v11 = vadd.f32 %v7455_v29, %v6502_v54  ;;  %v7619_v10 = vpop.f32.mrf.mxu0 }
 0x1e8   : > { %v5254_v51 = vpop.eup %5253  ;;  %v7610_v57 = vadd.f32 %v2172_v27, %v2018_v40  ;;  %v2019_v58 = vmul.f32 %v5252_v13, %v9263_v22  ;;  %5279 = vpow2.f32 %v4540_v23  ;;  %v7627_v29 = vadd.f32 %v7469_v39, %v7521_v46  ;;  %v7643_v40 = vpop.f32.mrf.mxu1 }
 0x1e9   : > { %9312 = vst [vmem:[#allocation30_spill] sm:$0xff] %v7615_v11  ;;  %v5256_v63 = vpop.eup %5255  ;;  %v7617_v38 = vadd.f32 %v2135_v8, %v2017_v53  ;;  %v1541_v1 = vadd.f32 1.0, %v5254_v51  ;;  %5281 = vpow2.f32 %v4539_v7  ;;  %v7631_v27 = vadd.f32 %v7475_v35, %v6498_v52  ;;  %v7641_v39 = vpop.f32.mrf.mxu0 }
 0x1ea   : > { %v5258_v36 = vpop.eup %5257  ;;  %v7621_v60 = vadd.f32 %v2209_v56, %v2019_v58  ;;  %v1543_v26 = vadd.f32 1.0, %v5256_v63  ;;  %5283 = vpow2.f32 %v4541_v50  ;;  %9313 = vst [vmem:[#allocation18_spill] sm:$0xff] %v7627_v29  ;;  %v7635_v8 = vadd.f32 %v7490_v49, %v7521_v46 }
 0x1eb   : > { %v5260_v22 = vpop.eup %5259  ;;  %5285 = vrcp.f32 %v1541_v1  ;;  %v1542_v23 = vadd.f32 1.0, %v5258_v36  ;;  %9314 = vst [vmem:[#allocation32_spill] sm:$0xff] %v7631_v27  ;;  %v7639_v12 = vadd.f32 %v7497_v2, %v6502_v54  ;;  %v7647_v49 = vadd.f32 %v7511_v18, %v7521_v46  ;;  %v7661_v18 = vpop.f32.mrf.mxu0 }
 0x1ec   : > { %v5262_v55 = vpop.eup %5261  ;;  %5287 = vrcp.f32 %v1543_v26  ;;  %v1544_v30 = vadd.f32 1.0, %v5260_v22  ;;  %9315 = vst [vmem:[#allocation10_spill] sm:$0xff] %v7635_v8  ;;  %v7651_v2 = vadd.f32 %v7518_v61, %v6498_v52  ;;  %v7655_v58 = vadd.f32 %v7541_v48, %v7521_v46  ;;  %v9321_v22 = vld [vmem:[#allocation39_spill] sm:$0xff] }
 0x1ed   : > { %9316 = vst [vmem:[#allocation4_spill] sm:$0xff] %v7639_v12  ;;  %v5264_v7 = vpop.eup %5263  ;;  %5289 = vrcp.f32 %v1542_v23  ;;  %v1546_v31 = vadd.f32 1.0, %v5262_v55  ;;  %9317 = vst [vmem:[#allocation33_spill] sm:$0xff] %v7647_v49  ;;  %v7659_v63 = vadd.f32 %v7549_v32, %v6502_v54  ;;  %v4543_v23 = vmul.f32 -1.442695, %v9321_v22  ;;  %v9322_v55 = vld [vmem:[#allocation14_spill] sm:$0xff] }
 0x1ee   : > { %v5266_v56 = vpop.eup %5265  ;;  %5291 = vrcp.f32 %v1544_v30  ;;  %v1548_v35 = vadd.f32 1.0, %v5264_v7  ;;  %9318 = vst [vmem:[#allocation19_spill] sm:$0xff] %v7651_v2  ;;  %9319 = vst [vmem:[#allocation5_spill] sm:$0xff] %v7655_v58  ;;  %v4545_v30 = vmul.f32 -1.442695, %v9322_v55  ;;  %v7665_v7 = vpop.f32.mrf.mxu1  ;;  %v7669_v32 = vadd.f32 %v7560_v9, %v7521_v46  ;;  %v9327_v9 = vld [vmem:[#allocation40_spill] sm:$0xff] }
 0x1ef   : > { %v5268_v50 = vpop.eup %5267  ;;  %5293 = vrcp.f32 %v1546_v31  ;;  %v1547_v13 = vadd.f32 1.0, %v5266_v56  ;;  %9320 = vst [vmem:[#allocation20_spill] sm:$0xff] %v7659_v63  ;;  %v7673_v56 = vadd.f32 %v7565_v16, %v6498_v52  ;;  %v7685_v16 = vpop.f32.mrf.mxu0  ;;  %v7705_v49 = vadd.f32 %v7623_v62, %v6502_v54  ;;  %v9336_v12 = vld [vmem:[#allocation16_spill] sm:$0xff]  ;;  %v9338_v62 = vld [vmem:[#allocation57_spill] sm:$0xff] }
 0x1f0   : > { %v5270_v53 = vpop.eup %5269  ;;  %5295 = vrcp.f32 %v1548_v35  ;;  %v1549_v51 = vadd.f32 1.0, %v5268_v50  ;;  %9323 = vst [vmem:[#allocation34_spill] sm:$0xff] %v7669_v32  ;;  %v7689_v58 = vpop.f32.mrf.mxu1 }
 0x1f1   : > { %v5272_v1 = vpop.eup %5271  ;;  %5297 = vrcp.f32 %v1547_v13  ;;  %v1551_v36 = vadd.f32 1.0, %v5270_v53  ;;  %9324 = vst [vmem:[#allocation21_spill] sm:$0xff] %v7673_v56  ;;  %v7677_v13 = vadd.f32 %v7579_v47, %v7521_v46  ;;  %v7681_v53 = vadd.f32 %v7583_v6, %v6502_v54  ;;  %v9330_v47 = vld [vmem:[#allocation42_spill] sm:$0xff]  ;;  %9334 = vst [vmem:[#allocation40_spill] sm:$0xff] %v7705_v49 }
 0x1f2   : > { %v5274_v26 = vpop.eup %5273  ;;  %5299 = vrcp.f32 %v1549_v51  ;;  %v1553_v61 = vadd.f32 1.0, %v5272_v1  ;;  %v4555_v49 = vmul.f32 -1.442695, %v9338_v62 }
 0x1f3   : > { %v5276_v48 = vpop.eup %5275  ;;  %5301 = vrcp.f32 %v1551_v36  ;;  %v1552_v31 = vadd.f32 1.0, %v5274_v26  ;;  %9325 = vst [vmem:[#allocation35_spill] sm:$0xff] %v7677_v13  ;;  %9326 = vst [vmem:[#allocation36_spill] sm:$0xff] %v7681_v53  ;;  %v4544_v36 = vmul.f32 -1.442695, %v9327_v9  ;;  %v9328_v26 = vld [vmem:[#allocation41_spill] sm:$0xff] }
 0x1f4   : > { %v5278_v35 = vpop.eup %5277  ;;  %5303 = vrcp.f32 %v1553_v61  ;;  %v1554_v50 = vadd.f32 1.0, %v5276_v48  ;;  %v4546_v32 = vmul.f32 -1.442695, %v9328_v26  ;;  %v9329_v48 = vld [vmem:[#allocation37_spill] sm:$0xff]  ;;  %v4550_v13 = vmul.f32 -1.442695, %v9330_v47 }
 0x1f5   : > { %v5280_v51 = vpop.eup %5279  ;;  %5305 = vrcp.f32 %v1552_v31  ;;  %v1556_v1 = vadd.f32 1.0, %v5278_v35  ;;  %v4548_v63 = vmul.f32 -1.442695, %v9329_v48  ;;  %v7693_v31 = vadd.f32 %v7597_v42, %v7521_v46  ;;  %v9335_v42 = vld [vmem:[#allocation15_spill] sm:$0xff] }
 0x1f6   : > { %v5282_v56 = vpop.eup %5281  ;;  %5307 = vrcp.f32 %v1554_v50  ;;  %v1558_v61 = vadd.f32 1.0, %v5280_v51  ;;  %v7697_v35 = vadd.f32 %v7601_v5, %v6498_v52  ;;  %v7701_v51 = vadd.f32 %v7619_v10, %v7521_v46 }
 0x1f7   : > { %v5284_v6 = vpop.eup %5283  ;;  %5309 = vrcp.f32 %v1556_v1  ;;  %v1557_v53 = vadd.f32 1.0, %v5282_v56  ;;  %9331 = vst [vmem:[#allocation38_spill] sm:$0xff] %v7693_v31  ;;  %v4549_v31 = vmul.f32 -1.442695, %v9335_v42  ;;  %v4551_v5 = vmul.f32 -1.442695, %v9336_v12 }
 0x1f8   : > { %9332 = vst [vmem:[#allocation39_spill] sm:$0xff] %v7697_v35  ;;  %v5286_v2 = vpop.eup %5285  ;;  %5311 = vrcp.f32 %v1558_v61  ;;  %v1559_v50 = vadd.f32 1.0, %v5284_v6  ;;  %9333 = vst [vmem:[#allocation14_spill] sm:$0xff] %v7701_v51  ;;  %v7710_v35 = vpop.f32.mrf.mxu0  ;;  %v9337_v51 = vld [vmem:[#allocation56_spill] sm:$0xff] }
 0x1f9   : > { %v5288_v56 = vpop.eup %5287  ;;  %v2021_v1 = vmul.f32 %v5286_v2, %v9276_v19  ;;  %5313 = vrcp.f32 %v1557_v53  ;;  %v7712_v61 = vpop.f32.mrf.mxu1  ;;  %v4553_v8 = vmul.f32 -1.442695, %v9337_v51  ;;  %v7721_v53 = vadd.f32 %v7641_v39, %v7521_v46  ;;  %v9341_v39 = vld [vmem:[#allocation58_spill] sm:$0xff] }
 0x1fa   : > { %v5290_v6 = vpop.eup %5289  ;;  %v2023_v10 = vmul.f32 %v5288_v56, %v9278_v0  ;;  %5315 = vrcp.f32 %v1559_v50  ;;  %v7727_v50 = vadd.f32 %v7643_v40, %v6498_v52  ;;  %v7729_v56 = vpop.f32.mrf.mxu0  ;;  %v9342_v40 = vld [vmem:[#allocation59_spill] sm:$0xff] }
 0x1fb   : > { %v5292_v27 = vpop.eup %5291  ;;  %v2100_v19 = vadd.f32 %v7603_v4, %v2021_v1  ;;  %v2022_v2 = vmul.f32 %v5290_v6, %v9280_v25  ;;  %5317 = vpow2.f32 %v4543_v23  ;;  %9339 = vst [vmem:[#allocation41_spill] sm:$0xff] %v7721_v53  ;;  %v4554_v1 = vmul.f32 -1.442695, %v9341_v39  ;;  %v7734_v6 = vpop.f32.mrf.mxu1 }
 0x1fc   : > { %v5294_v29 = vpop.eup %5293  ;;  %v2174_v11 = vadd.f32 %v7610_v57, %v2023_v10  ;;  %v2024_v0 = vmul.f32 %v5292_v27, %v9282_v43  ;;  %5319 = vpow2.f32 %v4545_v30  ;;  %9340 = vst [vmem:[#allocation37_spill] sm:$0xff] %v7727_v50  ;;  %v4556_v30 = vmul.f32 -1.442695, %v9342_v40 }
 0x1fd   : > { %v5296_v4 = vpop.eup %5295  ;;  %v2137_v25 = vadd.f32 %v7617_v38, %v2022_v2  ;;  %v2026_v23 = vmul.f32 %v5294_v29, %v9284_v24  ;;  %5321 = vpow2.f32 %v4544_v36  ;;  %v7742_v24 = vadd.f32 %v7661_v18, %v7521_v46 }
 0x1fe   : > { %v5298_v57 = vpop.eup %5297  ;;  %v2211_v43 = vadd.f32 %v7621_v60, %v2024_v0  ;;  %v2028_v27 = vmul.f32 %v5296_v4, %v9286_v41  ;;  %5323 = vpow2.f32 %v4546_v32  ;;  %v7747_v41 = vadd.f32 %v7665_v7, %v6502_v54  ;;  %v901_v60 = vpop.f32.mrf.mxu0  ;;  %v9345_v7 = vld [vmem:[#allocation31_spill] sm:$0xff] }
 0x1ff   : > { %v5300_v10 = vpop.eup %5299  ;;  %v2101_v50 = vadd.f32 %v2100_v19, %v2026_v23  ;;  %v2027_v53 = vmul.f32 %v5298_v57, %v9290_v17  ;;  %5325 = vpow2.f32 %v4548_v63  ;;  %v9343_v17 = vld [vmem:[#allocation60_spill] sm:$0xff]  ;;  %v2431_v0 = vpop.f32.mrf.mxu1 }
 0x200   : > { %v5302_v38 = vpop.eup %5301  ;;  %v2175_v29 = vadd.f32 %v2174_v11, %v2028_v27  ;;  %v2029_v36 = vmul.f32 %v5300_v10, %v9294_v14  ;;  %5327 = vpow2.f32 %v4550_v13  ;;  %v4558_v63 = vmul.f32 -1.442695, %v9343_v17  ;;  %v9344_v14 = vld [vmem:[#allocation43_spill] sm:$0xff] }
 0x201   : > { %v5304_v32 = vpop.eup %5303  ;;  %v2138_v2 = vadd.f32 %v2137_v25, %v2027_v53  ;;  %v2031_v19 = vmul.f32 %v5302_v38, %v9296_v28  ;;  %5329 = vpow2.f32 %v4549_v31  ;;  %v4560_v13 = vmul.f32 -1.442695, %v9344_v14 }
 0x202   : > { %v5306_v18 = vpop.eup %5305  ;;  %v2212_v4 = vadd.f32 %v2211_v43, %v2029_v36  ;;  %v2033_v11 = vmul.f32 %v5304_v32, %v9298_v20  ;;  %5331 = vpow2.f32 %v4551_v5  ;;  %v7756_v53 = vadd.f32 %v7685_v16, %v7521_v46  ;;  %v4855_v5 = vpop.f32.mrf.mxu0 }
 0x203   : > { %v5308_v23 = vpop.eup %5307  ;;  %v2102_v57 = vadd.f32 %v2101_v50, %v2031_v19  ;;  %v2032_v27 = vmul.f32 %v5306_v18, %v9345_v7  ;;  %5333 = vpow2.f32 %v4553_v8  ;;  %v7761_v20 = vadd.f32 %v7689_v58, %v6498_v52  ;;  %v9348_v8 = vld [vmem:[#allocation44_spill] sm:$0xff]  ;;  %v2435_v36 = vpop.f32.mrf.mxu1 }
 0x204   : > { %9346 = vst [vmem:[#allocation42_spill] sm:$0xff] %v7756_v53  ;;  %v5310_v28 = vpop.eup %5309  ;;  %v2176_v31 = vadd.f32 %v2175_v29, %v2033_v11  ;;  %v2034_v25 = vmul.f32 %v5308_v23, %v9302_v34  ;;  %5335 = vpow2.f32 %v4555_v49  ;;  %v4559_v38 = vmul.f32 -1.442695, %v9348_v8  ;;  %v9349_v34 = vld [vmem:[#allocation22_spill] sm:$0xff] }
 0x205   : > { %9347 = vst [vmem:[#allocation15_spill] sm:$0xff] %v7761_v20  ;;  %v5312_v43 = vpop.eup %5311  ;;  %v2139_v10 = vadd.f32 %v2138_v2, %v2032_v27  ;;  %v2036_v50 = vmul.f32 %v5310_v28, %v9307_v21  ;;  %5337 = vpow2.f32 %v4554_v1  ;;  %v4561_v49 = vmul.f32 -1.442695, %v9349_v34 }
 0x206   : > { %v5314_v16 = vpop.eup %5313  ;;  %v2213_v32 = vadd.f32 %v2212_v4, %v2034_v25  ;;  %v2038_v29 = vmul.f32 %v5312_v43, %v9309_v15  ;;  %5339 = vpow2.f32 %v4556_v30  ;;  %v7772_v21 = vadd.f32 %v7710_v35, %v7521_v46  ;;  %v914_v30 = vpop.f32.mrf.mxu0 }
 0x207   : > { %v5316_v19 = vpop.eup %5315  ;;  %v7767_v18 = vadd.f32 %v2102_v57, %v2036_v50  ;;  %v2037_v58 = vmul.f32 %v5314_v16, %v9310_v33  ;;  %5341 = vpow2.f32 %v4558_v63  ;;  %v7779_v15 = vadd.f32 %v7712_v61, %v6502_v54  ;;  %v2437_v63 = vpop.f32.mrf.mxu1 }
 0x208   : > { %9350 = vst [vmem:[#allocation16_spill] sm:$0xff] %v7772_v21  ;;  %v5318_v1 = vpop.eup %5317  ;;  %v7774_v2 = vadd.f32 %v2176_v31, %v2038_v29  ;;  %v2039_v4 = vmul.f32 %v5316_v19, %v9311_v3  ;;  %5343 = vpow2.f32 %v4560_v13  ;;  %v7787_v13 = vadd.f32 %v7729_v56, %v7521_v46 }
 0x209   : > { %9351 = vst [vmem:[#allocation56_spill] sm:$0xff] %v7779_v15  ;;  %v5320_v11 = vpop.eup %5319  ;;  %v7781_v23 = vadd.f32 %v2139_v10, %v2037_v58  ;;  %v1561_v33 = vadd.f32 1.0, %v5318_v1  ;;  %5345 = vpow2.f32 %v4559_v38  ;;  %v7791_v61 = vadd.f32 %v7734_v6, %v6498_v52  ;;  %v4856_v10 = vpop.f32.mrf.mxu0 }
 0x20a   : > { %v5322_v57 = vpop.eup %5321  ;;  %v7783_v35 = vadd.f32 %v2213_v32, %v2039_v4  ;;  %v1563_v7 = vadd.f32 1.0, %v5320_v11  ;;  %5347 = vpow2.f32 %v4561_v49  ;;  %9352 = vst [vmem:[#allocation57_spill] sm:$0xff] %v7787_v13  ;;  %v7794_v25 = vadd.f32 %v901_v60, %v7521_v46  ;;  %v2439_v16 = vpop.f32.mrf.mxu1 }
 0x20b   : > { %v5324_v27 = vpop.eup %5323  ;;  %5349 = vrcp.f32 %v1561_v33  ;;  %v1562_v3 = vadd.f32 1.0, %v5322_v57  ;;  %9353 = vst [vmem:[#allocation58_spill] sm:$0xff] %v7791_v61  ;;  %v7797_v43 = vadd.f32 %v2431_v0, %v6502_v54  ;;  %v7800_v49 = vadd.f32 %v4855_v5, %v7521_v46  ;;  %v917_v4 = vpop.f32.mrf.mxu0 }
 0x20c   : > { %v5326_v28 = vpop.eup %5325  ;;  %5351 = vrcp.f32 %v1563_v7  ;;  %v1564_v31 = vadd.f32 1.0, %v5324_v27  ;;  %9354 = vst [vmem:[#allocation59_spill] sm:$0xff] %v7794_v25  ;;  %v7803_v60 = vadd.f32 %v2435_v36, %v6498_v52  ;;  %v7806_v58 = vadd.f32 %v914_v30, %v7521_v46  ;;  %v2441_v57 = vpop.f32.mrf.mxu1  ;;  %v9360_v27 = vld [vmem:[#allocation45_spill] sm:$0xff] }
 0x20d   : > { %9355 = vst [vmem:[#allocation60_spill] sm:$0xff] %v7797_v43  ;;  %v5328_v50 = vpop.eup %5327  ;;  %5353 = vrcp.f32 %v1562_v3  ;;  %v1566_v38 = vadd.f32 1.0, %v5326_v28  ;;  %9356 = vst [vmem:[#allocation43_spill] sm:$0xff] %v7800_v49  ;;  %v7809_v1 = vadd.f32 %v2437_v63, %v6502_v54  ;;  %v4563_v36 = vmul.f32 -1.442695, %v9360_v27  ;;  %v9373_v43 = vld [vmem:[#allocation25_spill] sm:$0xff] }
 0x20e   : > { %v5330_v56 = vpop.eup %5329  ;;  %5355 = vrcp.f32 %v1564_v31  ;;  %v1568_v32 = vadd.f32 1.0, %v5328_v50  ;;  %9357 = vst [vmem:[#allocation31_spill] sm:$0xff] %v7803_v60  ;;  %9358 = vst [vmem:[#allocation44_spill] sm:$0xff] %v7806_v58  ;;  %v7813_v31 = vadd.f32 %v4856_v10, %v7521_v46  ;;  %v7816_v30 = vadd.f32 %v2439_v16, %v6498_v52  ;;  %v9366_v10 = vld [vmem:[#allocation46_spill] sm:$0xff] }
 0x20f   : > { %v5332_v29 = vpop.eup %5331  ;;  %5357 = vrcp.f32 %v1566_v38  ;;  %v1567_v6 = vadd.f32 1.0, %v5330_v56  ;;  %9359 = vst [vmem:[#allocation22_spill] sm:$0xff] %v7809_v1  ;;  %v7819_v38 = vadd.f32 %v917_v4, %v7521_v46  ;;  %v7822_v56 = vadd.f32 %v2441_v57, %v6502_v54  ;;  %v2445_v4 = vpop.f32.mrf.mxu1  ;;  %v9371_v1 = vld [vmem:[#allocation24_spill] sm:$0xff] }
 0x210   : > { %v5334_v19 = vpop.eup %5333  ;;  %5359 = vrcp.f32 %v1568_v32  ;;  %v1569_v0 = vadd.f32 1.0, %v5332_v29  ;;  %9361 = vst [vmem:[#allocation45_spill] sm:$0xff] %v7813_v31  ;;  %9362 = vst [vmem:[#allocation61_spill] sm:$0xff] %v7816_v30  ;;  %v4859_v32 = vpop.f32.mrf.mxu0 }
 0x211   : > { %v5336_v11 = vpop.eup %5335  ;;  %5361 = vrcp.f32 %v1567_v6  ;;  %v1571_v33 = vadd.f32 1.0, %v5334_v19  ;;  %9363 = vst [vmem:[#allocation62_spill] sm:$0xff] %v7819_v38  ;;  %9364 = vst [vmem:[#allocation63_spill] sm:$0xff] %v7822_v56  ;;  %v9365_v19 = vld [vmem:[#allocation23_spill] sm:$0xff]  ;;  %v7829_v56 = vadd.f32 %v4859_v32, %v7521_v46 }
 0x212   : > { %v5338_v7 = vpop.eup %5337  ;;  %5363 = vrcp.f32 %v1569_v0  ;;  %v1573_v5 = vadd.f32 1.0, %v5336_v11  ;;  %v4565_v0 = vmul.f32 -1.442695, %v9365_v19  ;;  %v4564_v11 = vmul.f32 -1.442695, %v9366_v10  ;;  %v930_v32 = vpop.f32.mrf.mxu0 }
 0x213   : > { %v5340_v3 = vpop.eup %5339  ;;  %5365 = vrcp.f32 %v1571_v33  ;;  %v1572_v28 = vadd.f32 1.0, %v5338_v7  ;;  %v9367_v7 = vld [vmem:[#allocation47_spill] sm:$0xff]  ;;  %9369 = vst [vmem:[#allocation23_spill] sm:$0xff] %v7829_v56  ;;  %v2447_v56 = vpop.f32.mrf.mxu1 }
 0x214   : > { %v5342_v63 = vpop.eup %5341  ;;  %5367 = vrcp.f32 %v1573_v5  ;;  %v1574_v50 = vadd.f32 1.0, %v5340_v3  ;;  %v4566_v5 = vmul.f32 -1.442695, %v9367_v7  ;;  %v9368_v3 = vld [vmem:[#allocation48_spill] sm:$0xff]  ;;  %v4860_v15 = vpop.f32.mrf.mxu0 }
 0x215   : > { %v5344_v29 = vpop.eup %5343  ;;  %5369 = vrcp.f32 %v1572_v28  ;;  %v1576_v6 = vadd.f32 1.0, %v5342_v63  ;;  %v4568_v30 = vmul.f32 -1.442695, %v9368_v3  ;;  %v7832_v28 = vadd.f32 %v2445_v4, %v6498_v52  ;;  %v2449_v21 = vpop.f32.mrf.mxu1 }
 0x216   : > { %v5346_v33 = vpop.eup %5345  ;;  %5371 = vrcp.f32 %v1574_v50  ;;  %v1578_v16 = vadd.f32 1.0, %v5344_v29  ;;  %v4570_v50 = vmul.f32 -1.442695, %v9371_v1  ;;  %v9372_v29 = vld [vmem:[#allocation49_spill] sm:$0xff] }
 0x217   : > { %v5348_v38 = vpop.eup %5347  ;;  %5373 = vrcp.f32 %v1576_v6  ;;  %v1577_v57 = vadd.f32 1.0, %v5346_v33  ;;  %9370 = vst [vmem:[#allocation46_spill] sm:$0xff] %v7832_v28  ;;  %v4569_v58 = vmul.f32 -1.442695, %v9372_v29  ;;  %v4571_v6 = vmul.f32 -1.442695, %v9373_v43 }
 0x218   : > { %v5350_v63 = vpop.eup %5349  ;;  %5375 = vrcp.f32 %v1578_v16  ;;  %v1579_v31 = vadd.f32 1.0, %v5348_v38  ;;  %v9374_v33 = vld [vmem:[#allocation50_spill] sm:$0xff]  ;;  %v7841_v38 = vadd.f32 %v930_v32, %v7521_v46  ;;  %v7844_v16 = vadd.f32 %v2447_v56, %v6502_v54 }
 0x219   : > { %v5352_v60 = vpop.eup %5351  ;;  %v2041_v49 = vmul.f32 %v5350_v63, %v9321_v22  ;;  %5377 = vrcp.f32 %v1577_v57  ;;  %v4573_v25 = vmul.f32 -1.442695, %v9374_v33  ;;  %v9377_v63 = vld [vmem:[#allocation51_spill] sm:$0xff] }
 0x21a   : > { %v5354_v61 = vpop.eup %5353  ;;  %v2043_v4 = vmul.f32 %v5352_v60, %v9322_v55  ;;  %5379 = vrcp.f32 %v1579_v31  ;;  %9375 = vst [vmem:[#allocation47_spill] sm:$0xff] %v7841_v38  ;;  %9376 = vst [vmem:[#allocation48_spill] sm:$0xff] %v7844_v16  ;;  %v4575_v13 = vmul.f32 -1.442695, %v9377_v63  ;;  %v9378_v31 = vld [vmem:[#allocation2_spill] sm:$0xff] }
 0x21b   : > { %v5356_v28 = vpop.eup %5355  ;;  %v2104_v22 = vadd.f32 %v7767_v18, %v2041_v49  ;;  %v2042_v57 = vmul.f32 %v5354_v61, %v9327_v9  ;;  %5381 = vpow2.f32 %v4563_v36  ;;  %v4574_v32 = vmul.f32 -1.442695, %v9378_v31  ;;  %v9379_v9 = vld [vmem:[#allocation27_spill] sm:$0xff]  ;;  %v933_v49 = vpop.f32.mrf.mxu0 }
 0x21c   : > { %v5358_v20 = vpop.eup %5357  ;;  %v2178_v55 = vadd.f32 %v7774_v2, %v2043_v4  ;;  %v2044_v60 = vmul.f32 %v5356_v28, %v9328_v26  ;;  %5383 = vpow2.f32 %v4565_v0  ;;  %v4576_v61 = vmul.f32 -1.442695, %v9379_v9  ;;  %v2451_v36 = vpop.f32.mrf.mxu1 }
 0x21d   : > { %v5360_v56 = vpop.eup %5359  ;;  %v2141_v16 = vadd.f32 %v7781_v23, %v2042_v57  ;;  %v2046_v18 = vmul.f32 %v5358_v20, %v9329_v48  ;;  %5385 = vpow2.f32 %v4564_v11  ;;  %v7858_v26 = vadd.f32 %v4860_v15, %v7521_v46  ;;  %v4863_v20 = vpop.f32.mrf.mxu0 }
 0x21e   : > { %v5362_v38 = vpop.eup %5361  ;;  %v2215_v53 = vadd.f32 %v7783_v35, %v2044_v60  ;;  %v2048_v2 = vmul.f32 %v5360_v56, %v9330_v47  ;;  %5387 = vpow2.f32 %v4566_v5  ;;  %v7862_v48 = vadd.f32 %v2449_v21, %v6498_v52  ;;  %v2455_v11 = vpop.f32.mrf.mxu1  ;;  %v9380_v47 = vld [vmem:[#allocation3_spill] sm:$0xff] }
 0x21f   : > { %v5364_v0 = vpop.eup %5363  ;;  %v2105_v28 = vadd.f32 %v2104_v22, %v2046_v18  ;;  %v2047_v23 = vmul.f32 %v5362_v38, %v9335_v42  ;;  %5389 = vpow2.f32 %v4568_v30  ;;  %v4578_v5 = vmul.f32 -1.442695, %v9380_v47  ;;  %v9381_v22 = vld [vmem:[#allocation11_spill] sm:$0xff] }
 0x220   : > { %v5366_v4 = vpop.eup %5365  ;;  %v2179_v57 = vadd.f32 %v2178_v55, %v2048_v2  ;;  %v2049_v35 = vmul.f32 %v5364_v0, %v9336_v12  ;;  %5391 = vpow2.f32 %v4570_v50  ;;  %v4580_v42 = vmul.f32 -1.442695, %v9381_v22  ;;  %v2457_v30 = vpop.f32.mrf.mxu1 }
 0x221   : > { %v5368_v60 = vpop.eup %5367  ;;  %v2142_v15 = vadd.f32 %v2141_v16, %v2047_v23  ;;  %v2051_v56 = vmul.f32 %v5366_v4, %v9337_v51  ;;  %5393 = vpow2.f32 %v4569_v58  ;;  %v7870_v55 = vadd.f32 %v933_v49, %v7521_v46  ;;  %v946_v51 = vpop.f32.mrf.mxu0 }
 0x222   : > { %v5370_v38 = vpop.eup %5369  ;;  %v2216_v21 = vadd.f32 %v2215_v53, %v2049_v35  ;;  %v2053_v18 = vmul.f32 %v5368_v60, %v9338_v62  ;;  %5395 = vpow2.f32 %v4571_v6  ;;  %v7874_v16 = vadd.f32 %v2451_v36, %v6502_v54  ;;  %v9382_v53 = vld [vmem:[#allocation12_spill] sm:$0xff]  ;;  %v2459_v6 = vpop.f32.mrf.mxu1 }
 0x223   : > { %v5372_v12 = vpop.eup %5371  ;;  %v2106_v50 = vadd.f32 %v2105_v28, %v2051_v56  ;;  %v2052_v2 = vmul.f32 %v5370_v38, %v9341_v39  ;;  %5397 = vpow2.f32 %v4573_v25  ;;  %v4579_v62 = vmul.f32 -1.442695, %v9382_v53  ;;  %v9383_v28 = vld [vmem:[#allocation13_spill] sm:$0xff] }
 0x224   : > { %v5374_v58 = vpop.eup %5373  ;;  %v2180_v0 = vadd.f32 %v2179_v57, %v2053_v18  ;;  %v2054_v23 = vmul.f32 %v5372_v12, %v9342_v40  ;;  %5399 = vpow2.f32 %v4575_v13  ;;  %v4581_v39 = vmul.f32 -1.442695, %v9383_v28 }
 0x225   : > { %v5376_v4 = vpop.eup %5375  ;;  %v2143_v49 = vadd.f32 %v2142_v15, %v2052_v2  ;;  %v2056_v35 = vmul.f32 %v5374_v58, %v9343_v17  ;;  %5401 = vpow2.f32 %v4574_v32  ;;  %v7882_v57 = vadd.f32 %v4863_v20, %v7521_v46  ;;  %v4864_v17 = vpop.f32.mrf.mxu0 }
 0x226   : > { %v5378_v25 = vpop.eup %5377  ;;  %v2217_v60 = vadd.f32 %v2216_v21, %v2054_v23  ;;  %v2058_v36 = vmul.f32 %v5376_v4, %v9344_v14  ;;  %5403 = vpow2.f32 %v4576_v61  ;;  %v7888_v15 = vadd.f32 %v2455_v11, %v6498_v52  ;;  %v2461_v14 = vpop.f32.mrf.mxu1 }
 0x227   : > { %v5380_v40 = vpop.eup %5379  ;;  %v7884_v13 = vadd.f32 %v2106_v50, %v2056_v35  ;;  %v2057_v56 = vmul.f32 %v5378_v25, %v9348_v8  ;;  %5405 = vpow2.f32 %v4578_v5  ;;  %v7898_v11 = vadd.f32 %v946_v51, %v7521_v46  ;;  %v949_v58 = vpop.f32.mrf.mxu0 }
 0x228   : > { %9384 = vst [vmem:[#allocation24_spill] sm:$0xff] %v7888_v15  ;;  %v5382_v32 = vpop.eup %5381  ;;  %v7890_v38 = vadd.f32 %v2180_v0, %v2058_v36  ;;  %v2059_v21 = vmul.f32 %v5380_v40, %v9349_v34  ;;  %5407 = vpow2.f32 %v4580_v42  ;;  %v7901_v34 = vadd.f32 %v2457_v30, %v6502_v54  ;;  %v2465_v4 = vpop.f32.mrf.mxu1 }
 0x229   : > { %v5384_v61 = vpop.eup %5383  ;;  %v7893_v20 = vadd.f32 %v2143_v49, %v2057_v56  ;;  %v1581_v18 = vadd.f32 1.0, %v5382_v32  ;;  %5409 = vpow2.f32 %v4579_v62  ;;  %9385 = vst [vmem:[#allocation49_spill] sm:$0xff] %v7898_v11  ;;  %v7904_v42 = vadd.f32 %v4864_v17, %v7521_v46 }
 0x22a   : > { %v5386_v12 = vpop.eup %5385  ;;  %v7895_v50 = vadd.f32 %v2217_v60, %v2059_v21  ;;  %v1583_v8 = vadd.f32 1.0, %v5384_v61  ;;  %5411 = vpow2.f32 %v4581_v39  ;;  %9386 = vst [vmem:[#allocation25_spill] sm:$0xff] %v7901_v34  ;;  %v7907_v62 = vadd.f32 %v2459_v6, %v6498_v52 }
 0x22b   : > { %v5388_v5 = vpop.eup %5387  ;;  %5413 = vrcp.f32 %v1581_v18  ;;  %v1582_v2 = vadd.f32 1.0, %v5386_v12  ;;  %9387 = vst [vmem:[#allocation50_spill] sm:$0xff] %v7904_v42  ;;  %v7910_v30 = vadd.f32 %v949_v58, %v7521_v46  ;;  %v7913_v36 = vadd.f32 %v2461_v14, %v6502_v54  ;;  %v9399_v46 = vld [vmem:[#allocation53_spill] sm:$0xff] }
 0x22c   : > { %v5390_v0 = vpop.eup %5389  ;;  %5415 = vrcp.f32 %v1583_v8  ;;  %v1584_v23 = vadd.f32 1.0, %v5388_v5  ;;  %9388 = vst [vmem:[#allocation51_spill] sm:$0xff] %v7907_v62  ;;  %v7916_v40 = vadd.f32 %v2465_v4, %v6498_v52 }
 0x22d   : > { %v5392_v49 = vpop.eup %5391  ;;  %5417 = vrcp.f32 %v1582_v2  ;;  %v1586_v51 = vadd.f32 1.0, %v5390_v0  ;;  %9389 = vst [vmem:[#allocation2_spill] sm:$0xff] %v7910_v30  ;;  %9390 = vst [vmem:[#allocation27_spill] sm:$0xff] %v7913_v36  ;;  %v2467_v36 = vpop.f32.mrf.mxu1 }
 0x22e   : > { %v5394_v35 = vpop.eup %5393  ;;  %5419 = vrcp.f32 %v1584_v23  ;;  %v1588_v39 = vadd.f32 1.0, %v5392_v49  ;;  %9391 = vst [vmem:[#allocation3_spill] sm:$0xff] %v7916_v40  ;;  %v9392_v23 = vld [vmem:[#allocation17_spill] sm:$0xff]  ;;  %v9393_v49 = vld [vmem:[#allocation26_spill] sm:$0xff]  ;;  %v4640_v40 = vmul.f32 -1.442695, %v9399_v46 }
 0x22f   : > { %v5396_v25 = vpop.eup %5395  ;;  %5421 = vrcp.f32 %v1586_v51  ;;  %v1587_v60 = vadd.f32 1.0, %v5394_v35  ;;  %v4635_v4 = vmul.f32 -1.442695, %v9392_v23  ;;  %v4636_v51 = vmul.f32 -1.442695, %v9393_v49  ;;  %v2578_v35 = vpop.f32.mrf.mxu0 }
 0x230   : > { %v5398_v6 = vpop.eup %5397  ;;  %5423 = vrcp.f32 %v1588_v39  ;;  %v1589_v56 = vadd.f32 1.0, %v5396_v25  ;;  %v2469_v42 = vpop.f32.mrf.mxu1 }
 0x231   : > { %v5400_v17 = vpop.eup %5399  ;;  %5425 = vrcp.f32 %v1587_v60  ;;  %v1591_v32 = vadd.f32 1.0, %v5398_v6  ;;  %v9394_v60 = vld [vmem:[#allocation54_spill] sm:$0xff]  ;;  %v2580_v30 = vpop.f32.mrf.mxu0 }
 0x232   : > { %v5402_v21 = vpop.eup %5401  ;;  %5427 = vrcp.f32 %v1589_v56  ;;  %v1593_v61 = vadd.f32 1.0, %v5400_v17  ;;  %v4437_v6 = vmul.f32 -1.442695, %v9394_v60  ;;  %v9395_v56 = vld [vmem:[#allocation7_spill] sm:$0xff] }
 0x233   : > { %v5404_v18 = vpop.eup %5403  ;;  %5429 = vrcp.f32 %v1591_v32  ;;  %v1592_v12 = vadd.f32 1.0, %v5402_v21  ;;  %v7922_v17 = vadd.f32 %v2578_v35, %v9395_v56 }
 0x234   : > { %v5406_v8 = vpop.eup %5405  ;;  %5431 = vrcp.f32 %v1593_v61  ;;  %v1594_v5 = vadd.f32 1.0, %v5404_v18  ;;  %v9397_v61 = vld [vmem:[#allocation55_spill] sm:$0xff] }
 0x235   : > { %v5408_v14 = vpop.eup %5407  ;;  %5433 = vrcp.f32 %v1592_v12  ;;  %v1596_v2 = vadd.f32 1.0, %v5406_v8  ;;  %9396 = vst [vmem:[#allocation11_spill] sm:$0xff] %v7922_v17  ;;  %v4427_v18 = vmul.f32 -1.442695, %v9397_v61  ;;  %v9398_v12 = vld [vmem:[#allocation28_spill] sm:$0xff] }
 0x236   : > { %v5410_v58 = vpop.eup %5409  ;;  %5435 = vrcp.f32 %v1594_v5  ;;  %v1598_v0 = vadd.f32 1.0, %v5408_v14  ;;  %v4442_v8 = vmul.f32 -1.442695, %v9398_v12 }
 0x237   : > { %v5412_v39 = vpop.eup %5411  ;;  %5437 = vrcp.f32 %v1596_v2  ;;  %v1597_v25 = vadd.f32 1.0, %v5410_v58  ;;  %v9400_v2 = vld [vmem:[#allocation29_spill] sm:$0xff] }
 0x238   : > { %v5414_v32 = vpop.eup %5413  ;;  %5439 = vrcp.f32 %v1598_v0  ;;  %v1599_v21 = vadd.f32 1.0, %v5412_v39  ;;  %v4432_v58 = vmul.f32 -1.442695, %v9400_v2  ;;  %v7931_v0 = vadd.f32 %v2467_v36, %v6502_v54  ;;  %v9402_v39 = vld [vmem:[#allocation9_spill] sm:$0xff] }
 0x239   : > { %v5416_v5 = vpop.eup %5415  ;;  %v2061_v14 = vmul.f32 %v5414_v32, %v9360_v27  ;;  %5441 = vrcp.f32 %v1597_v25  ;;  %v7934_v17 = vadd.f32 %v2580_v30, %v9402_v39  ;;  %v4641_v32 = vmul.f32 -1.442695, %v7575_v37 }
 0x23a   : > { %v5418_v62 = vpop.eup %5417  ;;  %v2063_v35 = vmul.f32 %v5416_v5, %v9365_v19  ;;  %5443 = vrcp.f32 %v1599_v21  ;;  %9401 = vst [vmem:[#allocation12_spill] sm:$0xff] %v7931_v0  ;;  %v4457_v36 = vmul.f32 -1.442695, %v7588_v44 }
 0x23b   : > { %9403 = vst [vmem:[#allocation13_spill] sm:$0xff] %v7934_v17  ;;  %v5420_v56 = vpop.eup %5419  ;;  %v2108_v27 = vadd.f32 %v7884_v13, %v2061_v14  ;;  %v2062_v25 = vmul.f32 %v5418_v62, %v9366_v10  ;;  %5445 = vpow2.f32 %v4437_v6  ;;  %v4645_v10 = vmul.f32 -1.442695, %v7593_v45 }
 0x23c   : > { %v5422_v34 = vpop.eup %5421  ;;  %v2182_v11 = vadd.f32 %v7890_v38, %v2063_v35  ;;  %v2064_v19 = vmul.f32 %v5420_v56, %v9367_v7  ;;  %5447 = vpow2.f32 %v4635_v4  ;;  %v7948_v38 = vadd.f32 %v2469_v42, %v6498_v52 }
 0x23d   : > { %v5424_v21 = vpop.eup %5423  ;;  %v2145_v30 = vadd.f32 %v7893_v20, %v2062_v25  ;;  %v2066_v5 = vmul.f32 %v5422_v34, %v9368_v3  ;;  %5449 = vpow2.f32 %v4427_v18  ;;  %v4447_v20 = vmul.f32 -1.442695, %v7608_v59  ;;  %v2471_v3 = vpop.f32.mrf.mxu1  ;;  %v9406_v25 = vld [vmem:[#allocation18_spill] sm:$0xff] }
 0x23e   : > { %v5426_v13 = vpop.eup %5425  ;;  %v2219_v62 = vadd.f32 %v7895_v50, %v2064_v19  ;;  %v2068_v6 = vmul.f32 %v5424_v21, %v9371_v1  ;;  %5451 = vpow2.f32 %v4636_v51  ;;  %9404 = vst [vmem:[#allocation17_spill] sm:$0xff] %v7948_v38  ;;  %v9405_v50 = vld [vmem:[#allocation30_spill] sm:$0xff]  ;;  %v7958_v21 = vadd.f32 %v2471_v3, %v6502_v54  ;;  %v9410_v3 = vld [vmem:[#allocation4_spill] sm:$0xff] }
 0x23f   : > { %v5428_v7 = vpop.eup %5427  ;;  %v2109_v4 = vadd.f32 %v2108_v27, %v2066_v5  ;;  %v2067_v56 = vmul.f32 %v5426_v13, %v9372_v29  ;;  %5453 = vpow2.f32 %v4442_v8  ;;  %v4646_v35 = vmul.f32 -1.442695, %v9405_v50  ;;  %v9408_v5 = vld [vmem:[#allocation32_spill] sm:$0xff]  ;;  %v2475_v13 = vpop.f32.mrf.mxu1 }
 0x240   : > { %v5430_v34 = vpop.eup %5429  ;;  %v2183_v18 = vadd.f32 %v2182_v11, %v2068_v6  ;;  %v2069_v14 = vmul.f32 %v5428_v7, %v9373_v43  ;;  %5455 = vpow2.f32 %v4640_v40  ;;  %v4462_v27 = vmul.f32 -1.442695, %v9406_v25  ;;  %9407 = vst [vmem:[#allocation26_spill] sm:$0xff] %v7958_v21 }
 0x241   : > { %v5432_v1 = vpop.eup %5431  ;;  %v2146_v51 = vadd.f32 %v2145_v30, %v2067_v56  ;;  %v2071_v42 = vmul.f32 %v5430_v34, %v9374_v33  ;;  %5457 = vpow2.f32 %v4432_v58  ;;  %v4650_v30 = vmul.f32 -1.442695, %v9408_v5 }
 0x242   : > { %v5434_v19 = vpop.eup %5433  ;;  %v2220_v29 = vadd.f32 %v2219_v62, %v2069_v14  ;;  %v2073_v8 = vmul.f32 %v5432_v1, %v9377_v63  ;;  %5459 = vpow2.f32 %v4641_v32  ;;  %v9409_v62 = vld [vmem:[#allocation10_spill] sm:$0xff]  ;;  %v7968_v14 = vadd.f32 %v2475_v13, %v6498_v52 }
 0x243   : > { %v5436_v11 = vpop.eup %5435  ;;  %v2110_v43 = vadd.f32 %v2109_v4, %v2071_v42  ;;  %v2072_v40 = vmul.f32 %v5434_v19, %v9378_v31  ;;  %5461 = vpow2.f32 %v4457_v36  ;;  %v4452_v7 = vmul.f32 -1.442695, %v9409_v62 }
 0x244   : > { %v5438_v33 = vpop.eup %5437  ;;  %v2184_v58 = vadd.f32 %v2183_v18, %v2073_v8  ;;  %v2074_v6 = vmul.f32 %v5436_v11, %v9379_v9  ;;  %5463 = vpow2.f32 %v4645_v10  ;;  %v4651_v4 = vmul.f32 -1.442695, %v9410_v3  ;;  %9411 = vst [vmem:[#allocation54_spill] sm:$0xff] %v7968_v14 }
 0x245   : > { %v5440_v63 = vpop.eup %5439  ;;  %v2147_v32 = vadd.f32 %v2146_v51, %v2072_v40  ;;  %v2076_v56 = vmul.f32 %v5438_v33, %v9380_v47  ;;  %5465 = vpow2.f32 %v4447_v20 }
 0x246   : > { %v5442_v34 = vpop.eup %5441  ;;  %v2221_v31 = vadd.f32 %v2220_v29, %v2074_v6  ;;  %v2078_v36 = vmul.f32 %v5440_v63, %v9381_v22  ;;  %5467 = vpow2.f32 %v4646_v35  ;;  %v2477_v35 = vpop.f32.mrf.mxu1 }
 0x247   : > { %v5444_v18 = vpop.eup %5443  ;;  %v7970_v9 = vadd.f32 %v2110_v43, %v2076_v56  ;;  %v2077_v10 = vmul.f32 %v5442_v34, %v9382_v53  ;;  %5469 = vpow2.f32 %v4462_v27 }
 0x248   : > { %v5446_v1 = vpop.eup %5445  ;;  %v7973_v51 = vadd.f32 %v2184_v58, %v2078_v36  ;;  %v2079_v47 = vmul.f32 %v5444_v18, %v9383_v28  ;;  %5471 = vpow2.f32 %v4650_v30  ;;  %v2479_v30 = vpop.f32.mrf.mxu1 }
 0x249   : > { %9412 = vst [vmem:[#allocation55_spill] sm:$0xff] %v7970_v9  ;;  %v5448_v20 = vpop.eup %5447  ;;  %v7976_v42 = vadd.f32 %v2147_v32, %v2077_v10  ;;  %v1455_v22 = vadd.f32 1.0, %v5446_v1  ;;  %5473 = vpow2.f32 %v4452_v7  ;;  %v9429_v9 = vld [vmem:[#allocation39_spill] sm:$0xff] }
 0x24a   : > { %9413 = vst [vmem:[#allocation28_spill] sm:$0xff] %v7973_v51  ;;  %v5450_v19 = vpop.eup %5449  ;;  %v7978_v29 = vadd.f32 %v2221_v31, %v2079_v47  ;;  %v3378_v8 = vadd.f32 1.0, %v5448_v20  ;;  %5475 = vpow2.f32 %v4651_v4  ;;  %v2481_v4 = vpop.f32.mrf.mxu1 }
 0x24b   : > { %9414 = vst [vmem:[#allocation53_spill] sm:$0xff] %v7976_v42  ;;  %v5452_v11 = vpop.eup %5451  ;;  %5477 = vrcp.f32 %v1455_v22  ;;  %v1445_v53 = vadd.f32 1.0, %v5450_v19 }
 0x24c   : > { %9415 = vst [vmem:[#allocation29_spill] sm:$0xff] %v7978_v29  ;;  %v5454_v27 = vpop.eup %5453  ;;  %5479 = vrcp.f32 %v3378_v8  ;;  %v3379_v43 = vadd.f32 1.0, %v5452_v11  ;;  %v2485_v22 = vpop.f32.mrf.mxu1  ;;  %v7981_v11 = vadd.f32 %v2477_v35, %v6502_v54 }
 0x24d   : > { %v5456_v40 = vpop.eup %5455  ;;  %5481 = vrcp.f32 %v1445_v53  ;;  %v1460_v28 = vadd.f32 1.0, %v5454_v27 }
 0x24e   : > { %v5458_v13 = vpop.eup %5457  ;;  %5483 = vrcp.f32 %v3379_v43  ;;  %v3383_v33 = vadd.f32 1.0, %v5456_v40  ;;  %9416 = vst [vmem:[#allocation30_spill] sm:$0xff] %v7981_v11  ;;  %v9417_v43 = vld [vmem:[#allocation33_spill] sm:$0xff] }
 0x24f   : > { %v5460_v58 = vpop.eup %5459  ;;  %5485 = vrcp.f32 %v1460_v28  ;;  %v1450_v6 = vadd.f32 1.0, %v5458_v13  ;;  %v4477_v40 = vmul.f32 -1.442695, %v9417_v43  ;;  %v7985_v28 = vadd.f32 %v2479_v30, %v6498_v52  ;;  %v9423_v30 = vld [vmem:[#allocation34_spill] sm:$0xff] }
 0x250   : > { %v5462_v7 = vpop.eup %5461  ;;  %5487 = vrcp.f32 %v3383_v33  ;;  %v3384_v63 = vadd.f32 1.0, %v5460_v58  ;;  %v9419_v58 = vld [vmem:[#allocation19_spill] sm:$0xff] }
 0x251   : > { %v5464_v32 = vpop.eup %5463  ;;  %5489 = vrcp.f32 %v1450_v6  ;;  %v1475_v56 = vadd.f32 1.0, %v5462_v7  ;;  %9418 = vst [vmem:[#allocation18_spill] sm:$0xff] %v7985_v28  ;;  %v4655_v6 = vmul.f32 -1.442695, %v9419_v58 }
 0x252   : > { %v5466_v34 = vpop.eup %5465  ;;  %5491 = vrcp.f32 %v3384_v63  ;;  %v3388_v31 = vadd.f32 1.0, %v5464_v32  ;;  %v9420_v63 = vld [vmem:[#allocation5_spill] sm:$0xff] }
 0x253   : > { %v5468_v36 = vpop.eup %5467  ;;  %5493 = vrcp.f32 %v1475_v56  ;;  %v1465_v18 = vadd.f32 1.0, %v5466_v34  ;;  %v4467_v32 = vmul.f32 -1.442695, %v9420_v63  ;;  %v2487_v56 = vpop.f32.mrf.mxu1  ;;  %v9421_v34 = vld [vmem:[#allocation20_spill] sm:$0xff] }
 0x254   : > { %v5470_v10 = vpop.eup %5469  ;;  %5495 = vrcp.f32 %v3388_v31  ;;  %v3389_v1 = vadd.f32 1.0, %v5468_v36  ;;  %v4656_v31 = vmul.f32 -1.442695, %v9421_v34  ;;  %v7991_v36 = vadd.f32 %v2481_v4, %v6502_v54  ;;  %v9428_v4 = vld [vmem:[#allocation38_spill] sm:$0xff] }
 0x255   : > { %v5472_v47 = vpop.eup %5471  ;;  %5497 = vrcp.f32 %v1465_v18  ;;  %v1480_v20 = vadd.f32 1.0, %v5470_v10  ;;  %v4482_v10 = vmul.f32 -1.442695, %v9423_v30  ;;  %v4497_v42 = vmul.f32 -1.442695, %v9428_v4 }
 0x256   : > { %v5474_v19 = vpop.eup %5473  ;;  %5499 = vrcp.f32 %v3389_v1  ;;  %v3393_v8 = vadd.f32 1.0, %v5472_v47  ;;  %9422 = vst [vmem:[#allocation32_spill] sm:$0xff] %v7991_v36  ;;  %v7995_v1 = vadd.f32 %v2485_v22, %v6498_v52  ;;  %v2489_v47 = vpop.f32.mrf.mxu1  ;;  %v9430_v36 = vld [vmem:[#allocation14_spill] sm:$0xff]  ;;  %v8006_v14 = vadd.f32 %v2487_v56, %v6502_v54 }
 0x257   : > { %v5476_v53 = vpop.eup %5475  ;;  %5501 = vrcp.f32 %v1480_v20  ;;  %v1470_v27 = vadd.f32 1.0, %v5474_v19  ;;  %v9425_v19 = vld [vmem:[#allocation21_spill] sm:$0xff]  ;;  %v4487_v28 = vmul.f32 -1.442695, %v9430_v36  ;;  %v8011_v17 = vadd.f32 %v2489_v47, %v6498_v52 }
 0x258   : > { %v5478_v13 = vpop.eup %5477  ;;  %5503 = vrcp.f32 %v3393_v8  ;;  %v3394_v33 = vadd.f32 1.0, %v5476_v53  ;;  %9424 = vst [vmem:[#allocation10_spill] sm:$0xff] %v7995_v1  ;;  %v4660_v8 = vmul.f32 -1.442695, %v9425_v19  ;;  %v9426_v53 = vld [vmem:[#allocation35_spill] sm:$0xff]  ;;  %v2491_v11 = vpop.f32.mrf.mxu1  ;;  %v9432_v47 = vld [vmem:[#allocation41_spill] sm:$0xff] }
 0x259   : > { %v5480_v7 = vpop.eup %5479  ;;  %5505 = vrcp.f32 %v1470_v27  ;;  %v4472_v27 = vmul.f32 -1.442695, %v9426_v53 }
 0x25a   : > { %v5482_v35 = vpop.eup %5481  ;;  %5507 = vrcp.f32 %v3394_v33  ;;  %v9427_v33 = vld [vmem:[#allocation36_spill] sm:$0xff]  ;;  %v3858_v1 = vmul.f32 %v5480_v7, %v9392_v23  ;;  %v1935_v7 = vmul.f32 %v5478_v13, %v9394_v60  ;;  %v8023_v13 = vadd.f32 %v2491_v11, %v6502_v54 }
 0x25b   : > { %v5484_v18 = vpop.eup %5483  ;;  %5509 = vpow2.f32 %v4477_v40  ;;  %v4661_v29 = vmul.f32 -1.442695, %v9427_v33  ;;  %v4665_v40 = vmul.f32 -1.442695, %v9429_v9  ;;  %v1925_v38 = vmul.f32 %v5482_v35, %v9397_v61  ;;  %v9431_v61 = vld [vmem:[#allocation40_spill] sm:$0xff] }
 0x25c   : > { %v5486_v20 = vpop.eup %5485  ;;  %5511 = vpow2.f32 %v4655_v6  ;;  %v3859_v0 = vmul.f32 %v5484_v18, %v9393_v49  ;;  %v4666_v35 = vmul.f32 -1.442695, %v9431_v61 }
 0x25d   : > { %v5488_v51 = vpop.eup %5487  ;;  %5513 = vpow2.f32 %v4467_v32  ;;  %v1940_v18 = vmul.f32 %v5486_v20, %v9398_v12  ;;  %v4492_v12 = vmul.f32 -1.442695, %v7742_v24 }
 0x25e   : > { %v5490_v22 = vpop.eup %5489  ;;  %v3863_v6 = vmul.f32 %v5488_v51, %v9399_v46  ;;  %5515 = vpow2.f32 %v4656_v31  ;;  %v2495_v46 = vpop.f32.mrf.mxu1 }
 0x25f   : > { %v5492_v21 = vpop.eup %5491  ;;  %v1930_v32 = vmul.f32 %v5490_v22, %v9400_v2  ;;  %5517 = vpow2.f32 %v4482_v10  ;;  %v4502_v22 = vmul.f32 -1.442695, %v9432_v47 }
 0x260   : > { %v5494_v39 = vpop.eup %5493  ;;  %v4018_v15 = vadd.f32 %v3863_v6, %v3858_v1  ;;  %v3864_v23 = vmul.f32 %v5492_v21, %v7575_v37  ;;  %5519 = vpow2.f32 %v4660_v8  ;;  %v9433_v21 = vld [vmem:[#allocation37_spill] sm:$0xff] }
 0x261   : > { %v5496_v51 = vpop.eup %5495  ;;  %v2229_v56 = vadd.f32 %v1930_v32, %v1925_v38  ;;  %5521 = vpow2.f32 %v4472_v27  ;;  %v4670_v1 = vmul.f32 -1.442695, %v9433_v21 }
 0x262   : > { %v5498_v2 = vpop.eup %5497  ;;  %v4055_v31 = vadd.f32 %v3864_v23, %v3859_v0  ;;  %v3868_v10 = vmul.f32 %v5496_v51, %v7593_v45  ;;  %5523 = vpow2.f32 %v4661_v29  ;;  %v2497_v0 = vpop.f32.mrf.mxu1 }
 0x263   : > { %v5500_v49 = vpop.eup %5499  ;;  %v2230_v37 = vadd.f32 %v2229_v56, %v1935_v7  ;;  %5525 = vpow2.f32 %v4497_v42  ;;  %v1945_v29 = vmul.f32 %v5498_v2, %v7608_v59 }
 0x264   : > { %v5502_v8 = vpop.eup %5501  ;;  %v4019_v60 = vadd.f32 %v4018_v15, %v3868_v10  ;;  %v3869_v38 = vmul.f32 %v5500_v49, %v9405_v50  ;;  %5527 = vpow2.f32 %v4665_v40  ;;  %v4671_v15 = vmul.f32 -1.442695, %v7747_v41  ;;  %v2499_v51 = vpop.f32.mrf.mxu1 }
 0x265   : > { %v5504_v45 = vpop.eup %5503  ;;  %v2231_v27 = vadd.f32 %v2230_v37, %v1940_v18  ;;  %5529 = vpow2.f32 %v4487_v28  ;;  %v8034_v28 = vadd.f32 %v2495_v46, %v6498_v52  ;;  %v8041_v37 = vadd.f32 %v2497_v0, %v6502_v54 }
 0x266   : > { %v5506_v20 = vpop.eup %5505  ;;  %v4056_v42 = vadd.f32 %v4055_v31, %v3869_v38  ;;  %v3873_v6 = vmul.f32 %v5504_v45, %v9408_v5  ;;  %5531 = vpow2.f32 %v4666_v35  ;;  %v1955_v5 = vmul.f32 %v5494_v39, %v7588_v44  ;;  %v2501_v44 = vpop.f32.mrf.mxu1 }
 0x267   : > { %v5508_v50 = vpop.eup %5507  ;;  %v2232_v40 = vadd.f32 %v2231_v27, %v1945_v29  ;;  %v1950_v11 = vmul.f32 %v5506_v20, %v9409_v62  ;;  %5533 = vpow2.f32 %v4502_v22  ;;  %v1960_v22 = vmul.f32 %v5502_v8, %v9406_v25 }
 0x268   : > { %v5510_v32 = vpop.eup %5509  ;;  %v8030_v23 = vadd.f32 %v4019_v60, %v3873_v6  ;;  %v3874_v59 = vmul.f32 %v5508_v50, %v9410_v3  ;;  %5535 = vpow2.f32 %v4670_v1  ;;  %v8044_v8 = vadd.f32 %v2499_v51, %v6498_v52  ;;  %v2505_v20 = vpop.f32.mrf.mxu1 }
 0x269   : > { %v5512_v7 = vpop.eup %5511  ;;  %v2233_v56 = vadd.f32 %v2232_v40, %v1950_v11  ;;  %v1495_v35 = vadd.f32 1.0, %v5510_v32  ;;  %5537 = vpow2.f32 %v4492_v12  ;;  %v8047_v0 = vadd.f32 %v2501_v44, %v6502_v54 }
 0x26a   : > { %v5514_v2 = vpop.eup %5513  ;;  %v8037_v31 = vadd.f32 %v4056_v42, %v3874_v59  ;;  %v3398_v62 = vadd.f32 1.0, %v5512_v7  ;;  %5539 = vpow2.f32 %v4671_v15  ;;  %v8050_v32 = vadd.f32 %v2505_v20, %v6498_v52 }
 0x26b   : > { %v5516_v10 = vpop.eup %5515  ;;  %v2234_v3 = vadd.f32 %v2233_v56, %v1955_v5  ;;  %5541 = vrcp.f32 %v1495_v35  ;;  %v1485_v49 = vadd.f32 1.0, %v5514_v2  ;;  %9434 = vst [vmem:[#allocation4_spill] sm:$0xff] %v8047_v0 }
 0x26c   : > { %v5518_v46 = vpop.eup %5517  ;;  %5543 = vrcp.f32 %v3398_v62  ;;  %v3399_v18 = vadd.f32 1.0, %v5516_v10  ;;  %9435 = vst [vmem:[#allocation33_spill] sm:$0xff] %v8050_v32  ;;  %v9436_v10 = vld [vmem:[#allocation42_spill] sm:$0xff] }
 0x26d   : > { %v5520_v39 = vpop.eup %5519  ;;  %5545 = vrcp.f32 %v1485_v49  ;;  %v2235_v1 = vadd.f32 %v2234_v3, %v1960_v22  ;;  %v1500_v60 = vadd.f32 1.0, %v5518_v46  ;;  %v4517_v22 = vmul.f32 -1.442695, %v9436_v10  ;;  %v9437_v46 = vld [vmem:[#allocation15_spill] sm:$0xff] }
 0x26e   : > { %v5522_v38 = vpop.eup %5521  ;;  %5547 = vrcp.f32 %v3399_v18  ;;  %v3403_v45 = vadd.f32 1.0, %v5520_v39  ;;  %v4675_v18 = vmul.f32 -1.442695, %v9437_v46  ;;  %v9438_v39 = vld [vmem:[#allocation16_spill] sm:$0xff] }
 0x26f   : > { %v5524_v29 = vpop.eup %5523  ;;  %5549 = vrcp.f32 %v1500_v60  ;;  %v1490_v25 = vadd.f32 1.0, %v5522_v38  ;;  %v4507_v60 = vmul.f32 -1.442695, %v9438_v39  ;;  %v2507_v38 = vpop.f32.mrf.mxu1 }
 0x270   : > { %v5526_v27 = vpop.eup %5525  ;;  %5551 = vrcp.f32 %v3403_v45  ;;  %v3404_v12 = vadd.f32 1.0, %v5524_v29 }
 0x271   : > { %v5528_v42 = vpop.eup %5527  ;;  %5553 = vrcp.f32 %v1490_v25  ;;  %v1515_v6 = vadd.f32 1.0, %v5526_v27  ;;  %v9439_v25 = vld [vmem:[#allocation56_spill] sm:$0xff] }
 0x272   : > { %v5530_v15 = vpop.eup %5529  ;;  %5555 = vrcp.f32 %v3404_v12  ;;  %v3408_v50 = vadd.f32 1.0, %v5528_v42  ;;  %v4676_v27 = vmul.f32 -1.442695, %v9439_v25  ;;  %v8058_v12 = vadd.f32 %v2507_v38, %v6502_v54 }
 0x273   : > { %v5532_v40 = vpop.eup %5531  ;;  %5557 = vrcp.f32 %v1515_v6  ;;  %v1505_v11 = vadd.f32 1.0, %v5530_v15  ;;  %v9441_v6 = vld [vmem:[#allocation57_spill] sm:$0xff] }
 0x274   : > { %v5534_v59 = vpop.eup %5533  ;;  %5559 = vrcp.f32 %v3408_v50  ;;  %v3409_v51 = vadd.f32 1.0, %v5532_v40  ;;  %9440 = vst [vmem:[#allocation19_spill] sm:$0xff] %v8058_v12  ;;  %v4522_v15 = vmul.f32 -1.442695, %v9441_v6  ;;  %v9442_v50 = vld [vmem:[#allocation58_spill] sm:$0xff] }
 0x275   : > { %v5536_v7 = vpop.eup %5535  ;;  %5561 = vrcp.f32 %v1505_v11  ;;  %v1520_v5 = vadd.f32 1.0, %v5534_v59  ;;  %v4680_v40 = vmul.f32 -1.442695, %v9442_v50  ;;  %v2509_v11 = vpop.f32.mrf.mxu1 }
 0x276   : > { %v5538_v56 = vpop.eup %5537  ;;  %5563 = vrcp.f32 %v3409_v51  ;;  %v3413_v35 = vadd.f32 1.0, %v5536_v7  ;;  %v9443_v7 = vld [vmem:[#allocation59_spill] sm:$0xff] }
 0x277   : > { %v5540_v2 = vpop.eup %5539  ;;  %5565 = vrcp.f32 %v1520_v5  ;;  %v1510_v62 = vadd.f32 1.0, %v5538_v56  ;;  %v4512_v5 = vmul.f32 -1.442695, %v9443_v7 }
 0x278   : > { %v5542_v3 = vpop.eup %5541  ;;  %5567 = vrcp.f32 %v3413_v35  ;;  %v3414_v49 = vadd.f32 1.0, %v5540_v2  ;;  %v9444_v2 = vld [vmem:[#allocation60_spill] sm:$0xff] }
 0x279   : > { %v5544_v44 = vpop.eup %5543  ;;  %5569 = vrcp.f32 %v1510_v62  ;;  %v4681_v62 = vmul.f32 -1.442695, %v9444_v2 }
 0x27a   : > { %v5546_v45 = vpop.eup %5545  ;;  %v3878_v29 = vmul.f32 %v5544_v44, %v9419_v58  ;;  %5571 = vrcp.f32 %v3414_v49  ;;  %v2511_v49 = vpop.f32.mrf.mxu1 }
 0x27b   : > { %v5548_v20 = vpop.eup %5547  ;;  %v1965_v42 = vmul.f32 %v5546_v45, %v9420_v63  ;;  %5573 = vpow2.f32 %v4517_v22  ;;  %v9445_v63 = vld [vmem:[#allocation43_spill] sm:$0xff] }
 0x27c   : > { %v5550_v59 = vpop.eup %5549  ;;  %v4021_v51 = vadd.f32 %v8030_v23, %v3878_v29  ;;  %v3879_v58 = vmul.f32 %v5548_v20, %v9421_v34  ;;  %5575 = vpow2.f32 %v4675_v18  ;;  %v4537_v22 = vmul.f32 -1.442695, %v9445_v63  ;;  %v2515_v20 = vpop.f32.mrf.mxu1 }
 0x27d   : > { %v5552_v56 = vpop.eup %5551  ;;  %v2236_v35 = vadd.f32 %v2235_v1, %v1965_v42  ;;  %5577 = vpow2.f32 %v4507_v60  ;;  %v8071_v23 = vadd.f32 %v2509_v11, %v6498_v52  ;;  %v9447_v1 = vld [vmem:[#allocation31_spill] sm:$0xff]  ;;  %v8076_v29 = vadd.f32 %v2511_v49, %v6502_v54 }
 0x27e   : > { %v5554_v44 = vpop.eup %5553  ;;  %v4058_v38 = vadd.f32 %v8037_v31, %v3879_v58  ;;  %v3883_v45 = vmul.f32 %v5552_v56, %v9425_v19  ;;  %5579 = vpow2.f32 %v4676_v27  ;;  %v4685_v60 = vmul.f32 -1.442695, %v9447_v1  ;;  %v9449_v19 = vld [vmem:[#allocation44_spill] sm:$0xff] }
 0x27f   : > { %9446 = vst [vmem:[#allocation5_spill] sm:$0xff] %v8071_v23  ;;  %v5556_v34 = vpop.eup %5555  ;;  %v1970_v18 = vmul.f32 %v5554_v44, %v9426_v53  ;;  %5581 = vpow2.f32 %v4522_v15  ;;  %9448 = vst [vmem:[#allocation20_spill] sm:$0xff] %v8076_v29  ;;  %v4527_v27 = vmul.f32 -1.442695, %v9449_v19  ;;  %v1975_v11 = vmul.f32 %v5542_v3, %v9417_v43  ;;  %v9450_v53 = vld [vmem:[#allocation22_spill] sm:$0xff]  ;;  %v2517_v44 = vpop.f32.mrf.mxu1  ;;  %v9451_v29 = vld [vmem:[#allocation45_spill] sm:$0xff] }
 0x280   : > { %v5558_v42 = vpop.eup %5557  ;;  %v4022_v12 = vadd.f32 %v4021_v51, %v3883_v45  ;;  %v3884_v31 = vmul.f32 %v5556_v34, %v9427_v33  ;;  %5583 = vpow2.f32 %v4680_v40  ;;  %v4686_v15 = vmul.f32 -1.442695, %v9450_v53  ;;  %v9452_v34 = vld [vmem:[#allocation61_spill] sm:$0xff] }
 0x281   : > { %v5560_v58 = vpop.eup %5559  ;;  %v2237_v56 = vadd.f32 %v2236_v35, %v1970_v18  ;;  %5585 = vpow2.f32 %v4512_v5  ;;  %v4542_v51 = vmul.f32 -1.442695, %v9451_v29  ;;  %v1980_v33 = vmul.f32 %v5550_v59, %v9423_v30  ;;  %v9453_v18 = vld [vmem:[#allocation62_spill] sm:$0xff]  ;;  %v2519_v30 = vpop.f32.mrf.mxu1 }
 0x282   : > { %v5562_v23 = vpop.eup %5561  ;;  %v4059_v32 = vadd.f32 %v4058_v38, %v3884_v31  ;;  %v3888_v49 = vmul.f32 %v5560_v58, %v9429_v9  ;;  %5587 = vpow2.f32 %v4681_v62  ;;  %v4690_v0 = vmul.f32 -1.442695, %v9452_v34 }
 0x283   : > { %v5564_v45 = vpop.eup %5563  ;;  %v2238_v40 = vadd.f32 %v2237_v56, %v1975_v11  ;;  %5589 = vpow2.f32 %v4537_v22  ;;  %v8088_v35 = vadd.f32 %v2515_v20, %v6498_v52  ;;  %v1985_v9 = vmul.f32 %v5562_v23, %v9430_v36 }
 0x284   : > { %v5566_v43 = vpop.eup %5565  ;;  %v4023_v3 = vadd.f32 %v4022_v12, %v3888_v49  ;;  %v3889_v5 = vmul.f32 %v5564_v45, %v9431_v61  ;;  %5591 = vpow2.f32 %v4685_v60  ;;  %v4532_v31 = vmul.f32 -1.442695, %v9453_v18  ;;  %v9454_v12 = vld [vmem:[#allocation63_spill] sm:$0xff]  ;;  %v2521_v45 = vpop.f32.mrf.mxu1 }
 0x285   : > { %v5568_v38 = vpop.eup %5567  ;;  %v2239_v62 = vadd.f32 %v2238_v40, %v1980_v33  ;;  %5593 = vpow2.f32 %v4527_v27  ;;  %v4691_v11 = vmul.f32 -1.442695, %v9454_v12  ;;  %v8099_v23 = vadd.f32 %v2517_v44, %v6502_v54 }
 0x286   : > { %v5570_v59 = vpop.eup %5569  ;;  %v4060_v22 = vadd.f32 %v4059_v32, %v3889_v5  ;;  %v3893_v58 = vmul.f32 %v5568_v38, %v9433_v21  ;;  %5595 = vpow2.f32 %v4686_v15  ;;  %v1995_v21 = vmul.f32 %v5558_v42, %v9428_v4 }
 0x287   : > { %v5572_v61 = vpop.eup %5571  ;;  %v2240_v60 = vadd.f32 %v2239_v62, %v1985_v9  ;;  %v1990_v20 = vmul.f32 %v5570_v59, %v7742_v24  ;;  %5597 = vpow2.f32 %v4542_v51  ;;  %v8106_v4 = vadd.f32 %v2519_v30, %v6498_v52  ;;  %v2525_v62 = vpop.f32.mrf.mxu1 }
 0x288   : > { %v5574_v56 = vpop.eup %5573  ;;  %v8095_v49 = vadd.f32 %v4023_v3, %v3893_v58  ;;  %v3894_v36 = vmul.f32 %v5572_v61, %v7747_v41  ;;  %5599 = vpow2.f32 %v4690_v0  ;;  %v2000_v3 = vmul.f32 %v5566_v43, %v9432_v47 }
 0x289   : > { %v5576_v32 = vpop.eup %5575  ;;  %v2241_v27 = vadd.f32 %v2240_v60, %v1990_v20  ;;  %v1535_v15 = vadd.f32 1.0, %v5574_v56  ;;  %5601 = vpow2.f32 %v4532_v31  ;;  %v8109_v43 = vadd.f32 %v2521_v45, %v6502_v54 }
 0x28a   : > { %v5578_v33 = vpop.eup %5577  ;;  %v8102_v40 = vadd.f32 %v4060_v22, %v3894_v36  ;;  %v3418_v24 = vadd.f32 1.0, %v5576_v32  ;;  %5603 = vpow2.f32 %v4691_v11  ;;  %v8112_v30 = vadd.f32 %v2525_v62, %v6498_v52 }
 0x28b   : > { %v5580_v51 = vpop.eup %5579  ;;  %v2242_v41 = vadd.f32 %v2241_v27, %v1995_v21  ;;  %5605 = vrcp.f32 %v1535_v15  ;;  %v1525_v0 = vadd.f32 1.0, %v5578_v33 }
 0x28c   : > { %v5582_v44 = vpop.eup %5581  ;;  %5607 = vrcp.f32 %v3418_v24  ;;  %v3419_v5 = vadd.f32 1.0, %v5580_v51 }
 0x28d   : > { %v5584_v42 = vpop.eup %5583  ;;  %5609 = vrcp.f32 %v1525_v0  ;;  %v2243_v38 = vadd.f32 %v2242_v41, %v2000_v3  ;;  %v1540_v9 = vadd.f32 1.0, %v5582_v44  ;;  %v9455_v41 = vld [vmem:[#allocation23_spill] sm:$0xff] }
 0x28e   : > { %v5586_v31 = vpop.eup %5585  ;;  %5611 = vrcp.f32 %v3419_v5  ;;  %v3423_v59 = vadd.f32 1.0, %v5584_v42  ;;  %v4557_v0 = vmul.f32 -1.442695, %v9455_v41  ;;  %v9456_v42 = vld [vmem:[#allocation46_spill] sm:$0xff] }
 0x28f   : > { %v5588_v22 = vpop.eup %5587  ;;  %5613 = vrcp.f32 %v1540_v9  ;;  %v1530_v47 = vadd.f32 1.0, %v5586_v31  ;;  %v4695_v9 = vmul.f32 -1.442695, %v9456_v42  ;;  %v9457_v31 = vld [vmem:[#allocation47_spill] sm:$0xff] }
 0x290   : > { %v5590_v58 = vpop.eup %5589  ;;  %5615 = vrcp.f32 %v3423_v59  ;;  %v3424_v11 = vadd.f32 1.0, %v5588_v22  ;;  %v4547_v59 = vmul.f32 -1.442695, %v9457_v31  ;;  %v2527_v22 = vpop.f32.mrf.mxu1 }
 0x291   : > { %v5592_v61 = vpop.eup %5591  ;;  %5617 = vrcp.f32 %v1530_v47  ;;  %v1555_v60 = vadd.f32 1.0, %v5590_v58 }
 0x292   : > { %v5594_v20 = vpop.eup %5593  ;;  %5619 = vrcp.f32 %v3424_v11  ;;  %v3428_v56 = vadd.f32 1.0, %v5592_v61  ;;  %v9458_v11 = vld [vmem:[#allocation48_spill] sm:$0xff] }
 0x293   : > { %v5596_v36 = vpop.eup %5595  ;;  %5621 = vrcp.f32 %v1555_v60  ;;  %v1545_v32 = vadd.f32 1.0, %v5594_v20  ;;  %v4696_v61 = vmul.f32 -1.442695, %v9458_v11  ;;  %v8120_v60 = vadd.f32 %v2527_v22, %v6502_v54 }
 0x294   : > { %v5598_v21 = vpop.eup %5597  ;;  %5623 = vrcp.f32 %v3428_v56  ;;  %v3429_v27 = vadd.f32 1.0, %v5596_v36  ;;  %v4562_v36 = vmul.f32 -1.442695, %v7858_v26 }
 0x295   : > { %v5600_v15 = vpop.eup %5599  ;;  %5625 = vrcp.f32 %v1545_v32  ;;  %v1560_v45 = vadd.f32 1.0, %v5598_v21  ;;  %v4700_v32 = vmul.f32 -1.442695, %v7862_v48  ;;  %v2529_v21 = vpop.f32.mrf.mxu1 }
 0x296   : > { %v5602_v33 = vpop.eup %5601  ;;  %5627 = vrcp.f32 %v3429_v27  ;;  %v3433_v24 = vadd.f32 1.0, %v5600_v15 }
 0x297   : > { %v5604_v51 = vpop.eup %5603  ;;  %5629 = vrcp.f32 %v1560_v45  ;;  %v1550_v3 = vadd.f32 1.0, %v5602_v33  ;;  %v4552_v45 = vmul.f32 -1.442695, %v7870_v55 }
 0x298   : > { %v5606_v44 = vpop.eup %5605  ;;  %5631 = vrcp.f32 %v3433_v24  ;;  %v3434_v5 = vadd.f32 1.0, %v5604_v51  ;;  %v4701_v51 = vmul.f32 -1.442695, %v7874_v16 }
 0x299   : > { %v5608_v62 = vpop.eup %5607  ;;  %5633 = vrcp.f32 %v1550_v3  ;;  %v2531_v3 = vpop.f32.mrf.mxu1 }
 0x29a   : > { %v5610_v47 = vpop.eup %5609  ;;  %v3898_v58 = vmul.f32 %v5608_v62, %v9437_v46  ;;  %5635 = vrcp.f32 %v3434_v5  ;;  %v8138_v22 = vadd.f32 %v2531_v3, %v6502_v54 }
 0x29b   : > { %v5612_v20 = vpop.eup %5611  ;;  %v2005_v56 = vmul.f32 %v5610_v47, %v9438_v39  ;;  %5637 = vpow2.f32 %v4557_v0  ;;  %v4577_v39 = vmul.f32 -1.442695, %v7882_v57 }
 0x29c   : > { %v5614_v27 = vpop.eup %5613  ;;  %v4025_v15 = vadd.f32 %v8095_v49, %v3898_v58  ;;  %v3899_v46 = vmul.f32 %v5612_v20, %v9439_v25  ;;  %5639 = vpow2.f32 %v4695_v9  ;;  %v8133_v49 = vadd.f32 %v2529_v21, %v6498_v52  ;;  %9461 = vst [vmem:[#allocation21_spill] sm:$0xff] %v8138_v22  ;;  %v9464_v22 = vld [vmem:[#allocation50_spill] sm:$0xff] }
 0x29d   : > { %v5616_v33 = vpop.eup %5615  ;;  %v2244_v24 = vadd.f32 %v2243_v38, %v2005_v56  ;;  %5641 = vpow2.f32 %v4547_v59  ;;  %v9460_v38 = vld [vmem:[#allocation24_spill] sm:$0xff]  ;;  %v2015_v56 = vmul.f32 %v5606_v44, %v9436_v10 }
 0x29e   : > { %v5618_v0 = vpop.eup %5617  ;;  %v4062_v5 = vadd.f32 %v8102_v40, %v3899_v46  ;;  %v3903_v62 = vmul.f32 %v5616_v33, %v9442_v50  ;;  %5643 = vpow2.f32 %v4696_v61  ;;  %9459 = vst [vmem:[#allocation34_spill] sm:$0xff] %v8133_v49  ;;  %v4705_v59 = vmul.f32 -1.442695, %v9460_v38  ;;  %v9462_v40 = vld [vmem:[#allocation49_spill] sm:$0xff] }
 0x29f   : > { %v5620_v25 = vpop.eup %5619  ;;  %v2010_v9 = vmul.f32 %v5618_v0, %v9443_v7  ;;  %5645 = vpow2.f32 %v4562_v36  ;;  %v4567_v50 = vmul.f32 -1.442695, %v9462_v40  ;;  %v9463_v46 = vld [vmem:[#allocation25_spill] sm:$0xff]  ;;  %v2535_v36 = vpop.f32.mrf.mxu1 }
 0x2a0   : > { %v5622_v47 = vpop.eup %5621  ;;  %v4026_v58 = vadd.f32 %v4025_v15, %v3903_v62  ;;  %v3904_v20 = vmul.f32 %v5620_v25, %v9444_v2  ;;  %5647 = vpow2.f32 %v4700_v32  ;;  %v4706_v7 = vmul.f32 -1.442695, %v9463_v46  ;;  %v9465_v25 = vld [vmem:[#allocation51_spill] sm:$0xff] }
 0x2a1   : > { %v5624_v61 = vpop.eup %5623  ;;  %v2245_v21 = vadd.f32 %v2244_v24, %v2010_v9  ;;  %5649 = vpow2.f32 %v4552_v45  ;;  %v4582_v15 = vmul.f32 -1.442695, %v9464_v22  ;;  %v2020_v2 = vmul.f32 %v5614_v27, %v9441_v6  ;;  %v9467_v9 = vld [vmem:[#allocation2_spill] sm:$0xff]  ;;  %v2537_v6 = vpop.f32.mrf.mxu1 }
 0x2a2   : > { %v5626_v33 = vpop.eup %5625  ;;  %v4063_v0 = vadd.f32 %v4062_v5, %v3904_v20  ;;  %v3908_v3 = vmul.f32 %v5624_v61, %v9447_v1  ;;  %5651 = vpow2.f32 %v4701_v51  ;;  %v4710_v49 = vmul.f32 -1.442695, %v9465_v25 }
 0x2a3   : > { %v5628_v62 = vpop.eup %5627  ;;  %v2246_v32 = vadd.f32 %v2245_v21, %v2015_v56  ;;  %5653 = vpow2.f32 %v4577_v39  ;;  %v8150_v24 = vadd.f32 %v2535_v36, %v6498_v52  ;;  %v2025_v1 = vmul.f32 %v5626_v33, %v9449_v19 }
 0x2a4   : > { %v5630_v10 = vpop.eup %5629  ;;  %v4027_v44 = vadd.f32 %v4026_v58, %v3908_v3  ;;  %v3909_v45 = vmul.f32 %v5628_v62, %v9450_v53  ;;  %5655 = vpow2.f32 %v4705_v59  ;;  %v4572_v20 = vmul.f32 -1.442695, %v9467_v9  ;;  %v9468_v58 = vld [vmem:[#allocation27_spill] sm:$0xff]  ;;  %v2539_v62 = vpop.f32.mrf.mxu1 }
 0x2a5   : > { %9466 = vst [vmem:[#allocation35_spill] sm:$0xff] %v8150_v24  ;;  %v5632_v5 = vpop.eup %5631  ;;  %v2247_v51 = vadd.f32 %v2246_v32, %v2020_v2  ;;  %5657 = vpow2.f32 %v4567_v50  ;;  %v4711_v56 = vmul.f32 -1.442695, %v9468_v58  ;;  %v8161_v50 = vadd.f32 %v2537_v6, %v6502_v54 }
 0x2a6   : > { %v5634_v27 = vpop.eup %5633  ;;  %v4064_v39 = vadd.f32 %v4063_v0, %v3909_v45  ;;  %v3913_v61 = vmul.f32 %v5632_v5, %v9452_v34  ;;  %5659 = vpow2.f32 %v4706_v7  ;;  %v2035_v34 = vmul.f32 %v5622_v47, %v9445_v63 }
 0x2a7   : > { %v5636_v53 = vpop.eup %5635  ;;  %v2248_v59 = vadd.f32 %v2247_v51, %v2025_v1  ;;  %v2030_v21 = vmul.f32 %v5634_v27, %v9453_v18  ;;  %5661 = vpow2.f32 %v4582_v15  ;;  %9469 = vst [vmem:[#allocation36_spill] sm:$0xff] %v8161_v50  ;;  %v2582_v15 = vpop.f32.mrf.mxu0  ;;  %v8168_v63 = vadd.f32 %v2539_v62, %v6498_v52 }
 0x2a8   : > { %v5638_v36 = vpop.eup %5637  ;;  %v8157_v3 = vadd.f32 %v4027_v44, %v3913_v61  ;;  %v3914_v19 = vmul.f32 %v5636_v53, %v9454_v12  ;;  %5663 = vpow2.f32 %v4710_v49  ;;  %v2040_v12 = vmul.f32 %v5630_v10, %v9451_v29 }
 0x2a9   : > { %v5640_v33 = vpop.eup %5639  ;;  %v2249_v7 = vadd.f32 %v2248_v59, %v2030_v21  ;;  %v1575_v0 = vadd.f32 1.0, %v5638_v36  ;;  %5665 = vpow2.f32 %v4572_v20  ;;  %9470 = vst [vmem:[#allocation38_spill] sm:$0xff] %v8168_v63 }
 0x2aa   : > { %v5642_v2 = vpop.eup %5641  ;;  %v8164_v32 = vadd.f32 %v4064_v39, %v3914_v19  ;;  %v3438_v18 = vadd.f32 1.0, %v5640_v33  ;;  %5667 = vpow2.f32 %v4711_v56  ;;  %v2584_v39 = vpop.f32.mrf.mxu0 }
 0x2ab   : > { %v5644_v44 = vpop.eup %5643  ;;  %v2250_v49 = vadd.f32 %v2249_v7, %v2035_v34  ;;  %5669 = vrcp.f32 %v1575_v0  ;;  %v1565_v45 = vadd.f32 1.0, %v5642_v2 }
 0x2ac   : > { %v5646_v5 = vpop.eup %5645  ;;  %5671 = vrcp.f32 %v3438_v18  ;;  %v3439_v1 = vadd.f32 1.0, %v5644_v44  ;;  %v2588_v36 = vpop.f32.mrf.mxu0 }
 0x2ad   : > { %v5648_v47 = vpop.eup %5647  ;;  %5673 = vrcp.f32 %v1565_v45  ;;  %v2251_v51 = vadd.f32 %v2250_v49, %v2040_v12  ;;  %v1580_v20 = vadd.f32 1.0, %v5646_v5  ;;  %v9471_v45 = vld [vmem:[#allocation3_spill] sm:$0xff] }
 0x2ae   : > { %v5650_v6 = vpop.eup %5649  ;;  %5675 = vrcp.f32 %v3439_v1  ;;  %v3443_v27 = vadd.f32 1.0, %v5648_v47  ;;  %v2590_v44 = vpop.f32.mrf.mxu0  ;;  %v4715_v5 = vmul.f32 -1.442695, %v9471_v45  ;;  %v9472_v1 = vld [vmem:[#allocation7_spill] sm:$0xff] }
 0x2af   : > { %v5652_v61 = vpop.eup %5651  ;;  %5677 = vrcp.f32 %v1580_v20  ;;  %v1570_v29 = vadd.f32 1.0, %v5650_v6  ;;  %v8172_v47 = vadd.f32 %v2582_v15, %v9472_v1  ;;  %v9477_v15 = vld [vmem:[#allocation17_spill] sm:$0xff] }
 0x2b0   : > { %v5654_v10 = vpop.eup %5653  ;;  %5679 = vrcp.f32 %v3443_v27  ;;  %v3444_v56 = vadd.f32 1.0, %v5652_v61  ;;  %v9473_v27 = vld [vmem:[#allocation11_spill] sm:$0xff] }
 0x2b1   : > { %v5656_v53 = vpop.eup %5655  ;;  %5681 = vrcp.f32 %v1570_v29  ;;  %v1595_v59 = vadd.f32 1.0, %v5654_v10  ;;  %v4637_v61 = vmul.f32 -1.442695, %v9473_v27  ;;  %v9474_v10 = vld [vmem:[#allocation12_spill] sm:$0xff] }
 0x2b2   : > { %v5658_v21 = vpop.eup %5657  ;;  %5683 = vrcp.f32 %v3444_v56  ;;  %v3448_v52 = vadd.f32 1.0, %v5656_v53  ;;  %v4716_v56 = vmul.f32 -1.442695, %v9474_v10  ;;  %v9475_v53 = vld [vmem:[#allocation9_spill] sm:$0xff] }
 0x2b3   : > { %v5660_v19 = vpop.eup %5659  ;;  %5685 = vrcp.f32 %v1595_v59  ;;  %v1585_v33 = vadd.f32 1.0, %v5658_v21  ;;  %v8177_v59 = vadd.f32 %v2584_v39, %v9475_v53 }
 0x2b4   : > { %v5662_v34 = vpop.eup %5661  ;;  %5687 = vrcp.f32 %v3448_v52  ;;  %v3449_v7 = vadd.f32 1.0, %v5660_v19  ;;  %v9476_v19 = vld [vmem:[#allocation13_spill] sm:$0xff] }
 0x2b5   : > { %v5664_v0 = vpop.eup %5663  ;;  %5689 = vrcp.f32 %v1585_v33  ;;  %v1600_v62 = vadd.f32 1.0, %v5662_v34  ;;  %v4638_v33 = vmul.f32 -1.442695, %v9476_v19  ;;  %v4720_v34 = vmul.f32 -1.442695, %v9477_v15 }
 0x2b6   : > { %v5666_v2 = vpop.eup %5665  ;;  %5691 = vrcp.f32 %v3449_v7  ;;  %v3453_v18 = vadd.f32 1.0, %v5664_v0  ;;  %v2592_v7 = vpop.f32.mrf.mxu0  ;;  %v4643_v54 = vmul.f32 -1.442695, %v8177_v59 }
 0x2b7   : > { %v5668_v12 = vpop.eup %5667  ;;  %5693 = vrcp.f32 %v1600_v62  ;;  %v1590_v49 = vadd.f32 1.0, %v5666_v2  ;;  %v4642_v2 = vmul.f32 -1.442695, %v8172_v47 }
 0x2b8   : > { %v5670_v20 = vpop.eup %5669  ;;  %5695 = vrcp.f32 %v3453_v18  ;;  %v3454_v6 = vadd.f32 1.0, %v5668_v12  ;;  %v8185_v18 = vadd.f32 %v2588_v36, %v9472_v1 }
 0x2b9   : > { %v5672_v29 = vpop.eup %5671  ;;  %5697 = vrcp.f32 %v1590_v49  ;;  %v9478_v49 = vld [vmem:[#allocation26_spill] sm:$0xff] }
 0x2ba   : > { %v5674_v21 = vpop.eup %5673  ;;  %v3918_v52 = vmul.f32 %v5672_v29, %v9456_v42  ;;  %5699 = vrcp.f32 %v3454_v6  ;;  %v4721_v6 = vmul.f32 -1.442695, %v9478_v49 }
 0x2bb   : > { %v5676_v0 = vpop.eup %5675  ;;  %v2045_v62 = vmul.f32 %v5674_v21, %v9457_v31  ;;  %5701 = vpow2.f32 %v4715_v5  ;;  %v8192_v31 = vadd.f32 %v2590_v44, %v9475_v53 }
 0x2bc   : > { %v5678_v39 = vpop.eup %5677  ;;  %v4029_v12 = vadd.f32 %v8157_v3, %v3918_v52  ;;  %v3919_v42 = vmul.f32 %v5676_v0, %v9458_v11  ;;  %5703 = vpow2.f32 %v4637_v61  ;;  %v9479_v3 = vld [vmem:[#allocation54_spill] sm:$0xff]  ;;  %v2594_v11 = vpop.f32.mrf.mxu0 }
 0x2bd   : > { %v5680_v29 = vpop.eup %5679  ;;  %v2252_v63 = vadd.f32 %v2251_v51, %v2045_v62  ;;  %5705 = vpow2.f32 %v4716_v56  ;;  %v4725_v52 = vmul.f32 -1.442695, %v9479_v3  ;;  %v4647_v51 = vmul.f32 -1.442695, %v8185_v18  ;;  %v9480_v56 = vld [vmem:[#allocation30_spill] sm:$0xff] }
 0x2be   : > { %v5682_v5 = vpop.eup %5681  ;;  %v4066_v36 = vadd.f32 %v8164_v32, %v3919_v42  ;;  %v3923_v21 = vmul.f32 %v5680_v29, %v7862_v48  ;;  %5707 = vpow2.f32 %v4638_v33  ;;  %v4726_v62 = vmul.f32 -1.442695, %v9480_v56 }
 0x2bf   : > { %v5684_v61 = vpop.eup %5683  ;;  %v2050_v0 = vmul.f32 %v5682_v5, %v7870_v55  ;;  %5709 = vpow2.f32 %v4720_v34  ;;  %v8202_v32 = vadd.f32 %v2592_v7, %v9472_v1  ;;  %v2055_v33 = vmul.f32 %v5670_v20, %v9455_v41  ;;  %v9481_v41 = vld [vmem:[#allocation18_spill] sm:$0xff] }
 0x2c0   : > { %v5686_v50 = vpop.eup %5685  ;;  %v4030_v44 = vadd.f32 %v4029_v12, %v3923_v21  ;;  %v3924_v24 = vmul.f32 %v5684_v61, %v7874_v16  ;;  %5711 = vpow2.f32 %v4642_v2  ;;  %v4648_v55 = vmul.f32 -1.442695, %v8192_v31  ;;  %v8210_v16 = vpop.f32.mrf.mxu0 }
 0x2c1   : > { %v5688_v48 = vpop.eup %5687  ;;  %v2253_v42 = vadd.f32 %v2252_v63, %v2050_v0  ;;  %5713 = vpow2.f32 %v4721_v6  ;;  %v8208_v12 = vadd.f32 %v2594_v11, %v9475_v53  ;;  %v2060_v7 = vmul.f32 %v5678_v39, %v7858_v26  ;;  %v9482_v11 = vld [vmem:[#allocation32_spill] sm:$0xff] }
 0x2c2   : > { %v5690_v34 = vpop.eup %5689  ;;  %v4067_v29 = vadd.f32 %v4066_v36, %v3924_v24  ;;  %v3928_v5 = vmul.f32 %v5688_v48, %v9460_v38  ;;  %5715 = vpow2.f32 %v4643_v54  ;;  %v4730_v63 = vmul.f32 -1.442695, %v9481_v41 }
 0x2c3   : > { %v5692_v2 = vpop.eup %5691  ;;  %v2254_v21 = vadd.f32 %v2253_v42, %v2055_v33  ;;  %5717 = vpow2.f32 %v4725_v52  ;;  %v4652_v38 = vmul.f32 -1.442695, %v8202_v32  ;;  %v2065_v24 = vmul.f32 %v5690_v34, %v9462_v40 }
 0x2c4   : > { %v5694_v20 = vpop.eup %5693  ;;  %v4031_v6 = vadd.f32 %v4030_v44, %v3928_v5  ;;  %v3929_v61 = vmul.f32 %v5692_v2, %v9463_v46  ;;  %5719 = vpow2.f32 %v4647_v51  ;;  %v4731_v0 = vmul.f32 -1.442695, %v9482_v11  ;;  %v2600_v44 = vpop.f32.mrf.mxu0 }
 0x2c5   : > { %v5696_v54 = vpop.eup %5695  ;;  %v2255_v36 = vadd.f32 %v2254_v21, %v2060_v7  ;;  %5721 = vpow2.f32 %v4726_v62  ;;  %v4653_v52 = vmul.f32 -1.442695, %v8208_v12  ;;  %v2075_v34 = vmul.f32 %v5686_v50, %v7882_v57 }
 0x2c6   : > { %v5698_v48 = vpop.eup %5697  ;;  %v4068_v26 = vadd.f32 %v4067_v29, %v3929_v61  ;;  %v3933_v39 = vmul.f32 %v5696_v54, %v9465_v25  ;;  %5723 = vpow2.f32 %v4648_v55  ;;  %v2602_v21 = vpop.f32.mrf.mxu0 }
 0x2c7   : > { %v5700_v33 = vpop.eup %5699  ;;  %v2256_v46 = vadd.f32 %v2255_v36, %v2065_v24  ;;  %v2070_v51 = vmul.f32 %v5698_v48, %v9467_v9  ;;  %5725 = vpow2.f32 %v4730_v63  ;;  %v2080_v63 = vmul.f32 %v5694_v20, %v9464_v22 }
 0x2c8   : > { %v5702_v42 = vpop.eup %5701  ;;  %v8221_v5 = vadd.f32 %v4031_v6, %v3933_v39  ;;  %v3934_v40 = vmul.f32 %v5700_v33, %v9468_v58  ;;  %5727 = vpow2.f32 %v4652_v38 }
 0x2c9   : > { %v5704_v62 = vpop.eup %5703  ;;  %v2257_v29 = vadd.f32 %v2256_v46, %v2070_v51  ;;  %v3458_v25 = vadd.f32 1.0, %v5702_v42  ;;  %5729 = vpow2.f32 %v4731_v0  ;;  %v2604_v0 = vpop.f32.mrf.mxu0 }
 0x2ca   : > { %v5706_v55 = vpop.eup %5705  ;;  %v8225_v2 = vadd.f32 %v4068_v26, %v3934_v40  ;;  %v3380_v7 = vadd.f32 1.0, %v5704_v62  ;;  %5731 = vpow2.f32 %v4653_v52 }
 0x2cb   : > { %v5708_v9 = vpop.eup %5707  ;;  %v2258_v6 = vadd.f32 %v2257_v29, %v2075_v34  ;;  %5733 = vrcp.f32 %v3458_v25  ;;  %v3459_v61 = vadd.f32 1.0, %v5706_v55  ;;  %v2608_v51 = vpop.f32.mrf.mxu0  ;;  %v8232_v29 = vadd.f32 %v8210_v16, %v9472_v1 }
 0x2cc   : > { %v5710_v58 = vpop.eup %5709  ;;  %5735 = vrcp.f32 %v3380_v7  ;;  %v3381_v38 = vadd.f32 1.0, %v5708_v9 }
 0x2cd   : > { %v5712_v54 = vpop.eup %5711  ;;  %v8228_v57 = vadd.f32 %v2258_v6, %v2080_v63  ;;  %5737 = vrcp.f32 %v3459_v61  ;;  %v3463_v50 = vadd.f32 1.0, %v5710_v58  ;;  %v8235_v63 = vadd.f32 %v2600_v44, %v9475_v53  ;;  %v2610_v61 = vpop.f32.mrf.mxu0 }
 0x2ce   : > { %v5714_v24 = vpop.eup %5713  ;;  %5739 = vrcp.f32 %v3381_v38  ;;  %v3385_v36 = vadd.f32 1.0, %v5712_v54  ;;  %v8238_v6 = vadd.f32 %v2602_v21, %v9472_v1  ;;  %v9483_v54 = vld [vmem:[#allocation10_spill] sm:$0xff]  ;;  %v4736_v21 = vmul.f32 -1.442695, %v8006_v14 }
 0x2cf   : > { %v5716_v48 = vpop.eup %5715  ;;  %5741 = vrcp.f32 %v3463_v50  ;;  %v3464_v26 = vadd.f32 1.0, %v5714_v24  ;;  %v4735_v50 = vmul.f32 -1.442695, %v9483_v54 }
 0x2d0   : > { %v5718_v39 = vpop.eup %5717  ;;  %5743 = vrcp.f32 %v3385_v36  ;;  %v3386_v22 = vadd.f32 1.0, %v5716_v48  ;;  %v4657_v36 = vmul.f32 -1.442695, %v8232_v29  ;;  %v8243_v48 = vadd.f32 %v2604_v0, %v9475_v53 }
 0x2d1   : > { %v5720_v20 = vpop.eup %5719  ;;  %5745 = vrcp.f32 %v3464_v26  ;;  %v3468_v52 = vadd.f32 1.0, %v5718_v39  ;;  %v8248_v39 = vadd.f32 %v2608_v51, %v9472_v1 }
 0x2d2   : > { %v5722_v33 = vpop.eup %5721  ;;  %5747 = vrcp.f32 %v3386_v22  ;;  %v3390_v46 = vadd.f32 1.0, %v5720_v20  ;;  %v4658_v20 = vmul.f32 -1.442695, %v8235_v63  ;;  %v4663_v51 = vmul.f32 -1.442695, %v8243_v48 }
 0x2d3   : > { %v5724_v42 = vpop.eup %5723  ;;  %5749 = vrcp.f32 %v3468_v52  ;;  %v3469_v40 = vadd.f32 1.0, %v5722_v33  ;;  %v4740_v52 = vmul.f32 -1.442695, %v8011_v17  ;;  %v4662_v33 = vmul.f32 -1.442695, %v8238_v6 }
 0x2d4   : > { %v5726_v62 = vpop.eup %5725  ;;  %5751 = vrcp.f32 %v3390_v46  ;;  %v3391_v34 = vadd.f32 1.0, %v5724_v42  ;;  %v2612_v46 = vpop.f32.mrf.mxu0 }
 0x2d5   : > { %v5728_v25 = vpop.eup %5727  ;;  %5753 = vrcp.f32 %v3469_v40  ;;  %v3473_v55 = vadd.f32 1.0, %v5726_v62  ;;  %v4741_v40 = vmul.f32 -1.442695, %v8023_v13 }
 0x2d6   : > { %v5730_v7 = vpop.eup %5729  ;;  %5755 = vrcp.f32 %v3391_v34  ;;  %v3395_v9 = vadd.f32 1.0, %v5728_v25  ;;  %v4745_v34 = vmul.f32 -1.442695, %v8034_v28  ;;  %v8259_v25 = vadd.f32 %v2610_v61, %v9475_v53 }
 0x2d7   : > { %v5732_v58 = vpop.eup %5731  ;;  %5757 = vrcp.f32 %v3473_v55  ;;  %v3474_v38 = vadd.f32 1.0, %v5730_v7 }
 0x2d8   : > { %v5734_v16 = vpop.eup %5733  ;;  %5759 = vrcp.f32 %v3395_v9  ;;  %v3396_v24 = vadd.f32 1.0, %v5732_v58 }
 0x2d9   : > { %v5736_v26 = vpop.eup %5735  ;;  %v3938_v44 = vmul.f32 %v5734_v16, %v9471_v45  ;;  %5761 = vrcp.f32 %v3474_v38  ;;  %v2614_v16 = vpop.f32.mrf.mxu0 }
 0x2da   : > { %v5738_v22 = vpop.eup %5737  ;;  %5763 = vrcp.f32 %v3396_v24  ;;  %v3860_v58 = vmul.f32 %v5736_v26, %v9473_v27 }
 0x2db   : > { %v5740_v0 = vpop.eup %5739  ;;  %v4033_v42 = vadd.f32 %v8221_v5, %v3938_v44  ;;  %v3939_v45 = vmul.f32 %v5738_v22, %v9474_v10  ;;  %5765 = vpow2.f32 %v4735_v50  ;;  %v4667_v10 = vmul.f32 -1.442695, %v8248_v39 }
 0x2dc   : > { %v5742_v62 = vpop.eup %5741  ;;  %5767 = vpow2.f32 %v4657_v36  ;;  %v4746_v50 = vmul.f32 -1.442695, %v8041_v37  ;;  %v3861_v44 = vmul.f32 %v5740_v0, %v9476_v19  ;;  %v8279_v19 = vpop.f32.mrf.mxu0 }
 0x2dd   : > { %v5744_v55 = vpop.eup %5743  ;;  %v4070_v7 = vadd.f32 %v8225_v2, %v3939_v45  ;;  %v3943_v9 = vmul.f32 %v5742_v62, %v9477_v15  ;;  %5769 = vpow2.f32 %v4736_v21  ;;  %v8269_v2 = vadd.f32 %v2612_v46, %v9472_v1 }
 0x2de   : > { %v5746_v5 = vpop.eup %5745  ;;  %v3865_v38 = vmul.f32 %v5744_v55, %v8172_v47  ;;  %5771 = vpow2.f32 %v4658_v20  ;;  %v4668_v20 = vmul.f32 -1.442695, %v8259_v25  ;;  %v8277_v46 = vadd.f32 %v2614_v16, %v9475_v53  ;;  %v2620_v16 = vpop.f32.mrf.mxu0 }
 0x2df   : > { %v5748_v24 = vpop.eup %5747  ;;  %v4034_v61 = vadd.f32 %v4033_v42, %v3943_v9  ;;  %v3944_v36 = vmul.f32 %v5746_v5, %v9478_v49  ;;  %5773 = vpow2.f32 %v4740_v52  ;;  %v9484_v9 = vld [vmem:[#allocation4_spill] sm:$0xff] }
 0x2e0   : > { %v5750_v15 = vpop.eup %5749  ;;  %v4092_v21 = vadd.f32 %v3865_v38, %v3860_v58  ;;  %v3866_v27 = vmul.f32 %v5748_v24, %v8177_v59  ;;  %5775 = vpow2.f32 %v4662_v33  ;;  %v4751_v5 = vmul.f32 -1.442695, %v9484_v9 }
 0x2e1   : > { %v5752_v47 = vpop.eup %5751  ;;  %v4071_v26 = vadd.f32 %v4070_v7, %v3944_v36  ;;  %v3948_v22 = vmul.f32 %v5750_v15, %v9479_v3  ;;  %5777 = vpow2.f32 %v4741_v40  ;;  %v4750_v3 = vmul.f32 -1.442695, %v8044_v8 }
 0x2e2   : > { %v5754_v42 = vpop.eup %5753  ;;  %v4129_v49 = vadd.f32 %v3866_v27, %v3861_v44  ;;  %v3870_v52 = vmul.f32 %v5752_v47, %v8185_v18  ;;  %5779 = vpow2.f32 %v4663_v51  ;;  %v4672_v18 = vmul.f32 -1.442695, %v8269_v2  ;;  %v2622_v47 = vpop.f32.mrf.mxu0 }
 0x2e3   : > { %v5756_v0 = vpop.eup %5755  ;;  %v4035_v59 = vadd.f32 %v4034_v61, %v3948_v22  ;;  %v3949_v33 = vmul.f32 %v5754_v42, %v9480_v56  ;;  %5781 = vpow2.f32 %v4745_v34  ;;  %v4673_v34 = vmul.f32 -1.442695, %v8277_v46 }
 0x2e4   : > { %v5758_v45 = vpop.eup %5757  ;;  %v4093_v40 = vadd.f32 %v4092_v21, %v3870_v52  ;;  %v3871_v62 = vmul.f32 %v5756_v0, %v8192_v31  ;;  %5783 = vpow2.f32 %v4667_v10  ;;  %v2624_v0 = vpop.f32.mrf.mxu0 }
 0x2e5   : > { %v5760_v51 = vpop.eup %5759  ;;  %v4072_v55 = vadd.f32 %v4071_v26, %v3949_v33  ;;  %v3953_v7 = vmul.f32 %v5758_v45, %v9481_v41  ;;  %5785 = vpow2.f32 %v4746_v50 }
 0x2e6   : > { %v5762_v58 = vpop.eup %5761  ;;  %v4130_v38 = vadd.f32 %v4129_v49, %v3871_v62  ;;  %v3875_v56 = vmul.f32 %v5760_v51, %v8202_v32  ;;  %5787 = vpow2.f32 %v4668_v20 }
 0x2e7   : > { %v5764_v24 = vpop.eup %5763  ;;  %v8289_v31 = vadd.f32 %v4035_v59, %v3953_v7  ;;  %v3954_v10 = vmul.f32 %v5762_v58, %v9482_v11  ;;  %5789 = vpow2.f32 %v4750_v3  ;;  %v8301_v58 = vadd.f32 %v8279_v19, %v9472_v1 }
 0x2e8   : > { %v5766_v61 = vpop.eup %5765  ;;  %v8292_v36 = vadd.f32 %v4093_v40, %v3875_v56  ;;  %v3876_v41 = vmul.f32 %v5764_v24, %v8208_v12  ;;  %5791 = vpow2.f32 %v4672_v18 }
 0x2e9   : > { %v5768_v50 = vpop.eup %5767  ;;  %v8295_v15 = vadd.f32 %v4072_v55, %v3954_v10  ;;  %v3478_v32 = vadd.f32 1.0, %v5766_v61  ;;  %5793 = vpow2.f32 %v4751_v5  ;;  %v2628_v55 = vpop.f32.mrf.mxu0  ;;  %v8307_v61 = vadd.f32 %v2622_v47, %v9472_v1 }
 0x2ea   : > { %v5770_v44 = vpop.eup %5769  ;;  %v8297_v21 = vadd.f32 %v4130_v38, %v3876_v41  ;;  %v3400_v27 = vadd.f32 1.0, %v5768_v50  ;;  %5795 = vpow2.f32 %v4673_v34  ;;  %v8304_v34 = vadd.f32 %v2620_v16, %v9475_v53 }
 0x2eb   : > { %v5772_v26 = vpop.eup %5771  ;;  %5797 = vrcp.f32 %v3478_v32  ;;  %v3479_v11 = vadd.f32 1.0, %v5770_v44  ;;  %v9485_v32 = vld [vmem:[#allocation33_spill] sm:$0xff]  ;;  %v8312_v16 = vadd.f32 %v2624_v0, %v9475_v53  ;;  %v9488_v0 = vld [vmem:[#allocation20_spill] sm:$0xff] }
 0x2ec   : > { %v5774_v22 = vpop.eup %5773  ;;  %5799 = vrcp.f32 %v3400_v27  ;;  %v3401_v20 = vadd.f32 1.0, %v5772_v26  ;;  %v4755_v44 = vmul.f32 -1.442695, %v9485_v32  ;;  %v2630_v27 = vpop.f32.mrf.mxu0 }
 0x2ed   : > { %v5776_v42 = vpop.eup %5775  ;;  %5801 = vrcp.f32 %v3479_v11  ;;  %v3483_v12 = vadd.f32 1.0, %v5774_v22  ;;  %v4677_v11 = vmul.f32 -1.442695, %v8301_v58 }
 0x2ee   : > { %v5778_v49 = vpop.eup %5777  ;;  %5803 = vrcp.f32 %v3401_v20  ;;  %v3405_v52 = vadd.f32 1.0, %v5776_v42  ;;  %v9486_v42 = vld [vmem:[#allocation19_spill] sm:$0xff] }
 0x2ef   : > { %v5780_v59 = vpop.eup %5779  ;;  %5805 = vrcp.f32 %v3483_v12  ;;  %v3484_v33 = vadd.f32 1.0, %v5778_v49  ;;  %v4756_v47 = vmul.f32 -1.442695, %v9486_v42  ;;  %v4678_v12 = vmul.f32 -1.442695, %v8304_v34 }
 0x2f0   : > { %v5782_v3 = vpop.eup %5781  ;;  %5807 = vrcp.f32 %v3405_v52  ;;  %v3406_v45 = vadd.f32 1.0, %v5780_v59  ;;  %v9487_v59 = vld [vmem:[#allocation5_spill] sm:$0xff] }
 0x2f1   : > { %v5784_v40 = vpop.eup %5783  ;;  %5809 = vrcp.f32 %v3484_v33  ;;  %v3488_v62 = vadd.f32 1.0, %v5782_v3  ;;  %v4760_v33 = vmul.f32 -1.442695, %v9487_v59  ;;  %v4682_v3 = vmul.f32 -1.442695, %v8307_v61 }
 0x2f2   : > { %v5786_v18 = vpop.eup %5785  ;;  %5811 = vrcp.f32 %v3406_v45  ;;  %v3410_v51 = vadd.f32 1.0, %v5784_v40 }
 0x2f3   : > { %v5788_v7 = vpop.eup %5787  ;;  %5813 = vrcp.f32 %v3488_v62  ;;  %v3489_v5 = vadd.f32 1.0, %v5786_v18  ;;  %v4761_v62 = vmul.f32 -1.442695, %v9488_v0  ;;  %v8322_v18 = vadd.f32 %v2628_v55, %v9472_v1 }
 0x2f4   : > { %v5790_v38 = vpop.eup %5789  ;;  %5815 = vrcp.f32 %v3410_v51  ;;  %v3411_v56 = vadd.f32 1.0, %v5788_v7  ;;  %v2632_v51 = vpop.f32.mrf.mxu0 }
 0x2f5   : > { %v5792_v24 = vpop.eup %5791  ;;  %5817 = vrcp.f32 %v3489_v5  ;;  %v3493_v10 = vadd.f32 1.0, %v5790_v38  ;;  %v4683_v38 = vmul.f32 -1.442695, %v8312_v16 }
 0x2f6   : > { %v5794_v41 = vpop.eup %5793  ;;  %5819 = vrcp.f32 %v3411_v56  ;;  %v3415_v50 = vadd.f32 1.0, %v5792_v24 }
 0x2f7   : > { %v5796_v19 = vpop.eup %5795  ;;  %5821 = vrcp.f32 %v3493_v10  ;;  %v3494_v26 = vadd.f32 1.0, %v5794_v41  ;;  %v4765_v10 = vmul.f32 -1.442695, %v8088_v35 }
 0x2f8   : > { %v5798_v22 = vpop.eup %5797  ;;  %5823 = vrcp.f32 %v3415_v50  ;;  %v3416_v20 = vadd.f32 1.0, %v5796_v19 }
 0x2f9   : > { %v5800_v49 = vpop.eup %5799  ;;  %v3958_v52 = vmul.f32 %v5798_v22, %v9483_v54  ;;  %5825 = vrcp.f32 %v3494_v26 }
 0x2fa   : > { %v5802_v45 = vpop.eup %5801  ;;  %v3880_v40 = vmul.f32 %v5800_v49, %v8232_v29  ;;  %5827 = vrcp.f32 %v3416_v20 }
 0x2fb   : > { %v5804_v7 = vpop.eup %5803  ;;  %v4037_v5 = vadd.f32 %v8289_v31, %v3958_v52  ;;  %v3959_v54 = vmul.f32 %v5802_v45, %v8006_v14  ;;  %5829 = vpow2.f32 %v4755_v44  ;;  %v8333_v31 = vadd.f32 %v2630_v27, %v9475_v53 }
 0x2fc   : > { %v5806_v56 = vpop.eup %5805  ;;  %v4095_v24 = vadd.f32 %v8292_v36, %v3880_v40  ;;  %v3881_v29 = vmul.f32 %v5804_v7, %v8235_v63  ;;  %5831 = vpow2.f32 %v4677_v11  ;;  %v4687_v63 = vmul.f32 -1.442695, %v8322_v18  ;;  %v2634_v36 = vpop.f32.mrf.mxu0 }
 0x2fd   : > { %v5808_v41 = vpop.eup %5807  ;;  %v4074_v55 = vadd.f32 %v8295_v15, %v3959_v54  ;;  %v3963_v50 = vmul.f32 %v5806_v56, %v8011_v17  ;;  %5833 = vpow2.f32 %v4756_v47  ;;  %v4766_v17 = vmul.f32 -1.442695, %v8099_v23 }
 0x2fe   : > { %v5810_v14 = vpop.eup %5809  ;;  %v4132_v44 = vadd.f32 %v8297_v21, %v3881_v29  ;;  %v3885_v19 = vmul.f32 %v5808_v41, %v8238_v6  ;;  %5835 = vpow2.f32 %v4678_v12  ;;  %v8342_v21 = vadd.f32 %v2632_v51, %v9472_v1 }
 0x2ff   : > { %v5812_v26 = vpop.eup %5811  ;;  %v4038_v11 = vadd.f32 %v4037_v5, %v3963_v50  ;;  %v3964_v22 = vmul.f32 %v5810_v14, %v8023_v13  ;;  %5837 = vpow2.f32 %v4760_v33  ;;  %v4688_v49 = vmul.f32 -1.442695, %v8333_v31 }
 0x300   : > { %v5814_v15 = vpop.eup %5813  ;;  %v4096_v20 = vadd.f32 %v4095_v24, %v3885_v19  ;;  %v3886_v27 = vmul.f32 %v5812_v26, %v8243_v48  ;;  %5839 = vpow2.f32 %v4682_v3  ;;  %v8348_v45 = vadd.f32 %v2634_v36, %v9475_v53  ;;  %v8350_v48 = vpop.f32.mrf.mxu0 }
 0x301   : > { %v5816_v6 = vpop.eup %5815  ;;  %v4075_v47 = vadd.f32 %v4074_v55, %v3964_v22  ;;  %v3968_v12 = vmul.f32 %v5814_v15, %v8034_v28  ;;  %5841 = vpow2.f32 %v4761_v62  ;;  %v4770_v28 = vmul.f32 -1.442695, %v8106_v4 }
 0x302   : > { %v5818_v52 = vpop.eup %5817  ;;  %v4133_v13 = vadd.f32 %v4132_v44, %v3886_v27  ;;  %v3890_v33 = vmul.f32 %v5816_v6, %v8248_v39  ;;  %5843 = vpow2.f32 %v4683_v38  ;;  %v4692_v39 = vmul.f32 -1.442695, %v8342_v21  ;;  %v2640_v55 = vpop.f32.mrf.mxu0 }
 0x303   : > { %v5820_v3 = vpop.eup %5819  ;;  %v4039_v40 = vadd.f32 %v4038_v11, %v3968_v12  ;;  %v3969_v51 = vmul.f32 %v5818_v52, %v8041_v37  ;;  %5845 = vpow2.f32 %v4765_v10  ;;  %v4771_v24 = vmul.f32 -1.442695, %v8109_v43 }
 0x304   : > { %v5822_v62 = vpop.eup %5821  ;;  %v4097_v7 = vadd.f32 %v4096_v20, %v3890_v33  ;;  %v3891_v5 = vmul.f32 %v5820_v3, %v8259_v25  ;;  %5847 = vpow2.f32 %v4687_v63  ;;  %v4693_v10 = vmul.f32 -1.442695, %v8348_v45 }
 0x305   : > { %v5824_v54 = vpop.eup %5823  ;;  %v4076_v38 = vadd.f32 %v4075_v47, %v3969_v51  ;;  %v3973_v56 = vmul.f32 %v5822_v62, %v8044_v8  ;;  %5849 = vpow2.f32 %v4766_v17  ;;  %v2642_v17 = vpop.f32.mrf.mxu0 }
 0x306   : > { %v5826_v29 = vpop.eup %5825  ;;  %v4134_v41 = vadd.f32 %v4133_v13, %v3891_v5  ;;  %v3895_v37 = vmul.f32 %v5824_v54, %v8269_v2  ;;  %5851 = vpow2.f32 %v4688_v49  ;;  %v8372_v54 = vadd.f32 %v8350_v48, %v9472_v1 }
 0x307   : > { %v5828_v50 = vpop.eup %5827  ;;  %v8360_v25 = vadd.f32 %v4039_v40, %v3973_v56  ;;  %v3974_v14 = vmul.f32 %v5826_v29, %v9484_v9  ;;  %5853 = vpow2.f32 %v4770_v28  ;;  %v2644_v49 = vpop.f32.mrf.mxu0  ;;  %v4775_v48 = vmul.f32 -1.442695, %v8112_v30 }
 0x308   : > { %v5830_v44 = vpop.eup %5829  ;;  %v8363_v19 = vadd.f32 %v4097_v7, %v3895_v37  ;;  %v3896_v8 = vmul.f32 %v5828_v50, %v8277_v46  ;;  %5855 = vpow2.f32 %v4692_v39  ;;  %v8379_v50 = vadd.f32 %v2642_v17, %v9472_v1 }
 0x309   : > { %v5832_v63 = vpop.eup %5831  ;;  %v8366_v36 = vadd.f32 %v4076_v38, %v3974_v14  ;;  %v3498_v2 = vadd.f32 1.0, %v5830_v44  ;;  %5857 = vpow2.f32 %v4771_v24  ;;  %v2648_v7 = vpop.f32.mrf.mxu0  ;;  %v8375_v24 = vadd.f32 %v2640_v55, %v9475_v53 }
 0x30a   : > { %v5834_v26 = vpop.eup %5833  ;;  %v8368_v11 = vadd.f32 %v4134_v41, %v3896_v8  ;;  %v3420_v22 = vadd.f32 1.0, %v5832_v63  ;;  %5859 = vpow2.f32 %v4693_v10  ;;  %v9489_v41 = vld [vmem:[#allocation55_spill] sm:$0xff]  ;;  %v8383_v8 = vadd.f32 %v2644_v49, %v9475_v53 }
 0x30b   : > { %v5836_v15 = vpop.eup %5835  ;;  %5861 = vrcp.f32 %v3498_v2  ;;  %v3499_v9 = vadd.f32 1.0, %v5834_v26  ;;  %v2112_v37 = vrot.slane %v9489_v41, 4  ;;  %v2650_v63 = vpop.f32.mrf.mxu0  ;;  %v4697_v26 = vmul.f32 -1.442695, %v8372_v54 }
 0x30c   : > { %v5838_v20 = vpop.eup %5837  ;;  %5863 = vrcp.f32 %v3420_v22  ;;  %v3421_v27 = vadd.f32 1.0, %v5836_v15  ;;  %v4776_v22 = vmul.f32 -1.442695, %v8120_v60 }
 0x30d   : > { %v5840_v6 = vpop.eup %5839  ;;  %5865 = vrcp.f32 %v3499_v9  ;;  %v3503_v46 = vadd.f32 1.0, %v5838_v20  ;;  %v4698_v9 = vmul.f32 -1.442695, %v8375_v24  ;;  %v9490_v20 = vld [vmem:[#allocation34_spill] sm:$0xff] }
 0x30e   : > { %v5842_v47 = vpop.eup %5841  ;;  %5867 = vrcp.f32 %v3421_v27  ;;  %v3425_v12 = vadd.f32 1.0, %v5840_v6  ;;  %v4780_v27 = vmul.f32 -1.442695, %v9490_v20 }
 0x30f   : > { %v5844_v52 = vpop.eup %5843  ;;  %5869 = vrcp.f32 %v3503_v46  ;;  %v3504_v13 = vadd.f32 1.0, %v5842_v47  ;;  %v4702_v47 = vmul.f32 -1.442695, %v8379_v50 }
 0x310   : > { %v5846_v33 = vpop.eup %5845  ;;  %5871 = vrcp.f32 %v3425_v12  ;;  %v3426_v3 = vadd.f32 1.0, %v5844_v52  ;;  %v8392_v12 = vadd.f32 %v2648_v7, %v9472_v1 }
 0x311   : > { %v5848_v40 = vpop.eup %5847  ;;  %5873 = vrcp.f32 %v3504_v13  ;;  %v3508_v51 = vadd.f32 1.0, %v5846_v33  ;;  %v9491_v13 = vld [vmem:[#allocation21_spill] sm:$0xff] }
 0x312   : > { %v5850_v28 = vpop.eup %5849  ;;  %5875 = vrcp.f32 %v3426_v3  ;;  %v3430_v62 = vadd.f32 1.0, %v5848_v40  ;;  %v4781_v33 = vmul.f32 -1.442695, %v9491_v13  ;;  %v4703_v3 = vmul.f32 -1.442695, %v8383_v8  ;;  %v2652_v40 = vpop.f32.mrf.mxu0 }
 0x313   : > { %v5852_v5 = vpop.eup %5851  ;;  %5877 = vrcp.f32 %v3508_v51  ;;  %v3509_v39 = vadd.f32 1.0, %v5850_v28 }
 0x314   : > { %v5854_v38 = vpop.eup %5853  ;;  %5879 = vrcp.f32 %v3430_v62  ;;  %v3431_v56 = vadd.f32 1.0, %v5852_v5  ;;  %v9492_v62 = vld [vmem:[#allocation35_spill] sm:$0xff] }
 0x315   : > { %v5856_v29 = vpop.eup %5855  ;;  %5881 = vrcp.f32 %v3509_v39  ;;  %v3513_v10 = vadd.f32 1.0, %v5854_v38  ;;  %v4785_v5 = vmul.f32 -1.442695, %v9492_v62 }
 0x316   : > { %v5858_v14 = vpop.eup %5857  ;;  %5883 = vrcp.f32 %v3431_v56  ;;  %v3435_v44 = vadd.f32 1.0, %v5856_v29 }
 0x317   : > { %v5860_v2 = vpop.eup %5859  ;;  %5885 = vrcp.f32 %v3513_v10  ;;  %v3514_v55 = vadd.f32 1.0, %v5858_v14 }
 0x318   : > { %v5862_v15 = vpop.eup %5861  ;;  %5887 = vrcp.f32 %v3435_v44  ;;  %v3436_v17 = vadd.f32 1.0, %v5860_v2  ;;  %v2654_v2 = vpop.f32.mrf.mxu0 }
 0x319   : > { %v5864_v6 = vpop.eup %5863  ;;  %v3978_v46 = vmul.f32 %v5862_v15, %v9485_v32  ;;  %5889 = vrcp.f32 %v3514_v55 }
 0x31a   : > { %v5866_v49 = vpop.eup %5865  ;;  %v3900_v52 = vmul.f32 %v5864_v6, %v8301_v58  ;;  %5891 = vrcp.f32 %v3436_v17  ;;  %v8403_v58 = vadd.f32 %v2650_v63, %v9475_v53  ;;  %v9494_v6 = vld [vmem:[#allocation8_spill] sm:$0xff] }
 0x31b   : > { %v5868_v51 = vpop.eup %5867  ;;  %v4041_v28 = vadd.f32 %v8360_v25, %v3978_v46  ;;  %v3979_v32 = vmul.f32 %v5866_v49, %v9486_v42  ;;  %5893 = vpow2.f32 %v4775_v48  ;;  %v4707_v42 = vmul.f32 -1.442695, %v8392_v12  ;;  %v2541_v48 = vpop.f32.mrf.mxu1 }
 0x31c   : > { %v5870_v39 = vpop.eup %5869  ;;  %v4099_v7 = vadd.f32 %v8363_v19, %v3900_v52  ;;  %v3901_v38 = vmul.f32 %v5868_v51, %v8304_v34  ;;  %5895 = vpow2.f32 %v4697_v26  ;;  %v9493_v19 = vld [vmem:[#allocation36_spill] sm:$0xff]  ;;  %v8419_v46 = vadd.f32 %v2541_v48, %v9494_v6 }
 0x31d   : > { %v5872_v56 = vpop.eup %5871  ;;  %v4078_v29 = vadd.f32 %v8366_v36, %v3979_v32  ;;  %v3983_v10 = vmul.f32 %v5870_v39, %v9487_v59  ;;  %5897 = vpow2.f32 %v4776_v22  ;;  %v4786_v34 = vmul.f32 -1.442695, %v9493_v19 }
 0x31e   : > { %v5874_v25 = vpop.eup %5873  ;;  %v4136_v14 = vadd.f32 %v8368_v11, %v3901_v38  ;;  %v3905_v44 = vmul.f32 %v5872_v56, %v8307_v61  ;;  %5899 = vpow2.f32 %v4698_v9  ;;  %v8413_v59 = vadd.f32 %v2652_v40, %v9472_v1 }
 0x31f   : > { %v5876_v63 = vpop.eup %5875  ;;  %v4042_v55 = vadd.f32 %v4041_v28, %v3983_v10  ;;  %v3984_v26 = vmul.f32 %v5874_v25, %v9488_v0  ;;  %5901 = vpow2.f32 %v4780_v27  ;;  %v4708_v61 = vmul.f32 -1.442695, %v8403_v58  ;;  %v9495_v28 = vld [vmem:[#allocation38_spill] sm:$0xff] }
 0x320   : > { %v5878_v36 = vpop.eup %5877  ;;  %v4100_v22 = vadd.f32 %v4099_v7, %v3905_v44  ;;  %v3906_v15 = vmul.f32 %v5876_v63, %v8312_v16  ;;  %5903 = vpow2.f32 %v4702_v47  ;;  %v8423_v52 = vadd.f32 %v2654_v2, %v9475_v53  ;;  %v2658_v16 = vpop.f32.mrf.mxu0 }
 0x321   : > { %v5880_v11 = vpop.eup %5879  ;;  %v4079_v17 = vadd.f32 %v4078_v29, %v3984_v26  ;;  %v3988_v9 = vmul.f32 %v5878_v36, %v8088_v35  ;;  %5905 = vpow2.f32 %v4781_v33  ;;  %v4790_v35 = vmul.f32 -1.442695, %v9495_v28  ;;  %v4869_v33 = vpop.f32.mrf.mxu1 }
 0x322   : > { %v5882_v0 = vpop.eup %5881  ;;  %v4137_v27 = vadd.f32 %v4136_v14, %v3906_v15  ;;  %v3910_v49 = vmul.f32 %v5880_v11, %v8322_v18  ;;  %5907 = vpow2.f32 %v4703_v3  ;;  %v4712_v18 = vmul.f32 -1.442695, %v8413_v59  ;;  %v2660_v14 = vpop.f32.mrf.mxu0 }
 0x323   : > { %v5884_v47 = vpop.eup %5883  ;;  %v4043_v40 = vadd.f32 %v4042_v55, %v3988_v9  ;;  %v3989_v51 = vmul.f32 %v5882_v0, %v8099_v23  ;;  %5909 = vpow2.f32 %v4785_v5  ;;  %v4791_v29 = vmul.f32 -1.442695, %v8419_v46  ;;  %v2771_v48 = vpop.f32.mrf.mxu1 }
 0x324   : > { %v5886_v32 = vpop.eup %5885  ;;  %v4101_v39 = vadd.f32 %v4100_v22, %v3910_v49  ;;  %v3911_v7 = vmul.f32 %v5884_v47, %v8333_v31  ;;  %5911 = vpow2.f32 %v4707_v42  ;;  %v4713_v25 = vmul.f32 -1.442695, %v8423_v52  ;;  %v9496_v22 = vld [vmem:[#allocation53_spill] sm:$0xff]  ;;  %v2662_v11 = vpop.f32.mrf.mxu0 }
 0x325   : > { %v5888_v3 = vpop.eup %5887  ;;  %v4080_v38 = vadd.f32 %v4079_v17, %v3989_v51  ;;  %v3993_v56 = vmul.f32 %v5886_v32, %v8106_v4  ;;  %5913 = vpow2.f32 %v4786_v34  ;;  %v4870_v9 = vpop.f32.mrf.mxu1  ;;  %v8451_v51 = vadd.f32 %v2658_v16, %v9472_v1 }
 0x326   : > { %v5890_v10 = vpop.eup %5889  ;;  %v4138_v23 = vadd.f32 %v4137_v27, %v3911_v7  ;;  %v3915_v5 = vmul.f32 %v5888_v3, %v8342_v21  ;;  %5915 = vpow2.f32 %v4708_v61  ;;  %v2113_v21 = vadd.f32 %v2112_v37, %v9489_v41  ;;  %v9497_v7 = vld [vmem:[#allocation52_spill] sm:$0xff] }
 0x327   : > { %v5892_v44 = vpop.eup %5891  ;;  %v8433_v31 = vadd.f32 %v4043_v40, %v3993_v56  ;;  %v3994_v42 = vmul.f32 %v5890_v10, %v8109_v43  ;;  %5917 = vpow2.f32 %v4790_v35  ;;  %v2149_v43 = vrot.slane %v9496_v22, 4  ;;  %v2664_v35 = vpop.f32.mrf.mxu0 }
 0x328   : > { %v5894_v2 = vpop.eup %5893  ;;  %v8436_v4 = vadd.f32 %v4101_v39, %v3915_v5  ;;  %v3916_v34 = vmul.f32 %v5892_v44, %v8348_v45  ;;  %5919 = vpow2.f32 %v4712_v18  ;;  %v2114_v37 = vrot.slane %v2113_v21, 2  ;;  %v2774_v3 = vpop.f32.mrf.mxu1 }
 0x329   : > { %v5896_v63 = vpop.eup %5895  ;;  %v8442_v55 = vadd.f32 %v4080_v38, %v3994_v42  ;;  %v3518_v26 = vadd.f32 1.0, %v5894_v2  ;;  %5921 = vpow2.f32 %v4791_v29  ;;  %v8448_v47 = vadd.f32 %v2149_v43, %v9496_v22  ;;  %v2668_v42 = vpop.f32.mrf.mxu0 }
 0x32a   : > { %v5898_v36 = vpop.eup %5897  ;;  %v8445_v15 = vadd.f32 %v4138_v23, %v3916_v34  ;;  %v3440_v61 = vadd.f32 1.0, %v5896_v63  ;;  %5923 = vpow2.f32 %v4713_v25  ;;  %v8454_v18 = vadd.f32 %v4869_v33, %v9497_v7 }
 0x32b   : > { %v5900_v17 = vpop.eup %5899  ;;  %5925 = vrcp.f32 %v3518_v26  ;;  %v3519_v45 = vadd.f32 1.0, %v5898_v36  ;;  %v8456_v10 = vadd.f32 %v2114_v37, %v2113_v21  ;;  %v8459_v5 = vadd.f32 %v2660_v14, %v9475_v53  ;;  %v4873_v26 = vpop.f32.mrf.mxu1 }
 0x32c   : > { %v5902_v6 = vpop.eup %5901  ;;  %5927 = vrcp.f32 %v3440_v61  ;;  %v3441_v0 = vadd.f32 1.0, %v5900_v17  ;;  %v2151_v25 = vrot.slane %v8448_v47, 2  ;;  %v4717_v33 = vmul.f32 -1.442695, %v8451_v51  ;;  %v2670_v37 = vpop.f32.mrf.mxu0 }
 0x32d   : > { %v5904_v41 = vpop.eup %5903  ;;  %5929 = vrcp.f32 %v3519_v45  ;;  %v3523_v27 = vadd.f32 1.0, %v5902_v6  ;;  %v4649_v63 = vmul.f32 -1.442695, %v8454_v18  ;;  %v8465_v21 = vadd.f32 %v2771_v48, %v9497_v7 }
 0x32e   : > { %v5906_v49 = vpop.eup %5905  ;;  %5931 = vrcp.f32 %v3441_v0  ;;  %v3445_v40 = vadd.f32 1.0, %v5904_v41  ;;  %v8468_v22 = vadd.f32 %v2662_v11, %v9472_v1  ;;  %v8471_v43 = vadd.f32 %v4870_v9, %v9497_v7 }
 0x32f   : > { %v5908_v32 = vpop.eup %5907  ;;  %5933 = vrcp.f32 %v3523_v27  ;;  %v3524_v39 = vadd.f32 1.0, %v5906_v49  ;;  %v4718_v45 = vmul.f32 -1.442695, %v8459_v5  ;;  %v8475_v6 = vadd.f32 %v2664_v35, %v9475_v53  ;;  %v2787_v35 = vpop.f32.mrf.mxu1 }
 0x330   : > { %v5910_v38 = vpop.eup %5909  ;;  %5935 = vrcp.f32 %v3445_v40  ;;  %v3446_v56 = vadd.f32 1.0, %v5908_v32  ;;  %v8478_v41 = vadd.f32 %v2774_v3, %v9497_v7  ;;  %v8481_v11 = vadd.f32 %v2668_v42, %v9472_v1 }
 0x331   : > { %v5912_v29 = vpop.eup %5911  ;;  %5937 = vrcp.f32 %v3524_v39  ;;  %v3528_v23 = vadd.f32 1.0, %v5910_v38  ;;  %v4639_v49 = vmul.f32 -1.442695, %v8465_v21  ;;  %v8485_v40 = vadd.f32 %v4873_v26, %v9497_v7  ;;  %v2672_v26 = vpop.f32.mrf.mxu0 }
 0x332   : > { %v5914_v16 = vpop.eup %5913  ;;  %5939 = vrcp.f32 %v3446_v56  ;;  %v3450_v44 = vadd.f32 1.0, %v5912_v29  ;;  %v4722_v38 = vmul.f32 -1.442695, %v8468_v22  ;;  %v4654_v3 = vmul.f32 -1.442695, %v8471_v43 }
 0x333   : > { %v5916_v2 = vpop.eup %5915  ;;  %5941 = vrcp.f32 %v3528_v23  ;;  %v3529_v34 = vadd.f32 1.0, %v5914_v16  ;;  %v4723_v23 = vmul.f32 -1.442695, %v8475_v6  ;;  %v8492_v16 = vadd.f32 %v2670_v37, %v9475_v53 }
 0x334   : > { %v5918_v36 = vpop.eup %5917  ;;  %5943 = vrcp.f32 %v3450_v44  ;;  %v3451_v14 = vadd.f32 1.0, %v5916_v2  ;;  %v4644_v2 = vmul.f32 -1.442695, %v8478_v41  ;;  %v8503_v37 = vadd.f32 %v2787_v35, %v9497_v7 }
 0x335   : > { %v5920_v61 = vpop.eup %5919  ;;  %5945 = vrcp.f32 %v3529_v34  ;;  %v3533_v17 = vadd.f32 1.0, %v5918_v36  ;;  %v4727_v34 = vmul.f32 -1.442695, %v8481_v11 }
 0x336   : > { %v5922_v48 = vpop.eup %5921  ;;  %5947 = vrcp.f32 %v3451_v14  ;;  %v3455_v0 = vadd.f32 1.0, %v5920_v61  ;;  %v4669_v61 = vmul.f32 -1.442695, %v8485_v40 }
 0x337   : > { %v5924_v9 = vpop.eup %5923  ;;  %5949 = vrcp.f32 %v3533_v17  ;;  %v3534_v27 = vadd.f32 1.0, %v5922_v48  ;;  %v4874_v17 = vpop.f32.mrf.mxu1 }
 0x338   : > { %v5926_v32 = vpop.eup %5925  ;;  %5951 = vrcp.f32 %v3455_v0  ;;  %v3456_v39 = vadd.f32 1.0, %v5924_v9 }
 0x339   : > { %v5928_v56 = vpop.eup %5927  ;;  %v3998_v29 = vmul.f32 %v5926_v32, %v8112_v30  ;;  %5953 = vrcp.f32 %v3534_v27 }
 0x33a   : > { %v5930_v44 = vpop.eup %5929  ;;  %v3920_v42 = vmul.f32 %v5928_v56, %v8372_v54  ;;  %5955 = vrcp.f32 %v3456_v39 }
 0x33b   : > { %v5932_v36 = vpop.eup %5931  ;;  %v4045_v14 = vadd.f32 %v8433_v31, %v3998_v29  ;;  %v3999_v30 = vmul.f32 %v5930_v44, %v8120_v60  ;;  %5957 = vpow2.f32 %v4717_v33  ;;  %v4728_v60 = vmul.f32 -1.442695, %v8492_v16 }
 0x33c   : > { %v5934_v48 = vpop.eup %5933  ;;  %v4103_v0 = vadd.f32 %v8436_v4, %v3920_v42  ;;  %v3921_v54 = vmul.f32 %v5932_v36, %v8375_v24  ;;  %5959 = vpow2.f32 %v4649_v63  ;;  %v8511_v24 = vadd.f32 %v2672_v26, %v9472_v1  ;;  %v2674_v4 = vpop.f32.mrf.mxu0 }
 0x33d   : > { %v5936_v9 = vpop.eup %5935  ;;  %v4082_v27 = vadd.f32 %v8442_v55, %v3999_v30  ;;  %v4003_v31 = vmul.f32 %v5934_v48, %v9490_v20  ;;  %5961 = vpow2.f32 %v4718_v45  ;;  %v8515_v20 = vadd.f32 %v4874_v17, %v9497_v7  ;;  %v2790_v55 = vpop.f32.mrf.mxu1 }
 0x33e   : > { %v5938_v33 = vpop.eup %5937  ;;  %v4140_v32 = vadd.f32 %v8445_v15, %v3921_v54  ;;  %v3925_v39 = vmul.f32 %v5936_v9, %v8379_v50  ;;  %5963 = vpow2.f32 %v4639_v49  ;;  %v4659_v50 = vmul.f32 -1.442695, %v8503_v37 }
 0x33f   : > { %v5940_v63 = vpop.eup %5939  ;;  %v4046_v35 = vadd.f32 %v4045_v14, %v4003_v31  ;;  %v4004_v56 = vmul.f32 %v5938_v33, %v9491_v13  ;;  %5965 = vpow2.f32 %v4722_v38  ;;  %v8521_v26 = vadd.f32 %v2674_v4, %v9475_v53 }
 0x340   : > { %v5942_v45 = vpop.eup %5941  ;;  %v4104_v29 = vadd.f32 %v4103_v0, %v3925_v39  ;;  %v3926_v15 = vmul.f32 %v5940_v63, %v8383_v8  ;;  %5967 = vpow2.f32 %v4654_v3  ;;  %v8525_v14 = vadd.f32 %v2790_v55, %v9497_v7  ;;  %v2678_v8 = vpop.f32.mrf.mxu0 }
 0x341   : > { %v5944_v49 = vpop.eup %5943  ;;  %v4083_v44 = vadd.f32 %v4082_v27, %v4004_v56  ;;  %v4008_v42 = vmul.f32 %v5942_v45, %v9492_v62  ;;  %5969 = vpow2.f32 %v4723_v23  ;;  %v4732_v62 = vmul.f32 -1.442695, %v8511_v24  ;;  %v4877_v23 = vpop.f32.mrf.mxu1 }
 0x342   : > { %v5946_v13 = vpop.eup %5945  ;;  %v4141_v38 = vadd.f32 %v4140_v32, %v3926_v15  ;;  %v3930_v36 = vmul.f32 %v5944_v49, %v8392_v12  ;;  %5971 = vpow2.f32 %v4644_v2  ;;  %v4674_v12 = vmul.f32 -1.442695, %v8515_v20  ;;  %v8535_v39 = vpop.f32.mrf.mxu0 }
 0x343   : > { %v5948_v3 = vpop.eup %5947  ;;  %v4047_v30 = vadd.f32 %v4046_v35, %v4008_v42  ;;  %v4009_v17 = vmul.f32 %v5946_v13, %v9493_v19  ;;  %5973 = vpow2.f32 %v4727_v34  ;;  %v4733_v31 = vmul.f32 -1.442695, %v8521_v26  ;;  %v8538_v63 = vpop.f32.mrf.mxu1 }
 0x344   : > { %v5950_v48 = vpop.eup %5949  ;;  %v4105_v0 = vadd.f32 %v4104_v29, %v3930_v36  ;;  %v3931_v54 = vmul.f32 %v5948_v3, %v8403_v58  ;;  %5975 = vpow2.f32 %v4669_v61  ;;  %v4664_v32 = vmul.f32 -1.442695, %v8525_v14 }
 0x345   : > { %v5952_v2 = vpop.eup %5951  ;;  %v4084_v9 = vadd.f32 %v4083_v44, %v4009_v17  ;;  %v4013_v27 = vmul.f32 %v5950_v48, %v9495_v28  ;;  %5977 = vpow2.f32 %v4728_v60  ;;  %v2152_v60 = vadd.f32 %v2151_v25, %v8448_v47  ;;  %v8549_v44 = vpop.f32.mrf.mxu0 }
 0x346   : > { %v5954_v33 = vpop.eup %5953  ;;  %v4142_v19 = vadd.f32 %v4141_v38, %v3931_v54  ;;  %v3935_v34 = vmul.f32 %v5952_v2, %v8413_v59  ;;  %5979 = vpow2.f32 %v4659_v50  ;;  %v4878_v13 = vpop.f32.mrf.mxu1 }
 0x347   : > { %v5956_v58 = vpop.eup %5955  ;;  %v4048_v61 = vadd.f32 %v4047_v30, %v4013_v27  ;;  %v4014_v4 = vmul.f32 %v5954_v33, %v8419_v46  ;;  %5981 = vpow2.f32 %v4732_v62  ;;  %v2116_v46 = vrot.slane %v8456_v10, 1  ;;  %v2684_v27 = vpop.f32.mrf.mxu0 }
 0x348   : > { %v5958_v28 = vpop.eup %5957  ;;  %v8543_v35 = vadd.f32 %v4105_v0, %v3935_v34  ;;  %v3936_v59 = vmul.f32 %v5956_v58, %v8423_v52  ;;  %5983 = vpow2.f32 %v4674_v12  ;;  %v2153_v36 = vrot.slane %v2152_v60, 1  ;;  %v2806_v34 = vpop.f32.mrf.mxu1 }
 0x349   : > { %v5960_v56 = vpop.eup %5959  ;;  %v4049_v55 = vrot.slane %v4048_v61, 4  ;;  %v4085_v45 = vadd.f32 %v4084_v9, %v4014_v4  ;;  %v3460_v29 = vadd.f32 1.0, %v5958_v28  ;;  %5985 = vpow2.f32 %v4733_v31 }
 0x34a   : > { %v5962_v15 = vpop.eup %5961  ;;  %v8547_v50 = vadd.f32 %v4142_v19, %v3936_v59  ;;  %v3392_v49 = vadd.f32 1.0, %v5960_v56  ;;  %5987 = vpow2.f32 %v4664_v32  ;;  %v8552_v30 = vadd.f32 %v2678_v8, %v9472_v1 }
 0x34b   : > { %v5964_v47 = vpop.eup %5963  ;;  %v4050_v25 = vadd.f32 %v4049_v55, %v4048_v61  ;;  %v4086_v42 = vrot.slane %v4085_v45, 4  ;;  %5989 = vrcp.f32 %v3460_v29  ;;  %v3461_v52 = vadd.f32 1.0, %v5962_v15  ;;  %v2688_v29 = vpop.f32.mrf.mxu0 }
 0x34c   : > { %v5966_v38 = vpop.eup %5965  ;;  %5991 = vrcp.f32 %v3392_v49  ;;  %v3382_v3 = vadd.f32 1.0, %v5964_v47  ;;  %v2117_v12 = vadd.f32 %v2116_v46, %v8456_v10  ;;  %v8556_v9 = vadd.f32 %v4877_v23, %v9497_v7  ;;  %v4881_v47 = vpop.f32.mrf.mxu1 }
 0x34d   : > { %v5968_v17 = vpop.eup %5967  ;;  %v4051_v62 = vrot.slane %v4050_v25, 2  ;;  %v4087_v48 = vadd.f32 %v4086_v42, %v4085_v45  ;;  %5993 = vrcp.f32 %v3461_v52  ;;  %v3465_v0 = vadd.f32 1.0, %v5966_v38 }
 0x34e   : > { %v5970_v54 = vpop.eup %5969  ;;  %5995 = vrcp.f32 %v3382_v3  ;;  %v3397_v2 = vadd.f32 1.0, %v5968_v17  ;;  %v2154_v58 = vadd.f32 %v2153_v36, %v2152_v60  ;;  %v4737_v4 = vmul.f32 -1.442695, %v8552_v30 }
 0x34f   : > { %v5972_v31 = vpop.eup %5971  ;;  %v4052_v33 = vadd.f32 %v4051_v62, %v4050_v25  ;;  %v4088_v19 = vrot.slane %v4087_v48, 2  ;;  %5997 = vrcp.f32 %v3465_v0  ;;  %v3466_v8 = vadd.f32 1.0, %v5970_v54 }
 0x350   : > { %v5974_v32 = vpop.eup %5973  ;;  %5999 = vrcp.f32 %v3397_v2  ;;  %v3387_v61 = vadd.f32 1.0, %v5972_v31  ;;  %v4689_v45 = vmul.f32 -1.442695, %v8556_v9  ;;  %v8562_v52 = vadd.f32 %v8535_v39, %v9475_v53  ;;  %v2690_v2 = vpop.f32.mrf.mxu0 }
 0x351   : > { %v5976_v28 = vpop.eup %5975  ;;  %v4053_v10 = vrot.slane %v4052_v33, 1  ;;  %v4089_v59 = vadd.f32 %v4088_v19, %v4087_v48  ;;  %6001 = vrcp.f32 %v3466_v8  ;;  %v3470_v56 = vadd.f32 1.0, %v5974_v32  ;;  %v2819_v19 = vpop.f32.mrf.mxu1 }
 0x352   : > { %v5978_v23 = vpop.eup %5977  ;;  %6003 = vrcp.f32 %v3387_v61  ;;  %v3412_v55 = vadd.f32 1.0, %v5976_v28  ;;  %v8566_v38 = vadd.f32 %v8538_v63, %v9497_v7  ;;  %v8573_v54 = vadd.f32 %v8549_v44, %v9472_v1 }
 0x353   : > { %v5980_v15 = vpop.eup %5979  ;;  %v4054_v46 = vadd.f32 %v4053_v10, %v4052_v33  ;;  %v4090_v49 = vrot.slane %v4089_v59, 1  ;;  %6005 = vrcp.f32 %v3470_v56  ;;  %v3471_v60 = vadd.f32 1.0, %v5978_v23 }
 0x354   : > { %v5982_v25 = vpop.eup %5981  ;;  %6007 = vrcp.f32 %v3412_v55  ;;  %v3402_v42 = vadd.f32 1.0, %v5980_v15  ;;  %v8576_v39 = vadd.f32 %v4878_v13, %v9497_v7  ;;  %v8582_v33 = vadd.f32 %v2684_v27, %v9475_v53 }
 0x355   : > { %v5984_v36 = vpop.eup %5983  ;;  %v8569_v3 = vsel %vm4205_vm2, %v2117_v12, %v4054_v46  ;;  %v4091_v17 = vadd.f32 %v4090_v49, %v4089_v59  ;;  %6009 = vrcp.f32 %v3471_v60  ;;  %v3475_v62 = vadd.f32 1.0, %v5982_v25  ;;  %v4882_v46 = vpop.f32.mrf.mxu1 }
 0x356   : > { %v5986_v48 = vpop.eup %5985  ;;  %6011 = vrcp.f32 %v3402_v42  ;;  %v3417_v0 = vadd.f32 1.0, %v5984_v36  ;;  %v8587_v13 = vadd.f32 %v2806_v34, %v9497_v7  ;;  %v8592_v10 = vadd.f32 %v2688_v29, %v9472_v1  ;;  %v2692_v34 = vpop.f32.mrf.mxu0 }
 0x357   : > { %v5988_v63 = vpop.eup %5987  ;;  %v8579_v31 = vsel %vm4205_vm2, %v2154_v58, %v4091_v17  ;;  %6013 = vrcp.f32 %v3475_v62  ;;  %v3476_v12 = vadd.f32 1.0, %v5986_v48  ;;  %v4738_v58 = vmul.f32 -1.442695, %v8562_v52 }
 0x358   : > { %v5990_v8 = vpop.eup %5989  ;;  %v4216_v32 = vcombine.low %v8569_v3, %v8579_v31  ;;  %6015 = vrcp.f32 %v3417_v0  ;;  %v3407_v44 = vadd.f32 1.0, %v5988_v63  ;;  %v4679_v59 = vmul.f32 -1.442695, %v8566_v38  ;;  %v2694_v48 = vpop.f32.mrf.mxu0 }
 0x359   : > { %v5992_v61 = vpop.eup %5991  ;;  %v3940_v28 = vmul.f32 %v5990_v8, %v8451_v51  ;;  %6017 = vrcp.f32 %v3476_v12  ;;  %v8596_v56 = vadd.f32 %v4881_v47, %v9497_v7  ;;  %v8599_v23 = vadd.f32 %v2690_v2, %v9475_v53 }
 0x35a   : > { %v5994_v27 = vpop.eup %5993  ;;  %6019 = vrcp.f32 %v3407_v44  ;;  %v4742_v29 = vmul.f32 -1.442695, %v8573_v54  ;;  %v4694_v60 = vmul.f32 -1.442695, %v8576_v39  ;;  %v4743_v47 = vmul.f32 -1.442695, %v8582_v33 }
 0x35b   : > { %v5996_v55 = vpop.eup %5995  ;;  %v4107_v51 = vadd.f32 %v8543_v35, %v3940_v28  ;;  %v3941_v15 = vmul.f32 %v5994_v27, %v8459_v5  ;;  %6021 = vpow2.f32 %v4737_v4  ;;  %v4684_v25 = vmul.f32 -1.442695, %v8587_v13 }
 0x35c   : > { %v5998_v49 = vpop.eup %5997  ;;  %6023 = vpow2.f32 %v4689_v45  ;;  %v4747_v5 = vmul.f32 -1.442695, %v8592_v10  ;;  %v4709_v4 = vmul.f32 -1.442695, %v8596_v56  ;;  %v4748_v45 = vmul.f32 -1.442695, %v8599_v23 }
 0x35d   : > { %v6000_v42 = vpop.eup %5999  ;;  %v4144_v36 = vadd.f32 %v8547_v50, %v3941_v15  ;;  %v3945_v17 = vmul.f32 %v5998_v49, %v8468_v22  ;;  %6025 = vpow2.f32 %v4738_v58  ;;  %v8613_v62 = vadd.f32 %v2819_v19, %v9497_v7  ;;  %v2822_v50 = vpop.f32.mrf.mxu1 }
 0x35e   : > { %v6002_v35 = vpop.eup %6001  ;;  %6027 = vpow2.f32 %v4679_v59  ;;  %v8617_v22 = vadd.f32 %v2692_v34, %v9472_v1  ;;  %v3862_v8 = vmul.f32 %v5996_v55, %v8465_v21  ;;  %v8622_v28 = vadd.f32 %v4882_v46, %v9497_v7  ;;  %v2698_v55 = vpop.f32.mrf.mxu0 }
 0x35f   : > { %v6004_v0 = vpop.eup %6003  ;;  %v4108_v2 = vadd.f32 %v4107_v51, %v3945_v17  ;;  %v3946_v63 = vmul.f32 %v6002_v35, %v8475_v6  ;;  %6029 = vpow2.f32 %v4742_v29  ;;  %v8628_v6 = vadd.f32 %v2694_v48, %v9475_v53  ;;  %v4885_v46 = vpop.f32.mrf.mxu1 }
 0x360   : > { %v6006_v12 = vpop.eup %6005  ;;  %v3867_v44 = vmul.f32 %v6004_v0, %v8478_v41  ;;  %6031 = vpow2.f32 %v4694_v60  ;;  %v4699_v21 = vmul.f32 -1.442695, %v8613_v62  ;;  %v8632_v41 = vadd.f32 %v2822_v50, %v9497_v7  ;;  %v2700_v0 = vpop.f32.mrf.mxu0 }
 0x361   : > { %v8624_v19 = vpop.eup %6007  ;;  %v4145_v58 = vadd.f32 %v4144_v36, %v3946_v63  ;;  %v3950_v27 = vmul.f32 %v6006_v12, %v8481_v11  ;;  %6033 = vpow2.f32 %v4743_v47  ;;  %v4752_v11 = vmul.f32 -1.442695, %v8617_v22 }
 0x362   : > { %v6010_v59 = vpop.eup %6009  ;;  %v4166_v34 = vadd.f32 %v3867_v44, %v3862_v8  ;;  %6035 = vpow2.f32 %v4684_v25  ;;  %v3872_v60 = vmul.f32 %v5992_v61, %v8454_v18  ;;  %v4714_v47 = vmul.f32 -1.442695, %v8622_v28  ;;  %v2835_v61 = vpop.f32.mrf.mxu1 }
 0x363   : > { %v6012_v51 = vpop.eup %6011  ;;  %v4109_v15 = vadd.f32 %v4108_v2, %v3950_v27  ;;  %v3951_v29 = vmul.f32 %v6010_v59, %v8492_v16  ;;  %6037 = vpow2.f32 %v4747_v5  ;;  %v4753_v35 = vmul.f32 -1.442695, %v8628_v6  ;;  %v2702_v27 = vpop.f32.mrf.mxu0 }
 0x364   : > { %v6014_v49 = vpop.eup %6013  ;;  %6039 = vpow2.f32 %v4709_v4  ;;  %v4167_v16 = vadd.f32 %v4166_v34, %v3872_v60  ;;  %v4704_v5 = vmul.f32 -1.442695, %v8632_v41  ;;  %v3877_v50 = vmul.f32 %v6000_v42, %v8471_v43 }
 0x365   : > { %v8638_v25 = vpop.eup %6015  ;;  %v4146_v36 = vadd.f32 %v4145_v58, %v3951_v29  ;;  %v3955_v17 = vmul.f32 %v6014_v49, %v8511_v24  ;;  %6041 = vpow2.f32 %v4748_v45 }
 0x366   : > { %v6018_v48 = vpop.eup %6017  ;;  %6043 = vpow2.f32 %v4699_v21  ;;  %v4168_v44 = vadd.f32 %v4167_v16, %v3877_v50 }
 0x367   : > { %v6020_v2 = vpop.eup %6019  ;;  %v8643_v63 = vadd.f32 %v4109_v15, %v3955_v17  ;;  %v3956_v18 = vmul.f32 %v6018_v48, %v8521_v26  ;;  %6045 = vpow2.f32 %v4752_v11  ;;  %v4886_v26 = vpop.f32.mrf.mxu1  ;;  %v3882_v15 = vmul.f32 %v6012_v51, %v8503_v37 }
 0x368   : > { %v6022_v4 = vpop.eup %6021  ;;  %6047 = vpow2.f32 %v4714_v47  ;;  %v3887_v60 = vmul.f32 %v6020_v2, %v8525_v14  ;;  %v8652_v48 = vadd.f32 %v2698_v55, %v9472_v1  ;;  %v8658_v14 = vadd.f32 %v2700_v0, %v9475_v53 }
 0x369   : > { %v6024_v24 = vpop.eup %6023  ;;  %v8647_v45 = vadd.f32 %v4146_v36, %v3956_v18  ;;  %v3480_v12 = vadd.f32 1.0, %v6022_v4  ;;  %6049 = vpow2.f32 %v4753_v35  ;;  %v4169_v49 = vadd.f32 %v4168_v44, %v3882_v15  ;;  %v2704_v36 = vpop.f32.mrf.mxu0 }
 0x36a   : > { %v6026_v8 = vpop.eup %6025  ;;  %v3432_v58 = vadd.f32 1.0, %v6024_v24  ;;  %6051 = vpow2.f32 %v4704_v5  ;;  %v2838_v16 = vpop.f32.mrf.mxu1  ;;  %v8655_v5 = vadd.f32 %v4885_v46, %v9497_v7  ;;  %v4757_v44 = vmul.f32 -1.442695, %v8652_v48 }
 0x36b   : > { %v6028_v59 = vpop.eup %6027  ;;  %6053 = vrcp.f32 %v3480_v12  ;;  %v3481_v34 = vadd.f32 1.0, %v6026_v8  ;;  %v4170_v50 = vadd.f32 %v4169_v49, %v3887_v60  ;;  %v2708_v12 = vpop.f32.mrf.mxu0  ;;  %v8672_v60 = vadd.f32 %v4886_v26, %v9497_v7 }
 0x36c   : > { %v6030_v21 = vpop.eup %6029  ;;  %6055 = vrcp.f32 %v3432_v58  ;;  %v3422_v43 = vadd.f32 1.0, %v6028_v59  ;;  %v8662_v58 = vadd.f32 %v2835_v61, %v9497_v7  ;;  %v4889_v46 = vpop.f32.mrf.mxu1 }
 0x36d   : > { %v6032_v42 = vpop.eup %6031  ;;  %6057 = vrcp.f32 %v3481_v34  ;;  %v3485_v29 = vadd.f32 1.0, %v6030_v21  ;;  %v3892_v34 = vmul.f32 %v8624_v19, %v8485_v40  ;;  %v4729_v21 = vmul.f32 -1.442695, %v8655_v5  ;;  %v2710_v40 = vpop.f32.mrf.mxu0 }
 0x36e   : > { %v6034_v11 = vpop.eup %6033  ;;  %6059 = vrcp.f32 %v3422_v43  ;;  %v3437_v47 = vadd.f32 1.0, %v6032_v42  ;;  %v4758_v42 = vmul.f32 -1.442695, %v8658_v14 }
 0x36f   : > { %v6036_v17 = vpop.eup %6035  ;;  %6061 = vrcp.f32 %v3485_v29  ;;  %v3486_v35 = vadd.f32 1.0, %v6034_v11  ;;  %v8669_v29 = vadd.f32 %v2702_v27, %v9472_v1  ;;  %v4171_v61 = vadd.f32 %v4170_v50, %v3892_v34 }
 0x370   : > { %v6038_v37 = vpop.eup %6037  ;;  %6063 = vrcp.f32 %v3437_v47  ;;  %v3427_v51 = vadd.f32 1.0, %v6036_v17  ;;  %v4719_v17 = vmul.f32 -1.442695, %v8662_v58  ;;  %v3897_v27 = vmul.f32 %v8638_v25, %v8515_v20  ;;  %v2712_v25 = vpop.f32.mrf.mxu0 }
 0x371   : > { %v6040_v18 = vpop.eup %6039  ;;  %6065 = vrcp.f32 %v3486_v35  ;;  %v3490_v4 = vadd.f32 1.0, %v6038_v37  ;;  %v8676_v35 = vadd.f32 %v2704_v36, %v9475_v53  ;;  %v2851_v37 = vpop.f32.mrf.mxu1  ;;  %v4762_v50 = vmul.f32 -1.442695, %v8669_v29 }
 0x372   : > { %v6042_v2 = vpop.eup %6041  ;;  %6067 = vrcp.f32 %v3427_v51  ;;  %v3452_v24 = vadd.f32 1.0, %v6040_v18  ;;  %v8690_v20 = vadd.f32 %v4889_v46, %v9497_v7 }
 0x373   : > { %v6044_v55 = vpop.eup %6043  ;;  %6069 = vrcp.f32 %v3490_v4  ;;  %v3491_v8 = vadd.f32 1.0, %v6042_v2  ;;  %v8681_v4 = vadd.f32 %v2838_v16, %v9497_v7  ;;  %v4763_v34 = vmul.f32 -1.442695, %v8676_v35 }
 0x374   : > { %v6046_v59 = vpop.eup %6045  ;;  %6071 = vrcp.f32 %v3452_v24  ;;  %v3442_v0 = vadd.f32 1.0, %v6044_v55  ;;  %v8686_v24 = vadd.f32 %v2708_v12, %v9472_v1  ;;  %v4172_v55 = vadd.f32 %v4171_v61, %v3897_v27 }
 0x375   : > { %v6048_v15 = vpop.eup %6047  ;;  %6073 = vrcp.f32 %v3491_v8  ;;  %v3495_v43 = vadd.f32 1.0, %v6046_v59  ;;  %v4734_v8 = vmul.f32 -1.442695, %v8672_v60 }
 0x376   : > { %v6050_v11 = vpop.eup %6049  ;;  %6075 = vrcp.f32 %v3442_v0  ;;  %v3457_v49 = vadd.f32 1.0, %v6048_v15  ;;  %v4890_v0 = vpop.f32.mrf.mxu1 }
 0x377   : > { %v6052_v19 = vpop.eup %6051  ;;  %6077 = vrcp.f32 %v3495_v43  ;;  %v3496_v47 = vadd.f32 1.0, %v6050_v11  ;;  %v4724_v43 = vmul.f32 -1.442695, %v8681_v4  ;;  %v8698_v11 = vadd.f32 %v2710_v40, %v9475_v53 }
 0x378   : > { %v6054_v51 = vpop.eup %6053  ;;  %6079 = vrcp.f32 %v3457_v49  ;;  %v3447_v18 = vadd.f32 1.0, %v6052_v19  ;;  %v4749_v19 = vmul.f32 -1.442695, %v8690_v20 }
 0x379   : > { %v6056_v26 = vpop.eup %6055  ;;  %v3960_v2 = vmul.f32 %v6054_v51, %v8552_v30  ;;  %6081 = vrcp.f32 %v3496_v47 }
 0x37a   : > { %v6058_v36 = vpop.eup %6057  ;;  %6083 = vrcp.f32 %v3447_v18  ;;  %v8714_v18 = vadd.f32 %v4890_v0, %v9497_v7 }
 0x37b   : > { %v6060_v16 = vpop.eup %6059  ;;  %v4111_v59 = vadd.f32 %v8643_v63, %v3960_v2  ;;  %v3961_v30 = vmul.f32 %v6058_v36, %v8562_v52  ;;  %6085 = vpow2.f32 %v4757_v44  ;;  %v4767_v52 = vmul.f32 -1.442695, %v8686_v24 }
 0x37c   : > { %v6062_v12 = vpop.eup %6061  ;;  %v3902_v15 = vmul.f32 %v6060_v16, %v8566_v38  ;;  %6087 = vpow2.f32 %v4729_v21  ;;  %v8705_v38 = vadd.f32 %v2851_v37, %v9497_v7  ;;  %v2714_v21 = vpop.f32.mrf.mxu0 }
 0x37d   : > { %v6064_v46 = vpop.eup %6063  ;;  %v4148_v61 = vadd.f32 %v8647_v45, %v3961_v30  ;;  %v3965_v63 = vmul.f32 %v6062_v12, %v8573_v54  ;;  %6089 = vpow2.f32 %v4758_v42  ;;  %v8709_v45 = vadd.f32 %v2712_v25, %v9472_v1  ;;  %v2854_v54 = vpop.f32.mrf.mxu1 }
 0x37e   : > { %v6066_v44 = vpop.eup %6065  ;;  %v4173_v49 = vadd.f32 %v4172_v55, %v3902_v15  ;;  %6091 = vpow2.f32 %v4719_v17  ;;  %v4768_v17 = vmul.f32 -1.442695, %v8698_v11  ;;  %v2718_v25 = vpop.f32.mrf.mxu0  ;;  %v3912_v12 = vmul.f32 %v6056_v26, %v8556_v9 }
 0x37f   : > { %v6068_v47 = vpop.eup %6067  ;;  %v4112_v40 = vadd.f32 %v4111_v59, %v3965_v63  ;;  %v3966_v51 = vmul.f32 %v6066_v44, %v8582_v33  ;;  %6093 = vpow2.f32 %v4762_v50  ;;  %v8720_v33 = vadd.f32 %v2714_v21, %v9475_v53 }
 0x380   : > { %v6070_v42 = vpop.eup %6069  ;;  %v3907_v27 = vmul.f32 %v6068_v47, %v8587_v13  ;;  %6095 = vpow2.f32 %v4734_v8  ;;  %v4739_v13 = vmul.f32 -1.442695, %v8705_v38  ;;  %v8724_v8 = vadd.f32 %v2854_v54, %v9497_v7  ;;  %v2720_v21 = vpop.f32.mrf.mxu0 }
 0x381   : > { %v8716_v37 = vpop.eup %6071  ;;  %v4149_v2 = vadd.f32 %v4148_v61, %v3966_v51  ;;  %v3970_v36 = vmul.f32 %v6070_v42, %v8592_v10  ;;  %6097 = vpow2.f32 %v4763_v34  ;;  %v4772_v10 = vmul.f32 -1.442695, %v8709_v45  ;;  %v4893_v34 = vpop.f32.mrf.mxu1 }
 0x382   : > { %v6074_v50 = vpop.eup %6073  ;;  %v4174_v55 = vadd.f32 %v4173_v49, %v3907_v27  ;;  %6099 = vpow2.f32 %v4724_v43  ;;  %v4754_v15 = vmul.f32 -1.442695, %v8714_v18  ;;  %v4773_v44 = vmul.f32 -1.442695, %v8720_v33 }
 0x383   : > { %v6076_v16 = vpop.eup %6075  ;;  %v4113_v59 = vadd.f32 %v4112_v40, %v3970_v36  ;;  %v3971_v30 = vmul.f32 %v6074_v50, %v8599_v23  ;;  %6101 = vpow2.f32 %v4767_v52  ;;  %v4744_v52 = vmul.f32 -1.442695, %v8724_v8  ;;  %v2867_v26 = vpop.f32.mrf.mxu1 }
 0x384   : > { %v6078_v0 = vpop.eup %6077  ;;  %6103 = vpow2.f32 %v4749_v19  ;;  %v4175_v23 = vadd.f32 %v4174_v55, %v3912_v12  ;;  %v3917_v51 = vmul.f32 %v6064_v46, %v8576_v39  ;;  %v2722_v36 = vpop.f32.mrf.mxu0 }
 0x385   : > { %v8730_v43 = vpop.eup %6079  ;;  %v4150_v61 = vadd.f32 %v4149_v2, %v3971_v30  ;;  %v3975_v63 = vmul.f32 %v6078_v0, %v8617_v22  ;;  %6105 = vpow2.f32 %v4768_v17 }
 0x386   : > { %v6082_v49 = vpop.eup %6081  ;;  %6107 = vpow2.f32 %v4739_v13  ;;  %v4176_v17 = vadd.f32 %v4175_v23, %v3917_v51 }
 0x387   : > { %v6084_v47 = vpop.eup %6083  ;;  %v8735_v40 = vadd.f32 %v4113_v59, %v3975_v63  ;;  %v3976_v9 = vmul.f32 %v6082_v49, %v8628_v6  ;;  %6109 = vpow2.f32 %v4772_v10  ;;  %v4894_v6 = vpop.f32.mrf.mxu1  ;;  %v3922_v59 = vmul.f32 %v6076_v16, %v8613_v62 }
 0x388   : > { %v6086_v19 = vpop.eup %6085  ;;  %6111 = vpow2.f32 %v4754_v15  ;;  %v3927_v12 = vmul.f32 %v6084_v47, %v8632_v41  ;;  %v8744_v49 = vadd.f32 %v2718_v25, %v9472_v1  ;;  %v8750_v41 = vadd.f32 %v2720_v21, %v9475_v53 }
 0x389   : > { %v6088_v22 = vpop.eup %6087  ;;  %v8739_v54 = vadd.f32 %v4150_v61, %v3976_v9  ;;  %v3500_v42 = vadd.f32 1.0, %v6086_v19  ;;  %6113 = vpow2.f32 %v4773_v44  ;;  %v4177_v0 = vadd.f32 %v4176_v17, %v3922_v59  ;;  %v2724_v61 = vpop.f32.mrf.mxu0 }
 0x38a   : > { %v6090_v27 = vpop.eup %6089  ;;  %v3472_v2 = vadd.f32 1.0, %v6088_v22  ;;  %6115 = vpow2.f32 %v4744_v52  ;;  %v2870_v23 = vpop.f32.mrf.mxu1  ;;  %v8747_v52 = vadd.f32 %v4893_v34, %v9497_v7  ;;  %v4777_v17 = vmul.f32 -1.442695, %v8744_v49 }
 0x38b   : > { %v6092_v50 = vpop.eup %6091  ;;  %6117 = vrcp.f32 %v3500_v42  ;;  %v3501_v55 = vadd.f32 1.0, %v6090_v27  ;;  %v4178_v51 = vadd.f32 %v4177_v0, %v3927_v12  ;;  %v2728_v42 = vpop.f32.mrf.mxu0  ;;  %v8764_v12 = vadd.f32 %v4894_v6, %v9497_v7 }
 0x38c   : > { %v6094_v13 = vpop.eup %6093  ;;  %6119 = vrcp.f32 %v3472_v2  ;;  %v3462_v39 = vadd.f32 1.0, %v6092_v50  ;;  %v8754_v2 = vadd.f32 %v2867_v26, %v9497_v7  ;;  %v4897_v34 = vpop.f32.mrf.mxu1 }
 0x38d   : > { %v6096_v46 = vpop.eup %6095  ;;  %6121 = vrcp.f32 %v3501_v55  ;;  %v3505_v30 = vadd.f32 1.0, %v6094_v13  ;;  %v3932_v55 = vmul.f32 %v8716_v37, %v8596_v56  ;;  %v4769_v13 = vmul.f32 -1.442695, %v8747_v52  ;;  %v2730_v56 = vpop.f32.mrf.mxu0 }
 0x38e   : > { %v6098_v10 = vpop.eup %6097  ;;  %6123 = vrcp.f32 %v3462_v39  ;;  %v3477_v15 = vadd.f32 1.0, %v6096_v46  ;;  %v4778_v46 = vmul.f32 -1.442695, %v8750_v41 }
 0x38f   : > { %v6100_v63 = vpop.eup %6099  ;;  %6125 = vrcp.f32 %v3505_v30  ;;  %v3506_v44 = vadd.f32 1.0, %v6098_v10  ;;  %v8761_v30 = vadd.f32 %v2722_v36, %v9472_v1  ;;  %v4179_v26 = vadd.f32 %v4178_v51, %v3932_v55 }
 0x390   : > { %v6102_v62 = vpop.eup %6101  ;;  %6127 = vrcp.f32 %v3477_v15  ;;  %v3467_v16 = vadd.f32 1.0, %v6100_v63  ;;  %v4759_v63 = vmul.f32 -1.442695, %v8754_v2  ;;  %v3937_v36 = vmul.f32 %v8730_v43, %v8622_v28  ;;  %v2732_v43 = vpop.f32.mrf.mxu0 }
 0x391   : > { %v6104_v9 = vpop.eup %6103  ;;  %6129 = vrcp.f32 %v3506_v44  ;;  %v3510_v19 = vadd.f32 1.0, %v6102_v62  ;;  %v8768_v44 = vadd.f32 %v2724_v61, %v9475_v53  ;;  %v2883_v62 = vpop.f32.mrf.mxu1  ;;  %v4782_v51 = vmul.f32 -1.442695, %v8761_v30 }
 0x392   : > { %v6106_v47 = vpop.eup %6105  ;;  %6131 = vrcp.f32 %v3467_v16  ;;  %v3492_v22 = vadd.f32 1.0, %v6104_v9  ;;  %v8782_v28 = vadd.f32 %v4897_v34, %v9497_v7 }
 0x393   : > { %v6108_v25 = vpop.eup %6107  ;;  %6133 = vrcp.f32 %v3510_v19  ;;  %v3511_v27 = vadd.f32 1.0, %v6106_v47  ;;  %v8773_v19 = vadd.f32 %v2870_v23, %v9497_v7  ;;  %v4783_v55 = vmul.f32 -1.442695, %v8768_v44 }
 0x394   : > { %v6110_v50 = vpop.eup %6109  ;;  %6135 = vrcp.f32 %v3492_v22  ;;  %v3482_v21 = vadd.f32 1.0, %v6108_v25  ;;  %v8778_v22 = vadd.f32 %v2728_v42, %v9472_v1  ;;  %v4180_v25 = vadd.f32 %v4179_v26, %v3937_v36 }
 0x395   : > { %v6112_v59 = vpop.eup %6111  ;;  %6137 = vrcp.f32 %v3511_v27  ;;  %v3515_v39 = vadd.f32 1.0, %v6110_v50  ;;  %v4774_v27 = vmul.f32 -1.442695, %v8764_v12 }
 0x396   : > { %v6114_v10 = vpop.eup %6113  ;;  %6139 = vrcp.f32 %v3482_v21  ;;  %v3497_v0 = vadd.f32 1.0, %v6112_v59  ;;  %v4898_v21 = vpop.f32.mrf.mxu1 }
 0x397   : > { %v6116_v37 = vpop.eup %6115  ;;  %6141 = vrcp.f32 %v3515_v39  ;;  %v3516_v15 = vadd.f32 1.0, %v6114_v10  ;;  %v4764_v39 = vmul.f32 -1.442695, %v8773_v19  ;;  %v8790_v10 = vadd.f32 %v2730_v56, %v9475_v53 }
 0x398   : > { %v6118_v16 = vpop.eup %6117  ;;  %6143 = vrcp.f32 %v3497_v0  ;;  %v3487_v9 = vadd.f32 1.0, %v6116_v37  ;;  %v4789_v37 = vmul.f32 -1.442695, %v8782_v28 }
 0x399   : > { %v6120_v6 = vpop.eup %6119  ;;  %v3980_v47 = vmul.f32 %v6118_v16, %v8652_v48  ;;  %6145 = vrcp.f32 %v3516_v15 }
 0x39a   : > { %v6122_v61 = vpop.eup %6121  ;;  %6147 = vrcp.f32 %v3487_v9  ;;  %v8806_v9 = vadd.f32 %v4898_v21, %v9497_v7 }
 0x39b   : > { %v6124_v23 = vpop.eup %6123  ;;  %v4115_v50 = vadd.f32 %v8735_v40, %v3980_v47  ;;  %v3981_v48 = vmul.f32 %v6122_v61, %v8658_v14  ;;  %6149 = vpow2.f32 %v4777_v17  ;;  %v4787_v14 = vmul.f32 -1.442695, %v8778_v22 }
 0x39c   : > { %v6126_v42 = vpop.eup %6125  ;;  %v3942_v59 = vmul.f32 %v6124_v23, %v8662_v58  ;;  %6151 = vpow2.f32 %v4769_v13  ;;  %v8797_v58 = vadd.f32 %v2883_v62, %v9497_v7  ;;  %v2734_v13 = vpop.f32.mrf.mxu0 }
 0x39d   : > { %v6128_v34 = vpop.eup %6127  ;;  %v4152_v26 = vadd.f32 %v8739_v54, %v3981_v48  ;;  %v3985_v40 = vmul.f32 %v6126_v42, %v8669_v29  ;;  %6153 = vpow2.f32 %v4778_v46  ;;  %v8801_v54 = vadd.f32 %v2732_v43, %v9472_v1  ;;  %v2886_v29 = vpop.f32.mrf.mxu1 }
 0x39e   : > { %v6130_v17 = vpop.eup %6129  ;;  %v4181_v0 = vadd.f32 %v4180_v25, %v3942_v59  ;;  %6155 = vpow2.f32 %v4759_v63  ;;  %v4788_v63 = vmul.f32 -1.442695, %v8790_v10  ;;  %v8816_v25 = vadd.f32 %v2886_v29, %v9497_v7 }
 0x39f   : > { %v6132_v15 = vpop.eup %6131  ;;  %v4116_v56 = vadd.f32 %v4115_v50, %v3985_v40  ;;  %v3986_v16 = vmul.f32 %v6130_v17, %v8676_v35  ;;  %6157 = vpow2.f32 %v4782_v51  ;;  %v8812_v35 = vadd.f32 %v2734_v13, %v9475_v53 }
 0x3a0   : > { %v6134_v46 = vpop.eup %6133  ;;  %v3947_v36 = vmul.f32 %v6132_v15, %v8681_v4  ;;  %6159 = vpow2.f32 %v4774_v27  ;;  %v4779_v4 = vmul.f32 -1.442695, %v8797_v58  ;;  %v4792_v50 = vmul.f32 -1.442695, %v8801_v54 }
 0x3a1   : > { %v8808_v62 = vpop.eup %6135  ;;  %v4153_v47 = vadd.f32 %v4152_v26, %v3986_v16  ;;  %v3990_v61 = vmul.f32 %v6134_v46, %v8686_v24  ;;  %6161 = vpow2.f32 %v4783_v55  ;;  %v3952_v48 = vmul.f32 %v6120_v6, %v8655_v5 }
 0x3a2   : > { %v6138_v1 = vpop.eup %6137  ;;  %v4182_v51 = vadd.f32 %v4181_v0, %v3947_v36  ;;  %6163 = vpow2.f32 %v4764_v39  ;;  %v4794_v53 = vmul.f32 -1.442695, %v8806_v9  ;;  %v4793_v7 = vmul.f32 -1.442695, %v8812_v35 }
 0x3a3   : > { %v6140_v27 = vpop.eup %6139  ;;  %v4117_v43 = vadd.f32 %v4116_v56, %v3990_v61  ;;  %v3991_v23 = vmul.f32 %v6138_v1, %v8698_v11  ;;  %6165 = vpow2.f32 %v4787_v14  ;;  %v4784_v11 = vmul.f32 -1.442695, %v8816_v25 }
 0x3a4   : > { %v6142_v24 = vpop.eup %6141  ;;  %6167 = vpow2.f32 %v4789_v37  ;;  %v4183_v39 = vadd.f32 %v4182_v51, %v3952_v48  ;;  %v3957_v14 = vmul.f32 %v6128_v34, %v8672_v60  ;;  %v3962_v29 = vmul.f32 %v6140_v27, %v8705_v38 }
 0x3a5   : > { %v8822_v55 = vpop.eup %6143  ;;  %v4154_v21 = vadd.f32 %v4153_v47, %v3991_v23  ;;  %v3995_v42 = vmul.f32 %v6142_v24, %v8709_v45  ;;  %6169 = vpow2.f32 %v4788_v63 }
 0x3a6   : > { %v6146_v59 = vpop.eup %6145  ;;  %6171 = vpow2.f32 %v4779_v4  ;;  %v4184_v13 = vadd.f32 %v4183_v39, %v3957_v14  ;;  %v3977_v14 = vmul.f32 %v8822_v55, %v8714_v18 }
 0x3a7   : > { %v6148_v26 = vpop.eup %6147  ;;  %v8827_v40 = vadd.f32 %v4117_v43, %v3995_v42  ;;  %v3996_v5 = vmul.f32 %v6146_v59, %v8720_v33  ;;  %6173 = vpow2.f32 %v4792_v50 }
 0x3a8   : > { %v6150_v6 = vpop.eup %6149  ;;  %6175 = vpow2.f32 %v4794_v53  ;;  %v4185_v63 = vadd.f32 %v4184_v13, %v3962_v29  ;;  %v3967_v47 = vmul.f32 %v6148_v26, %v8724_v8  ;;  %v3972_v8 = vmul.f32 %v8808_v62, %v8690_v20 }
 0x3a9   : > { %v6152_v17 = vpop.eup %6151  ;;  %v8831_v45 = vadd.f32 %v4154_v21, %v3996_v5  ;;  %v3520_v0 = vadd.f32 1.0, %v6150_v6  ;;  %6177 = vpow2.f32 %v4793_v7 }
 0x3aa   : > { %v6154_v37 = vpop.eup %6153  ;;  %6179 = vpow2.f32 %v4784_v11  ;;  %v3512_v33 = vadd.f32 1.0, %v6152_v17  ;;  %v4186_v50 = vadd.f32 %v4185_v63, %v3967_v47 }
 0x3ab   : > { %v6156_v15 = vpop.eup %6155  ;;  %6181 = vrcp.f32 %v3520_v0  ;;  %v3521_v56 = vadd.f32 1.0, %v6154_v37 }
 0x3ac   : > { %v6158_v16 = vpop.eup %6157  ;;  %v3502_v46 = vadd.f32 1.0, %v6156_v15  ;;  %v4187_v11 = vadd.f32 %v4186_v50, %v3972_v8 }
 0x3ad   : > { %v6160_v36 = vpop.eup %6159  ;;  %6183 = vrcp.f32 %v3521_v56  ;;  %v3525_v60 = vadd.f32 1.0, %v6158_v16 }
 0x3ae   : > { %v6162_v34 = vpop.eup %6161  ;;  %6185 = vrcp.f32 %v3502_v46  ;;  %v3517_v4 = vadd.f32 1.0, %v6160_v36  ;;  %v4188_v37 = vadd.f32 %v4187_v11, %v3977_v14 }
 0x3af   : > { %v6164_v61 = vpop.eup %6163  ;;  %6187 = vrcp.f32 %v3525_v60  ;;  %v3526_v1 = vadd.f32 1.0, %v6162_v34  ;;  %v9498_v60 = vld [vmem:[#allocation28_spill] sm:$0xff] }
 0x3b0   : > { %v6166_v51 = vpop.eup %6165  ;;  %6189 = vrcp.f32 %v3512_v33  ;;  %v3507_v43 = vadd.f32 1.0, %v6164_v61  ;;  %v2186_v34 = vrot.slane %v9498_v60, 4 }
 0x3b1   : > { %v6168_v23 = vpop.eup %6167  ;;  %6191 = vrcp.f32 %v3526_v1  ;;  %v3530_v38 = vadd.f32 1.0, %v6166_v51  ;;  %v9499_v1 = vld [vmem:[#allocation29_spill] sm:$0xff] }
 0x3b2   : > { %v6170_v27 = vpop.eup %6169  ;;  %6193 = vrcp.f32 %v3507_v43  ;;  %v3532_v21 = vadd.f32 1.0, %v6168_v23 }
 0x3b3   : > { %v6172_v24 = vpop.eup %6171  ;;  %6195 = vrcp.f32 %v3530_v38  ;;  %v3531_v48 = vadd.f32 1.0, %v6170_v27  ;;  %v2187_v38 = vadd.f32 %v2186_v34, %v9498_v60 }
 0x3b4   : > { %v6174_v53 = vpop.eup %6173  ;;  %6197 = vrcp.f32 %v3517_v4  ;;  %v3522_v42 = vadd.f32 1.0, %v6172_v24 }
 0x3b5   : > { %v6176_v7 = vpop.eup %6175  ;;  %6199 = vrcp.f32 %v3531_v48  ;;  %v3535_v59 = vadd.f32 1.0, %v6174_v53 }
 0x3b6   : > { %v6178_v39 = vpop.eup %6177  ;;  %6201 = vrcp.f32 %v3522_v42  ;;  %v3537_v17 = vadd.f32 1.0, %v6176_v7 }
 0x3b7   : > { %v6180_v26 = vpop.eup %6179  ;;  %6203 = vrcp.f32 %v3535_v59  ;;  %v3536_v5 = vadd.f32 1.0, %v6178_v39  ;;  %v2188_v39 = vrot.slane %v2187_v38, 2 }
 0x3b8   : > { %v6182_v6 = vpop.eup %6181  ;;  %6205 = vrcp.f32 %v3532_v21  ;;  %v3527_v0 = vadd.f32 1.0, %v6180_v26 }
 0x3b9   : > { %v4000_v20 = vmul.f32 %v6182_v6, %v8744_v49  ;;  %6207 = vrcp.f32 %v3536_v5 }
 0x3ba   : > { %v6184_v62 = vpop.eup %6183  ;;  %6209 = vrcp.f32 %v3527_v0 }
 0x3bb   : > { %v6186_v13 = vpop.eup %6185  ;;  %v4119_v15 = vadd.f32 %v8827_v40, %v4000_v20  ;;  %v4001_v56 = vmul.f32 %v6184_v62, %v8750_v41  ;;  %6211 = vrcp.f32 %v3537_v17  ;;  %v2189_v62 = vadd.f32 %v2188_v39, %v2187_v38 }
 0x3bc   : > { %v6188_v16 = vpop.eup %6187  ;;  %v3982_v29 = vmul.f32 %v6186_v13, %v8754_v2  ;;  %v2223_v2 = vrot.slane %v9499_v1, 4 }
 0x3bd   : > { %v6190_v33 = vpop.eup %6189  ;;  %v4156_v18 = vadd.f32 %v8831_v45, %v4001_v56  ;;  %v4005_v55 = vmul.f32 %v6188_v16, %v8761_v30 }
 0x3be   : > { %v6192_v46 = vpop.eup %6191  ;;  %v4189_v49 = vadd.f32 %v4188_v37, %v3982_v29  ;;  %v3992_v30 = vmul.f32 %v6190_v33, %v8747_v52  ;;  %v2224_v53 = vadd.f32 %v2223_v2, %v9499_v1  ;;  %v2260_v52 = vrot.slane %v8228_v57, 4 }
 0x3bf   : > { %v6194_v36 = vpop.eup %6193  ;;  %v4120_v63 = vadd.f32 %v4119_v15, %v4005_v55  ;;  %v4006_v47 = vmul.f32 %v6192_v46, %v8768_v44  ;;  %v2190_v55 = vrot.slane %v2189_v62, 1 }
 0x3c0   : > { %v6196_v40 = vpop.eup %6195  ;;  %v3987_v41 = vmul.f32 %v6194_v36, %v8773_v19  ;;  %v2225_v6 = vrot.slane %v2224_v53, 2 }
 0x3c1   : > { %v6198_v61 = vpop.eup %6197  ;;  %v4157_v51 = vadd.f32 %v4156_v18, %v4006_v47  ;;  %v4010_v4 = vmul.f32 %v6196_v40, %v8778_v22  ;;  %v2191_v40 = vadd.f32 %v2190_v55, %v2189_v62 }
 0x3c2   : > { %v6200_v45 = vpop.eup %6199  ;;  %v4190_v43 = vadd.f32 %v4189_v49, %v3987_v41  ;;  %v3997_v24 = vmul.f32 %v6198_v61, %v8764_v12  ;;  %v2226_v56 = vadd.f32 %v2225_v6, %v2224_v53  ;;  %v4204_v53 = vld [vmem:[%s6297_s28 + $0x8] sm:$0x3] }
 0x3c3   : > { %v6202_v23 = vpop.eup %6201  ;;  %v4121_v27 = vadd.f32 %v4120_v63, %v4010_v4  ;;  %v4011_v50 = vmul.f32 %v6200_v45, %v8790_v10  ;;  %v9500_v45 = vld [vmem:[#allocation6_spill] sm:$0xff] }
 0x3c4   : > { %v6204_v44 = vpop.eup %6203  ;;  %v4191_v19 = vadd.f32 %v4190_v43, %v3992_v30  ;;  %v4002_v42 = vmul.f32 %v6202_v23, %v8797_v58  ;;  %v2227_v36 = vrot.slane %v2226_v56, 1 }
 0x3c5   : > { %v6206_v48 = vpop.eup %6205  ;;  %v4158_v8 = vadd.f32 %v4157_v51, %v4011_v50  ;;  %v4015_v22 = vmul.f32 %v6204_v44, %v8801_v54  ;;  %v2261_v54 = vadd.f32 %v2260_v52, %v8228_v57 }
 0x3c6   : > { %v6208_v21 = vpop.eup %6207  ;;  %v4192_v7 = vadd.f32 %v4191_v19, %v3997_v24  ;;  %v4012_v0 = vmul.f32 %v6206_v48, %v8782_v28  ;;  %v2228_v1 = vadd.f32 %v2227_v36, %v2226_v56 }
 0x3c7   : > { %v6210_v59 = vpop.eup %6209  ;;  %v4122_v11 = vadd.f32 %v4121_v27, %v4015_v22  ;;  %v4016_v10 = vmul.f32 %v6208_v21, %v8812_v35  ;;  %v2262_v29 = vrot.slane %v2261_v54, 2 }
 0x3c8   : > { %v4193_v26 = vadd.f32 %v4192_v7, %v4002_v42  ;;  %v4007_v12 = vmul.f32 %v6210_v59, %v8816_v25  ;;  %v6212_v5 = vpop.eup %6211  ;;  %v6240_v25 = vmov 1983009808  }
 0x3c9   : > { %v4123_v14 = vrot.slane %v4122_v11, 4  ;;  %v4159_v17 = vadd.f32 %v4158_v8, %v4016_v10  ;;  %v4017_v13 = vmul.f32 %v6212_v5, %v8806_v9  ;;  %v4219_v33 = vunpack.c.l.s4 %v6240_v25 }
 0x3ca   : > { %v4194_v20 = vadd.f32 %v4193_v26, %v4007_v12  ;;  %v2263_v34 = vadd.f32 %v2262_v29, %v2261_v54 }
 0x3cb   : > { %v4124_v58 = vadd.f32 %v4123_v14, %v4122_v11  ;;  %v4160_v37 = vrot.slane %v4159_v17, 4  ;;  %v4220_v63 = vunpack.c.0.s8 %v4219_v33 }
 0x3cc   : > { %v4195_v15 = vadd.f32 %v4194_v20, %v4012_v0  ;;  %v2264_v4 = vrot.slane %v2263_v34, 1 }
 0x3cd   : > { %v4125_v35 = vrot.slane %v4124_v58, 2  ;;  %v4161_v16 = vadd.f32 %v4160_v37, %v4159_v17  ;;  %v4223_v30 = vsub.s32 %v4220_v63, %v9500_v45 }
 0x3ce   : > { %v4196_v18 = vadd.f32 %v4195_v15, %v4017_v13  ;;  %v2265_v50 = vadd.f32 %v2264_v4, %v2263_v34 }
 0x3cf   : > { %v4126_v46 = vadd.f32 %v4125_v35, %v4124_v58  ;;  %v4162_v49 = vrot.slane %v4161_v16, 2  ;;  %v4224_v44 = vrot.slane %v4216_v32, %v4223_v30 }
 0x3d0   : > { %v4197_v57 = vrot.slane %v4196_v18, 4 }
 0x3d1   : > { %v4127_v28 = vrot.slane %v4126_v46, 1  ;;  %v4163_v60 = vadd.f32 %v4162_v49, %v4161_v16 }
 0x3d2   : > { %v4198_v47 = vadd.f32 %v4197_v57, %v4196_v18 }
 0x3d3   : > { %v4128_v9 = vadd.f32 %v4127_v28, %v4126_v46  ;;  %v4164_v41 = vrot.slane %v4163_v60, 1 }
 0x3d4   : > { %v4199_v61 = vrot.slane %v4198_v47, 2 }
 0x3d5   : > { %v4208_v2 = vsel %vm4205_vm2, %v2191_v40, %v4128_v9  ;;  %v4165_v51 = vadd.f32 %v4164_v41, %v4163_v60 }
 0x3d6   : > { %v4200_v43 = vadd.f32 %v4199_v61, %v4198_v47 }
 0x3d7   : > { %v4209_v23 = vsel %vm4205_vm2, %v2228_v1, %v4165_v51 }
 0x3d8   : > { %v4217_v38 = vcombine.low %v4208_v2, %v4209_v23  ;;  %v4201_v27 = vrot.slane %v4200_v43, 1 }
 0x3da   : > { %v4231_v24 = vrot.slane %v4217_v38, %v4223_v30  ;;  %v4202_v19 = vadd.f32 %v4201_v27, %v4200_v43 }
 0x3dc   : > { %v4232_v48 = vcombine.low %v4224_v44, %v4231_v24  ;;  %v4210_v8 = vsel %vm4205_vm2, %v2265_v50, %v4202_v19 }
 0x3dd   : > { %v4239_v22 = vrot.slane %v4210_v8, %v4223_v30 }
 0x3de   : > { %4244 = vst [vmem:[%s6297_s28] sm:$0xff] %v4232_v48 }
 0x3df   : > { %v4243_v21 = vadd.f32 %v4239_v22, %v4204_v53 }
 0x3e1   : > { %4245 = vst [vmem:[%s6297_s28 + $0x8] sm:$0x3] %v4243_v21 }
 0x3e2 PF: > { %s13_s14 = sadd.s32 1, %s6236_s14   ;;  %s9501_s12 = smov %s6232_s13 }
 0x3e3   : > { %p10_p5 = scmp.ge.s32.totalorder %s13_s14, 4   ;;  %s9502_s13 = smov %s9504_s15 }
 0x3e5   :  { %12 = sbr.rel (!%p10_p5) target bundleno = 2 (0x2), region = 73 }

</bundles_post_ra>
